<compile_context>
chip_gen: v5e
topology: v5e:2x2
jax: 0.10.0
libtpu: 0.0.40
codegen_flags: <defaults>
</compile_context>

<pallas_src>
import functools

import jax
import jax.numpy as jnp
from jax.experimental import pallas as pl
from jax.experimental.pallas import tpu as pltpu

EPS = 1e-5
_TAPS = tuple((kh, kw) for kh in range(3) for kw in range(3))


def _conv3x3_stats_kernel(*refs, prelude, H, W, Cin, Cout):
    """Per-image 3x3 conv (stride 1, pad 1) + BN partial statistics.

    prelude=False: refs = (x, w, out, stats, xpad)          -> conv(x)
    prelude=True : refs = (x, scale, shift, w, out, stats, xpad)
                   -> conv(relu(x * scale + shift))   (fused BN+ReLU of prev layer)
    """
    if prelude:
        x_ref, scale_ref, shift_ref, w_ref, out_ref, stats_ref, xpad = refs
    else:
        x_ref, w_ref, out_ref, stats_ref, xpad = refs

    x = x_ref[0]                                               # (H, W, Cin) bf16
    if prelude:
        # one-pass BN of the previous layer as a single f32 FMA, then ReLU
        xf = x.astype(jnp.float32) * scale_ref[...] + shift_ref[...]
        x = jnp.maximum(xf, 0.0).astype(jnp.bfloat16)

    # ---- stage into the bf16 halo-padded scratch ----------------------------
    # zero only the 1-pixel halo ring (interior is fully overwritten below);
    # done every grid step so it is safe under megacore "parallel" sharding.
    zrow = jnp.zeros((1, W + 2, Cin), xpad.dtype)
    zcol = jnp.zeros((H, 1, Cin), xpad.dtype)
    xpad[0:1, :, :] = zrow
    xpad[H + 1:H + 2, :, :] = zrow
    xpad[1:H + 1, 0:1, :] = zcol
    xpad[1:H + 1, W + 1:W + 2, :] = zcol
    xpad[1:H + 1, 1:W + 1, :] = x.astype(xpad.dtype)

    # ---- 9 accumulating MXU matmuls (no explicit im2col patch buffer) -------
    acc = None
    for k, (kh, kw) in enumerate(_TAPS):
        tap = xpad[kh:kh + H, kw:kw + W, :].reshape(H * W, Cin)       # bf16
        contrib = jnp.dot(tap, w_ref[k * Cin:(k + 1) * Cin, :],
                          preferred_element_type=jnp.float32)         # f32 acc
        acc = contrib if acc is None else acc + contrib               # (H*W, Cout)

    # ---- per-image BN partial statistics from the f32 accumulator -----------
    s = jnp.sum(acc, axis=0, keepdims=True)                    # (1, Cout)
    sq = jnp.sum(acc * acc, axis=0, keepdims=True)             # (1, Cout)
    stats_ref[...] = jnp.concatenate([s, sq], axis=0).reshape(1, 2, Cout)

    # lane-dense bf16 activation store (no (H,W,Cout) relayout)
    out_ref[...] = acc.reshape(1, H * W, Cout).astype(out_ref.dtype)


def _finalize_kernel(y_ref, res_ref, scale_ref, shift_ref, out_ref):
    # all activation blocks are (1, H, W*C): lane-dense elementwise finalize
    # out = relu(bn2(conv2) + residual)
    y = y_ref[...].astype(jnp.float32) * scale_ref[...] + shift_ref[...]
    y = y + res_ref[...].astype(jnp.float32)
    out_ref[...] = jnp.maximum(y, 0.0).astype(out_ref.dtype)


def _conv3x3_stats(x, w, scale=None, shift=None):
    """x: (N,H,W,Cin) bf16; w: (9*Cin,Cout) bf16; scale/shift: (1,Cin) f32 or None.
    Returns conv output (N, H*W, Cout) bf16 and per-image stats (N,2,Cout) f32."""
    N, H, W, Cin = x.shape
    Cout = w.shape[1]
    prelude = scale is not None

    kernel = functools.partial(_conv3x3_stats_kernel, prelude=prelude,
                               H=H, W=W, Cin=Cin, Cout=Cout)

    x_spec = pl.BlockSpec((1, H, W, Cin), lambda i: (i, 0, 0, 0))
    vec_spec = pl.BlockSpec((1, Cin), lambda i: (0, 0))
    w_spec = pl.BlockSpec((9 * Cin, Cout), lambda i: (0, 0))
    in_specs = [x_spec] + ([vec_spec, vec_spec] if prelude else []) + [w_spec]
    args = (x,) + ((scale, shift) if prelude else ()) + (w,)

    return pl.pallas_call(
        kernel,
        grid=(N,),
        in_specs=in_specs,
        out_specs=[
            pl.BlockSpec((1, H * W, Cout), lambda i: (i, 0, 0)),
            pl.BlockSpec((1, 2, Cout), lambda i: (i, 0, 0)),
        ],
        out_shape=[
            jax.ShapeDtypeStruct((N, H * W, Cout), jnp.bfloat16),   # bf16 activations
            jax.ShapeDtypeStruct((N, 2, Cout), jnp.float32),        # f32 BN partials
        ],
        scratch_shapes=[
            pltpu.VMEM((H + 2, W + 2, Cin), jnp.bfloat16),  # halo-padded input (VMEM only)
        ],
        compiler_params=pltpu.CompilerParams(
            dimension_semantics=("parallel",)),
    )(*args)


def _finalize(y, res, scale_row, shift_row):
    """y, res: (N, H, W*C) bf16; scale/shift rows: (1, W*C) f32 -> (N, H, W*C) f32."""
    N, H, WC = y.shape
    return pl.pallas_call(
        _finalize_kernel,
        grid=(N,),
        in_specs=[
            pl.BlockSpec((1, H, WC), lambda i: (i, 0, 0)),
            pl.BlockSpec((1, H, WC), lambda i: (i, 0, 0)),
            pl.BlockSpec((1, WC), lambda i: (0, 0)),
            pl.BlockSpec((1, WC), lambda i: (0, 0)),
        ],
        out_specs=pl.BlockSpec((1, H, WC), lambda i: (i, 0, 0)),
        out_shape=jax.ShapeDtypeStruct((N, H, WC), jnp.float32),
        compiler_params=pltpu.CompilerParams(
            dimension_semantics=("parallel",)),
    )(y, res, scale_row, shift_row)


def _bn_affine(stats, gamma, beta, count):
    """Exact training-mode BN over the whole batch from per-image partials."""
    total = jnp.sum(stats, axis=0)                   # (2, C): [sum, sumsq]
    mean = total[0] / count
    var = jnp.maximum(total[1] / count - mean * mean, 0.0)   # biased variance, clamped
    scale = gamma * jax.lax.rsqrt(var + EPS)
    shift = beta - mean * scale
    return scale.reshape(1, -1), shift.reshape(1, -1)


def basic_block_nhwc(x, w1, w2, g1, b1, g2, b2):
    """BasicBlock forward in NHWC. x: (N,H,W,C) f32; w1/w2: torch OIHW (C,C,3,3)."""
    N, H, W, Cin = x.shape
    Cout = w1.shape[0]
    assert Cin == Cout, "downsample is None -> inplanes must equal planes"
    count = N * H * W

    # bf16 activations end-to-end inside the block (halves HBM traffic on a
    # mem-bound chain); BN statistics / normalization math stay f32.
    x_bf = x.astype(jnp.bfloat16)

    # OIHW -> (kh, kw, Cin, Cout) -> (9*Cin, Cout) weights, bf16 for the MXU
    w1k = jnp.transpose(w1, (2, 3, 1, 0)).reshape(9 * Cin, Cout).astype(jnp.bfloat16)
    w2k = jnp.transpose(w2, (2, 3, 1, 0)).reshape(9 * Cout, Cout).astype(jnp.bfloat16)

    # conv1 + per-image BN1 statistics, then exact global BN1 scale/shift
    out1, stats1 = _conv3x3_stats(x_bf, w1k)                  # out1: (N, H*W, C) bf16
    scale1, shift1 = _bn_affine(stats1, g1, b1, count)

    # (BN1 + ReLU fused as prelude) -> conv2 + per-image BN2 statistics
    out2, stats2 = _conv3x3_stats(out1.reshape(N, H, W, Cout), w2k, scale1, shift1)
    scale2, shift2 = _bn_affine(stats2, g2, b2, count)

    # BN2 + residual add + ReLU, lane-dense (fold W*C into the last dim; the
    # HBM reshapes below are free contiguous views, not copies)
    scale2_row = jnp.tile(scale2[0], W).reshape(1, W * Cout)
    shift2_row = jnp.tile(shift2[0], W).reshape(1, W * Cout)
    out = _finalize(out2.reshape(N, H, W * Cout),
                    x_bf.reshape(N, H, W * Cin),
                    scale2_row, shift2_row)
    return out.reshape(N, H, W, Cout)


def basic_block(x_nchw, w1, w2, g1, b1, g2, b2):
    # NCHW<->NHWC conversion kept out of the hot path; a real NHWC network
    # would call basic_block_nhwc directly and skip both transposes.
    x = jnp.transpose(x_nchw, (0, 2, 3, 1))
    out = basic_block_nhwc(x, w1, w2, g1, b1, g2, b2)
    return jnp.transpose(out, (0, 3, 1, 2))


def _reference(x, w1, w2, g1, b1, g2, b2):
    """Pure-JAX (f32) reference of the torch BasicBlock forward, NCHW."""
    def conv(inp, w):
        return jax.lax.conv_general_dilated(
            inp, w, (1, 1), ((1, 1), (1, 1)),
            dimension_numbers=("NCHW", "OIHW", "NCHW"))

    def bn(inp, g, b):
        mean = jnp.mean(inp, axis=(0, 2, 3), keepdims=True)
        var = jnp.mean((inp - mean) ** 2, axis=(0, 2, 3), keepdims=True)
        return ((inp - mean) * jax.lax.rsqrt(var + EPS) * g.reshape(1, -1, 1, 1)
                + b.reshape(1, -1, 1, 1))

    out = jax.nn.relu(bn(conv(x, w1), g1, b1))
    out = bn(conv(out, w2), g2, b2) + x
    return jax.nn.relu(out)


if __name__ == "__main__":
    key = jax.random.PRNGKey(0)
    kx, k1, k2 = jax.random.split(key, 3)

    N, C, H, W = 2, 4, 16, 16            # inplanes = planes = 4, stride = 1
    x = jax.random.normal(kx, (N, C, H, W), jnp.float32)

    w1 = 0.1 * jax.random.normal(k1, (C, C, 3, 3), jnp.float32)
    w2 = 0.1 * jax.random.normal(k2, (C, C, 3, 3), jnp.float32)
    g1 = jnp.ones((C,), jnp.float32)
    b1 = jnp.zeros((C,), jnp.float32)
    g2 = jnp.ones((C,), jnp.float32)
    b2 = jnp.zeros((C,), jnp.float32)

    out = jax.block_until_ready(basic_block(x, w1, w2, g1, b1, g2, b2))
    assert out.shape == (N, C, H, W)
    assert bool(jnp.all(out >= 0.0))     # final ReLU

    ref = _reference(x, w1, w2, g1, b1, g2, b2)
    err = float(jnp.max(jnp.abs(out - ref)))
    # bf16 MXU operands + bf16 activations are an intentional precision contract
    assert err < 0.3, f"mismatch vs f32 reference: {err}"
    print("KERNEL_OK")
</pallas_src>

<mosaic_0001>
module attributes {stable_mosaic.version = 11 : i64} {
  func.func @_conv3x3_stats_kernel(%arg0: i32, %arg1: memref<1x16x16x4xbf16, #tpu.memory_space<vmem>>, %arg2: memref<36x4xbf16, #tpu.memory_space<vmem>>, %arg3: memref<1x256x4xbf16, #tpu.memory_space<vmem>>, %arg4: memref<1x2x4xf32, #tpu.memory_space<vmem>>, %arg5: memref<18x18x4xbf16, #tpu.memory_space<vmem>>) attributes {dimension_semantics = [#tpu.dimension_semantics<parallel>], iteration_bounds = array<i64: 2>, scalar_prefetch = 0 : i64, scratch_operands = 1 : i64, tpu.core_type = #tpu.core_type<tc>, window_params = [{transform_indices = @transform_0, window_bounds = array<i64: 1, 16, 16, 4>}, {pipeline_mode = #tpu.pipeline_mode<synchronous>, transform_indices = @transform_1, window_bounds = array<i64: 36, 4>}, {transform_indices = @transform_2, window_bounds = array<i64: 1, 256, 4>}, {transform_indices = @transform_3, window_bounds = array<i64: 1, 2, 4>}]} {
    %c0 = arith.constant 0 : index
    %c0_0 = arith.constant 0 : index
    %c0_1 = arith.constant 0 : index
    %c0_2 = arith.constant 0 : index
    %0 = vector.load %arg1[%c0, %c0_0, %c0_1, %c0_2] : memref<1x16x16x4xbf16, #tpu.memory_space<vmem>>, vector<1x16x16x4xbf16>
    %1 = vector.shape_cast %0 : vector<1x16x16x4xbf16> to vector<16x16x4xbf16>
    %cst = arith.constant 0.000000e+00 : bf16
    %2 = vector.broadcast %cst : bf16 to vector<1x18x4xbf16>
    %cst_3 = arith.constant 0.000000e+00 : bf16
    %3 = vector.broadcast %cst_3 : bf16 to vector<16x1x4xbf16>
    %c0_4 = arith.constant 0 : index
    %c0_5 = arith.constant 0 : index
    %c0_6 = arith.constant 0 : index
    %4 = vector.load %arg5[%c0_4, %c0_5, %c0_6] : memref<18x18x4xbf16, #tpu.memory_space<vmem>>, vector<1x18x4xbf16>
    tpu.vector_store %arg5[%c0_4, %c0_5, %c0_6], %2 {strides = array<i32>} : memref<18x18x4xbf16, #tpu.memory_space<vmem>>, vector<1x18x4xbf16>,
    %c17 = arith.constant 17 : index
    %c0_7 = arith.constant 0 : index
    %c0_8 = arith.constant 0 : index
    %5 = vector.load %arg5[%c17, %c0_7, %c0_8] : memref<18x18x4xbf16, #tpu.memory_space<vmem>>, vector<1x18x4xbf16>
    tpu.vector_store %arg5[%c17, %c0_7, %c0_8], %2 {strides = array<i32>} : memref<18x18x4xbf16, #tpu.memory_space<vmem>>, vector<1x18x4xbf16>,
    %c1 = arith.constant 1 : index
    %c0_9 = arith.constant 0 : index
    %c0_10 = arith.constant 0 : index
    %6 = vector.load %arg5[%c1, %c0_9, %c0_10] : memref<18x18x4xbf16, #tpu.memory_space<vmem>>, vector<16x1x4xbf16>
    tpu.vector_store %arg5[%c1, %c0_9, %c0_10], %3 {strides = array<i32>} : memref<18x18x4xbf16, #tpu.memory_space<vmem>>, vector<16x1x4xbf16>,
    %c1_11 = arith.constant 1 : index
    %c17_12 = arith.constant 17 : index
    %c0_13 = arith.constant 0 : index
    %7 = vector.load %arg5[%c1_11, %c17_12, %c0_13] : memref<18x18x4xbf16, #tpu.memory_space<vmem>>, vector<16x1x4xbf16>
    tpu.vector_store %arg5[%c1_11, %c17_12, %c0_13], %3 {strides = array<i32>} : memref<18x18x4xbf16, #tpu.memory_space<vmem>>, vector<16x1x4xbf16>,
    %c1_14 = arith.constant 1 : index
    %c1_15 = arith.constant 1 : index
    %c0_16 = arith.constant 0 : index
    %8 = vector.load %arg5[%c1_14, %c1_15, %c0_16] : memref<18x18x4xbf16, #tpu.memory_space<vmem>>, vector<16x16x4xbf16>
    tpu.vector_store %arg5[%c1_14, %c1_15, %c0_16], %1 {strides = array<i32>} : memref<18x18x4xbf16, #tpu.memory_space<vmem>>, vector<16x16x4xbf16>,
    %c0_17 = arith.constant 0 : index
    %c0_18 = arith.constant 0 : index
    %c0_19 = arith.constant 0 : index
    %9 = vector.load %arg5[%c0_17, %c0_18, %c0_19] : memref<18x18x4xbf16, #tpu.memory_space<vmem>>, vector<16x16x4xbf16>
    %10 = vector.shape_cast %9 : vector<16x16x4xbf16> to vector<256x4xbf16>
    %c0_20 = arith.constant 0 : index
    %c0_21 = arith.constant 0 : index
    %11 = vector.load %arg2[%c0_20, %c0_21] : memref<36x4xbf16, #tpu.memory_space<vmem>>, vector<4x4xbf16>
    %cst_22 = arith.constant dense<0.000000e+00> : vector<256x4xf32>
    %12 = tpu.matmul %10, %11, %cst_22 {dimension_numbers = #tpu.dot_dimension_numbers<[1], [0], [0], [1], [0, 0, 1, 1], [], []>} : vector<256x4xbf16>, vector<4x4xbf16>, vector<256x4xf32> -> vector<256x4xf32>
    %c0_23 = arith.constant 0 : index
    %c1_24 = arith.constant 1 : index
    %c0_25 = arith.constant 0 : index
    %13 = vector.load %arg5[%c0_23, %c1_24, %c0_25] : memref<18x18x4xbf16, #tpu.memory_space<vmem>>, vector<16x16x4xbf16>
    %14 = vector.shape_cast %13 : vector<16x16x4xbf16> to vector<256x4xbf16>
    %c4 = arith.constant 4 : index
    %c0_26 = arith.constant 0 : index
    %15 = vector.load %arg2[%c4, %c0_26] : memref<36x4xbf16, #tpu.memory_space<vmem>>, vector<4x4xbf16>
    %cst_27 = arith.constant dense<0.000000e+00> : vector<256x4xf32>
    %16 = tpu.matmul %14, %15, %cst_27 {dimension_numbers = #tpu.dot_dimension_numbers<[1], [0], [0], [1], [0, 0, 1, 1], [], []>} : vector<256x4xbf16>, vector<4x4xbf16>, vector<256x4xf32> -> vector<256x4xf32>
    %17 = arith.addf %12, %16 : vector<256x4xf32>
    %c0_28 = arith.constant 0 : index
    %c2 = arith.constant 2 : index
    %c0_29 = arith.constant 0 : index
    %18 = vector.load %arg5[%c0_28, %c2, %c0_29] : memref<18x18x4xbf16, #tpu.memory_space<vmem>>, vector<16x16x4xbf16>
    %19 = vector.shape_cast %18 : vector<16x16x4xbf16> to vector<256x4xbf16>
    %c8 = arith.constant 8 : index
    %c0_30 = arith.constant 0 : index
    %20 = vector.load %arg2[%c8, %c0_30] : memref<36x4xbf16, #tpu.memory_space<vmem>>, vector<4x4xbf16>
    %cst_31 = arith.constant dense<0.000000e+00> : vector<256x4xf32>
    %21 = tpu.matmul %19, %20, %cst_31 {dimension_numbers = #tpu.dot_dimension_numbers<[1], [0], [0], [1], [0, 0, 1, 1], [], []>} : vector<256x4xbf16>, vector<4x4xbf16>, vector<256x4xf32> -> vector<256x4xf32>
    %22 = arith.addf %17, %21 : vector<256x4xf32>
    %c1_32 = arith.constant 1 : index
    %c0_33 = arith.constant 0 : index
    %c0_34 = arith.constant 0 : index
    %23 = vector.load %arg5[%c1_32, %c0_33, %c0_34] : memref<18x18x4xbf16, #tpu.memory_space<vmem>>, vector<16x16x4xbf16>
    %24 = vector.shape_cast %23 : vector<16x16x4xbf16> to vector<256x4xbf16>
    %c12 = arith.constant 12 : index
    %c0_35 = arith.constant 0 : index
    %25 = vector.load %arg2[%c12, %c0_35] : memref<36x4xbf16, #tpu.memory_space<vmem>>, vector<4x4xbf16>
    %cst_36 = arith.constant dense<0.000000e+00> : vector<256x4xf32>
    %26 = tpu.matmul %24, %25, %cst_36 {dimension_numbers = #tpu.dot_dimension_numbers<[1], [0], [0], [1], [0, 0, 1, 1], [], []>} : vector<256x4xbf16>, vector<4x4xbf16>, vector<256x4xf32> -> vector<256x4xf32>
    %27 = arith.addf %22, %26 : vector<256x4xf32>
    %c1_37 = arith.constant 1 : index
    %c1_38 = arith.constant 1 : index
    %c0_39 = arith.constant 0 : index
    %28 = vector.load %arg5[%c1_37, %c1_38, %c0_39] : memref<18x18x4xbf16, #tpu.memory_space<vmem>>, vector<16x16x4xbf16>
    %29 = vector.shape_cast %28 : vector<16x16x4xbf16> to vector<256x4xbf16>
    %c16 = arith.constant 16 : index
    %c0_40 = arith.constant 0 : index
    %30 = vector.load %arg2[%c16, %c0_40] : memref<36x4xbf16, #tpu.memory_space<vmem>>, vector<4x4xbf16>
    %cst_41 = arith.constant dense<0.000000e+00> : vector<256x4xf32>
    %31 = tpu.matmul %29, %30, %cst_41 {dimension_numbers = #tpu.dot_dimension_numbers<[1], [0], [0], [1], [0, 0, 1, 1], [], []>} : vector<256x4xbf16>, vector<4x4xbf16>, vector<256x4xf32> -> vector<256x4xf32>
    %32 = arith.addf %27, %31 : vector<256x4xf32>
    %c1_42 = arith.constant 1 : index
    %c2_43 = arith.constant 2 : index
    %c0_44 = arith.constant 0 : index
    %33 = vector.load %arg5[%c1_42, %c2_43, %c0_44] : memref<18x18x4xbf16, #tpu.memory_space<vmem>>, vector<16x16x4xbf16>
    %34 = vector.shape_cast %33 : vector<16x16x4xbf16> to vector<256x4xbf16>
    %c20 = arith.constant 20 : index
    %c0_45 = arith.constant 0 : index
    %35 = vector.load %arg2[%c20, %c0_45] : memref<36x4xbf16, #tpu.memory_space<vmem>>, vector<4x4xbf16>
    %cst_46 = arith.constant dense<0.000000e+00> : vector<256x4xf32>
    %36 = tpu.matmul %34, %35, %cst_46 {dimension_numbers = #tpu.dot_dimension_numbers<[1], [0], [0], [1], [0, 0, 1, 1], [], []>} : vector<256x4xbf16>, vector<4x4xbf16>, vector<256x4xf32> -> vector<256x4xf32>
    %37 = arith.addf %32, %36 : vector<256x4xf32>
    %c2_47 = arith.constant 2 : index
    %c0_48 = arith.constant 0 : index
    %c0_49 = arith.constant 0 : index
    %38 = vector.load %arg5[%c2_47, %c0_48, %c0_49] : memref<18x18x4xbf16, #tpu.memory_space<vmem>>, vector<16x16x4xbf16>
    %39 = vector.shape_cast %38 : vector<16x16x4xbf16> to vector<256x4xbf16>
    %c24 = arith.constant 24 : index
    %c0_50 = arith.constant 0 : index
    %40 = vector.load %arg2[%c24, %c0_50] : memref<36x4xbf16, #tpu.memory_space<vmem>>, vector<4x4xbf16>
    %cst_51 = arith.constant dense<0.000000e+00> : vector<256x4xf32>
    %41 = tpu.matmul %39, %40, %cst_51 {dimension_numbers = #tpu.dot_dimension_numbers<[1], [0], [0], [1], [0, 0, 1, 1], [], []>} : vector<256x4xbf16>, vector<4x4xbf16>, vector<256x4xf32> -> vector<256x4xf32>
    %42 = arith.addf %37, %41 : vector<256x4xf32>
    %c2_52 = arith.constant 2 : index
    %c1_53 = arith.constant 1 : index
    %c0_54 = arith.constant 0 : index
    %43 = vector.load %arg5[%c2_52, %c1_53, %c0_54] : memref<18x18x4xbf16, #tpu.memory_space<vmem>>, vector<16x16x4xbf16>
    %44 = vector.shape_cast %43 : vector<16x16x4xbf16> to vector<256x4xbf16>
    %c28 = arith.constant 28 : index
    %c0_55 = arith.constant 0 : index
    %45 = vector.load %arg2[%c28, %c0_55] : memref<36x4xbf16, #tpu.memory_space<vmem>>, vector<4x4xbf16>
    %cst_56 = arith.constant dense<0.000000e+00> : vector<256x4xf32>
    %46 = tpu.matmul %44, %45, %cst_56 {dimension_numbers = #tpu.dot_dimension_numbers<[1], [0], [0], [1], [0, 0, 1, 1], [], []>} : vector<256x4xbf16>, vector<4x4xbf16>, vector<256x4xf32> -> vector<256x4xf32>
    %47 = arith.addf %42, %46 : vector<256x4xf32>
    %c2_57 = arith.constant 2 : index
    %c2_58 = arith.constant 2 : index
    %c0_59 = arith.constant 0 : index
    %48 = vector.load %arg5[%c2_57, %c2_58, %c0_59] : memref<18x18x4xbf16, #tpu.memory_space<vmem>>, vector<16x16x4xbf16>
    %49 = vector.shape_cast %48 : vector<16x16x4xbf16> to vector<256x4xbf16>
    %c32 = arith.constant 32 : index
    %c0_60 = arith.constant 0 : index
    %50 = vector.load %arg2[%c32, %c0_60] : memref<36x4xbf16, #tpu.memory_space<vmem>>, vector<4x4xbf16>
    %cst_61 = arith.constant dense<0.000000e+00> : vector<256x4xf32>
    %51 = tpu.matmul %49, %50, %cst_61 {dimension_numbers = #tpu.dot_dimension_numbers<[1], [0], [0], [1], [0, 0, 1, 1], [], []>} : vector<256x4xbf16>, vector<4x4xbf16>, vector<256x4xf32> -> vector<256x4xf32>
    %52 = arith.addf %47, %51 : vector<256x4xf32>
    %cst_62 = arith.constant dense<0.000000e+00> : vector<4xf32>
    %53 = vector.multi_reduction <add>, %52, %cst_62 [0] : vector<256x4xf32> to vector<4xf32>
    %54 = vector.shape_cast %53 : vector<4xf32> to vector<1x4xf32>
    %55 = arith.mulf %52, %52 : vector<256x4xf32>
    %cst_63 = arith.constant dense<0.000000e+00> : vector<4xf32>
    %56 = vector.multi_reduction <add>, %55, %cst_63 [0] : vector<256x4xf32> to vector<4xf32>
    %57 = vector.shape_cast %56 : vector<4xf32> to vector<1x4xf32>
    %58 = tpu.concatenate %54, %57 in 0 : vector<1x4xf32>, vector<1x4xf32> -> vector<2x4xf32>
    %59 = vector.shape_cast %58 : vector<2x4xf32> to vector<1x2x4xf32>
    %c0_64 = arith.constant 0 : index
    %c0_65 = arith.constant 0 : index
    %c0_66 = arith.constant 0 : index
    %60 = vector.load %arg4[%c0_64, %c0_65, %c0_66] : memref<1x2x4xf32, #tpu.memory_space<vmem>>, vector<1x2x4xf32>
    tpu.vector_store %arg4[%c0_64, %c0_65, %c0_66], %59 {strides = array<i32>} : memref<1x2x4xf32, #tpu.memory_space<vmem>>, vector<1x2x4xf32>,
    %61 = vector.shape_cast %52 : vector<256x4xf32> to vector<1x256x4xf32>
    %62 = arith.truncf %61 : vector<1x256x4xf32> to vector<1x256x4xbf16>
    %c0_67 = arith.constant 0 : index
    %c0_68 = arith.constant 0 : index
    %c0_69 = arith.constant 0 : index
    %63 = vector.load %arg3[%c0_67, %c0_68, %c0_69] : memref<1x256x4xbf16, #tpu.memory_space<vmem>>, vector<1x256x4xbf16>
    tpu.vector_store %arg3[%c0_67, %c0_68, %c0_69], %62 {strides = array<i32>} : memref<1x256x4xbf16, #tpu.memory_space<vmem>>, vector<1x256x4xbf16>,
    return
  }
  func.func @transform_0(%arg0: i32) -> (i32, i32, i32, i32) {
    %c0_i32 = arith.constant 0 : i32
    %c0_i32_0 = arith.constant 0 : i32
    %c0_i32_1 = arith.constant 0 : i32
    %c0_i32_2 = arith.constant 0 : i32
    return %arg0, %c0_i32, %c0_i32_0, %c0_i32_1 : i32, i32, i32, i32
  }
  func.func @transform_1(%arg0: i32) -> (i32, i32) {
    %c0_i32 = arith.constant 0 : i32
    %c0_i32_0 = arith.constant 0 : i32
    %c0_i32_1 = arith.constant 0 : i32
    return %c0_i32, %c0_i32_0 : i32, i32
  }
  func.func @transform_2(%arg0: i32) -> (i32, i32, i32) {
    %c0_i32 = arith.constant 0 : i32
    %c0_i32_0 = arith.constant 0 : i32
    %c0_i32_1 = arith.constant 0 : i32
    return %arg0, %c0_i32, %c0_i32_0 : i32, i32, i32
  }
  func.func @transform_3(%arg0: i32) -> (i32, i32, i32) {
    %c0_i32 = arith.constant 0 : i32
    %c0_i32_0 = arith.constant 0 : i32
    %c0_i32_1 = arith.constant 0 : i32
    return %arg0, %c0_i32, %c0_i32_0 : i32, i32, i32
  }
}

</mosaic_0001>

<bundles_post_ra>
// kernel: tpu_custom_call.1
= control target key start
LH: loop header
LB: loop body
LE: loop exit
PB: predicated region body
PF: predicated region fallthrough
CT: control target
= control target key end

     0   :  { %9 = vsyncpa [#allocation4], 0  ;;  %s7246_s0 = inlined_call_operand.vmem [shape: bf16[2,16,16,4], index: 0, kind: input, shape index: {}]   ;;  %s7247_s1 = inlined_call_operand.vmem [shape: bf16[36,4], index: 1, kind: input, shape index: {}]   ;;  %s7248_s2 = inlined_call_operand.vmem [shape: bf16[2,256,4], index: 2, kind: output, shape index: {0}]   ;;  %s7249_s3 = inlined_call_operand.hbm [shape: f32[2,2,4], index: 3, kind: output, shape index: {1}]  }
   0x1   :  { %11 = vsyncpa [#allocation4 + $0x1], 0  ;;  %s5657_s12 = smov 0   ;;  %s5659_s13 = smov 0  }
   0x2   :  { %s5661_s14 = smov 0   ;;  %s5663_s15 = smov 0  }
   0x3 LB: > { %s5678_s16 = sadd.s32 4294967295, %s5634_s15   ;;  %s5026_s17 = sadd.s32 4294967294, %s5634_s15   ;;  %s5634_s15 = sphi %s5663_s15, %s7281_s15   ;;  %s5630_s14 = sphi %s5661_s14, %s7280_s14   ;;  %s5626_s13 = sphi %s5659_s13, %s7279_s13   ;;  %s5622_s12 = sphi %s5657_s12, %s7278_s12  }
   0x4   : > { %s5682_s18 = sadd.s32 1, %s5634_s15   ;;  %s97_s19 = sadd.s32 1, %s5630_s14 }
   0x5   : > { %s94_s20 = ssub.s32 %s5634_s15, %s5682_s18  ;;  %p107_p0 = scmp.ne.s32.totalorder %s5630_s14, %s5626_s13 }
   0x6   : > { %p95_p1 = scmp.eq.s32.totalorder %s94_s20, 0  ;;  %p108_p2 = scmp.eq.s32.totalorder %s5678_s16, 1 }
   0x7   : > { %p113_p3 = scmp.ne.s32.totalorder %s5626_s13, %s5622_s12  ;;  %p114_p4 = scmp.eq.s32.totalorder %s5026_s17, 1 }
   0x8   : > { %s5693_s21 = scalar_select %p95_p1, %s5630_s14, %s97_s19  }
   0x9   : > { %p5695_p5 = por %p108_p2, %p107_p0  ;;  %p5699_p6 = por %p114_p4, %p113_p3 }
   0xa   : > { %p5029_p7 = scmp.ge.s32.totalorder %s5634_s15, 1  ;;  %p143_p8 = scmp.lt.s32.totalorder %s5634_s15, 3 }
   0xc   : > { %p144_p9 = pnand %p5029_p7, %p143_p8 }
   0xe   : > { %147 = sbr.rel (%p144_p9) target bundleno = 855 (0x357), region = 28 }
  0x13   : > { %v1198_v0 = vld [vmem:[%s7247_s1] sm:$0xc]  ;;  %p172_p10 = scmp.lt.s32.totalorder %s5678_s16, 1  ;;  %vm218_vm0 = vcmask 24576   ;;  %vm226_vm1 = vsmask.f32 256 }
  0x14   : > { %v1248_v1 = vunpack.c.l.b16 %v1198_v0  ;;  %v237_v2 = vld [vmem:[#allocation2 + $0x30] sm:$0x1]  ;;  %vm276_vm2 = vsmask.f32 7938  ;;  %vm1300_vm3 = vcmask 1041408   ;;  %vm5714_vm4 = vmand %vm218_vm0, %vm226_vm1  ;;  %vm215_vm5 = vcmask 27648  }
  0x15   : > { %s5710_s26 = scalar_select %p172_p10, %s5678_s16, 1  ;;  %v287_v4 = vld [vmem:[#allocation2 + $0x38] sm:$0x1]  ;;  %v238_v6 = vsel %vm5714_vm4, 0, %v237_v2  ;;  %vm5722_vm6 = vmand %vm218_vm0, %vm276_vm2  ;;  %vm326_vm7 = vsmask.f32 4368 }
  0x16   : > { %v1249_v5 = vpack.c.b16 %v1248_v1, %v1248_v1  ;;  %239 = vst [vmem:[#allocation2 + $0x30] sm:$0x1] %v238_v6  ;;  %v288_v8 = vsel %vm5722_vm6, 0, %v287_v4  ;;  %v249_v9 = vld [vmem:[#allocation2 + $0x60] sm:$0x1]  ;;  %vm5747_vm8 = vmor %vm226_vm1, %vm326_vm7  ;;  %vm1251_vm12 = vcmask 31744  }
  0x17   : > { %s5423_s27 = sshll.u32 %s5710_s26, 7  ;;  %289 = vst [vmem:[#allocation2 + $0x38] sm:$0x1] %v288_v8  ;;  %v250_v11 = vsel %vm5714_vm4, 0, %v249_v9  ;;  %v299_v12 = vld [vmem:[#allocation2 + $0x68] sm:$0x1]  ;;  %vm5753_vm9 = vmand %vm215_vm5, %vm276_vm2 }
  0x18   : > { %v1250_v10 = vrot.slane %v1249_v5, 2  ;;  %s5734_s30 = scalar_lea.vmem %s7246_s0, %s5423_s27  ;;  %251 = vst [vmem:[#allocation2 + $0x60] sm:$0x1] %v250_v11  ;;  %v300_v22 = vsel %vm5722_vm6, 0, %v299_v12  ;;  %v261_v39 = vld [vmem:[#allocation2 + $0x90] sm:$0x1]  ;;  %s6856_s6 = scalar_lea.vmem %s7248_s2, %s5423_s27 }
  0x19   : > { %v189_v13 = vld [vmem:[%s5734_s30 + $0x18] sm:$0xf]  ;;  %v190_v14 = vld [vmem:[%s5734_s30 + $0x1c] sm:$0xf]  ;;  %301 = vst [vmem:[#allocation2 + $0x68] sm:$0x1] %v300_v22 }
  0x1a   : > { %v1302_v15 = vsel %vm1300_vm3, %v1250_v10, 0  ;;  %v380_v16 = vshrl.u32 %v189_v13, 16  ;;  %v383_v17 = vshll.u32 %v189_v13, 16  ;;  %v388_v18 = vshrl.u32 %v190_v14, 16  ;;  %v197_v19 = vld [vmem:[%s5734_s30 + $0x38] sm:$0xf] }
  0x1b   : > { %5473 = vmatpush.bf16.msra.mxu1 %v1302_v15  ;;  %5474 = vmatpush.bf16.msra.mxu2 %v1302_v15  ;;  %v391_v20 = vshll.u32 %v190_v14, 16  ;;  %v198_v21 = vld [vmem:[%s5734_s30 + $0x3c] sm:$0xf]  ;;  %v448_v23 = vshrl.u32 %v197_v19, 16  ;;  %v451_v24 = vshll.u32 %v197_v19, 16  ;;  %v262_v44 = vsel %vm5714_vm4, 0, %v261_v39 }
  0x1c   : > { %5475 = vmatpush.bf16.msra.mxu3 %v1302_v15  ;;  %1311 = vmatpush.bf16.msra.mxu0 %v1302_v15  ;;  %v382_v26 = vrot.slane %v380_v16, 7  ;;  %v390_v27 = vrot.slane %v388_v18, 7  ;;  %v456_v28 = vshrl.u32 %v198_v21, 16  ;;  %v459_v29 = vshll.u32 %v198_v21, 16  ;;  %v205_v32 = vld [vmem:[%s5734_s30 + $0x58] sm:$0xf] }
  0x1d   : > { %v450_v31 = vrot.slane %v448_v23, 7  ;;  %v206_v33 = vld [vmem:[%s5734_s30 + $0x5c] sm:$0xf]  ;;  %v671_v38 = vld [vmem:[#allocation2 + $0x30] sm:$0xf]  ;;  %v516_v54 = vshrl.u32 %v205_v32, 16 }
  0x1e   : > { %v385_v34 = vor.u32 %v383_v17, %v382_v26  ;;  %v386_v35 = vrot.slane %v382_v26, 4  ;;  %v393_v36 = vor.u32 %v391_v20, %v390_v27  ;;  %v395_v37 = vrot.slane %v390_v27, 4  ;;  %v675_v40 = vld [vmem:[#allocation2 + $0x38] sm:$0x1]  ;;  %263 = vst [vmem:[#allocation2 + $0x90] sm:$0x1] %v262_v44 }
  0x1f   : > { %v453_v41 = vor.u32 %v451_v24, %v450_v31  ;;  %v454_v42 = vrot.slane %v450_v31, 4  ;;  %v458_v43 = vrot.slane %v456_v28, 7  ;;  %v699_v48 = vld [vmem:[#allocation2 + $0x60] sm:$0xf]  ;;  %v311_v49 = vld [vmem:[#allocation2 + $0x98] sm:$0x1] }
  0x20   : > { %v394_v45 = vsel %vm5747_vm8, %v386_v35, %v393_v36  ;;  %v672_v46 = vsel %vm5753_vm9, %v385_v34, %v671_v38  ;;  %v676_v47 = vsel %vm5714_vm4, %v395_v37, %v675_v40  ;;  %v312_v53 = vsel %vm5722_vm6, 0, %v311_v49  ;;  %v703_v59 = vld [vmem:[#allocation2 + $0x68] sm:$0x1]  ;;  %v1776_v60 = vld [vmem:[%s7247_s1 + $0x4] sm:$0x3]  ;;  %s169_s26 = sand.u32 1, %s5626_s13  }
  0x21   : > { %673 = vst [vmem:[#allocation2 + $0x30] sm:$0xf] %v672_v46  ;;  %v461_v50 = vor.u32 %v459_v29, %v458_v43  ;;  %v463_v51 = vrot.slane %v458_v43, 4  ;;  %v700_v52 = vsel %vm5753_vm9, %v453_v41, %v699_v48  ;;  %v519_v55 = vshll.u32 %v205_v32, 16  ;;  %v2029_v1 = vld [vmem:[%s7247_s1 + $0x4] sm:$0xc] }
  0x22   : > { %674 = vst.msk [vmem:[#allocation2 + $0x34] sm:$0xf] %vm215_vm5, %v394_v45  ;;  %v524_v56 = vshrl.u32 %v206_v33, 16  ;;  %v527_v57 = vshll.u32 %v206_v33, 16  ;;  %vm811_vm10 = vsmask.f32 3328  ;;  %v2111_v10 = vunpack.c.l.b16 %v2029_v1 }
  0x23   : > { %677 = vst [vmem:[#allocation2 + $0x38] sm:$0x1] %v676_v47  ;;  %vm812_vm11 = vsmask.f32 7440  ;;  %v462_v58 = vsel %vm5747_vm8, %v454_v42, %v461_v50  ;;  %v704_v61 = vsel %vm5714_vm4, %v463_v51, %v703_v59  ;;  %v518_v62 = vrot.slane %v516_v54, 7  ;;  %s5030_s27 = sshll.u32 %s169_s26, 1 }
  0x24   : > { %701 = vst [vmem:[#allocation2 + $0x60] sm:$0xf] %v700_v52  ;;  %v5779_v63 = vrot.slane %v524_v56, 7  ;;  %v1874_v0 = vsel %vm1300_vm3, %v1776_v60, 0  ;;  %v794_v2 = vld [vmem:[%s7247_s1] sm:$0x3]  ;;  %v5803_v29 = vpack.c.b16 %v2111_v10, %v2111_v10  ;;  %vm5807_vm13 = vmor %vm811_vm10, %vm812_vm11 }
  0x25   : > { %702 = vst.msk [vmem:[#allocation2 + $0x64] sm:$0xf] %vm215_vm5, %v462_v58  ;;  %1883 = vmatpush.bf16.msrb.mxu2 %v1874_v0  ;;  %v521_v4 = vor.u32 %v519_v55, %v518_v62  ;;  %v522_v5 = vrot.slane %v518_v62, 4  ;;  %v2718_v8 = vld [vmem:[%s7247_s1 + $0x8] sm:$0x3]  ;;  %v1522_v11 = vsel %vm1300_vm3, %v794_v2, 0 }
  0x26   : > { %705 = vst [vmem:[#allocation2 + $0x68] sm:$0x1] %v704_v61  ;;  %v529_v6 = vor.u32 %v527_v57, %v5779_v63  ;;  %v727_v9 = vld [vmem:[#allocation2 + $0x90] sm:$0xf]  ;;  %v2816_v12 = vsel %vm1300_vm3, %v2718_v8, 0  ;;  %v531_v15 = vrot.slane %v5779_v63, 4  ;;  %1531 = vmatpush.bf16.msrb.mxu1 %v1522_v11 }
  0x27   : > { %313 = vst [vmem:[#allocation2 + $0x98] sm:$0x1] %v312_v53  ;;  %v728_v16 = vsel %vm5753_vm9, %v521_v4, %v727_v9  ;;  %v5636_v17 = vmov 0   ;;  %2825 = vmatpush.bf16.msrb.mxu0 %v2816_v12  ;;  %v2113_v50 = vrot.slane %v5803_v29, 2  ;;  %vm1661_vm14 = vcmask 1042432   ;;  %s5420_s7 = sshll.u32 %s5678_s16, 1 }
  0x28   : > { %v770_v13 = vld [vmem:[#allocation2 + $0x30] sm:$0xf]  ;;  %v530_v14 = vsel %vm5747_vm8, %v522_v5, %v529_v6  ;;  %216 = vst.msk [vmem:[#allocation2] sm:$0xf] %vm215_vm5, %v5636_v17  ;;  %vm1662_vm15 = vcmask 1046532   ;;  %s4937_s10 = scalar_lea.hbm %s7249_s3, %s5420_s7  ;;  %s171_s11 = scalar_lea.vmem [#allocation3], %s5030_s27 }
  0x29   : > { %v771_v18 = vld [vmem:[#allocation2 + $0x34] sm:$0xf]  ;;  %v911_v19 = vshrl.u32 %v770_v13, 16  ;;  %v914_v20 = vshll.u32 %v770_v13, 16  ;;  %729 = vst [vmem:[#allocation2 + $0x90] sm:$0xf] %v728_v16 }
  0x2a   : > { %v799_v21 = vld [vmem:[#allocation2 + $0x38] sm:$0x1]  ;;  %v920_v22 = vshll.u32 %v771_v18, 16  ;;  %v924_v23 = vshrl.u32 %v771_v18, 16  ;;  %730 = vst.msk [vmem:[#allocation2 + $0x94] sm:$0xf] %vm215_vm5, %v530_v14 }
  0x2b   : > { %v913_v24 = vrot.slane %v911_v19, 4  ;;  %v916_v26 = vrot.slane %v914_v20, 5  ;;  %v930_v27 = vshll.u32 %v799_v21, 16  ;;  %v778_v28 = vld [vmem:[#allocation2 + $0x60] sm:$0xf]  ;;  %s4939_s17 = sshll.u32 %s171_s11, 4  ;;  %s4940_s17 = int_to_ptr.vmem [resolvable:$true] %s4939_s17 }
  0x2c   : > { %v922_v31 = vrot.slane %v920_v22, 5  ;;  %v926_v32 = vrot.slane %v924_v23, 4  ;;  %v779_v33 = vld [vmem:[#allocation2 + $0x64] sm:$0xf]  ;;  %v1007_v34 = vshrl.u32 %v778_v28, 16  ;;  %v1010_v35 = vshll.u32 %v778_v28, 16 }
  0x2d   : > { %v917_v36 = vor.u32 %v916_v26, %v913_v24  ;;  %v932_v37 = vrot.slane %v930_v27, 5  ;;  %v803_v38 = vld [vmem:[#allocation2 + $0x68] sm:$0x1]  ;;  %v1016_v39 = vshll.u32 %v779_v33, 16  ;;  %v1020_v40 = vshrl.u32 %v779_v33, 16  ;;  %s4941_s19 = sshll.u32 %s4937_s10, 4  ;;  %s4942_s19 = int_to_ptr.hbm [resolvable:$true] %s4941_s19 }
  0x2e   : > { %v927_v42 = vor.u32 %v926_v32, %v922_v31  ;;  %v1009_v43 = vrot.slane %v1007_v34, 4  ;;  %v1012_v44 = vrot.slane %v1010_v35, 5  ;;  %v1026_v45 = vshll.u32 %v803_v38, 16  ;;  %v731_v46 = vld [vmem:[#allocation2 + $0x98] sm:$0x1]  ;;  %s4924_s16 = scalar_lea.sflag [#allocation4], %s169_s26 }
  0x2f   : > { %v918_v47 = vrot.slane %v917_v36, 4  ;;  %v1018_v48 = vrot.slane %v1016_v39, 5  ;;  %v1022_v49 = vrot.slane %v1020_v40, 4  ;;  %217 = vst.msk [vmem:[#allocation2 + $0x4] sm:$0xf] %vm215_vm5, %v5636_v17  ;;  %v732_v54 = vsel %vm5714_vm4, %v531_v15, %v731_v46  ;;  %s5586_s20 = sshra.s32 %s4942_s19, 4  ;;  %s5587_s20 = int_to_ptr.hbm [resolvable:$true] %s5586_s20 }
  0x30   : > { %v928_v51 = vrot.slane %v927_v42, 4  ;;  %v1013_v52 = vor.u32 %v1012_v44, %v1009_v43  ;;  %v1028_v53 = vrot.slane %v1026_v45, 5  ;;  %v786_v55 = vld [vmem:[#allocation2 + $0x90] sm:$0xf]  ;;  %219 = vst.msk [vmem:[#allocation2 + $0x8] sm:$0x1] %vm218_vm0, %v5636_v17  ;;  %p5593_p0 = scmp.lt.s32.totalorder %s5587_s20, %s7249_s3 }
  0x31   : > { %v923_v56 = vsel %vm5807_vm13, %v918_v47, %v922_v31  ;;  %v1023_v57 = vor.u32 %v1022_v49, %v1018_v48  ;;  %733 = vst [vmem:[#allocation2 + $0x98] sm:$0x1] %v732_v54  ;;  %v787_v58 = vld [vmem:[#allocation2 + $0x94] sm:$0xf]  ;;  %v1103_v59 = vshrl.u32 %v786_v55, 16  ;;  %v1106_v60 = vshll.u32 %v786_v55, 16 }
  0x32   : > { %v933_v61 = vsel %vm5807_vm13, %v928_v51, %v932_v37  ;;  %v1207_v62 = vunpack.c.l.b16 %v923_v56  ;;  %v1014_v63 = vrot.slane %v1013_v52, 4  ;;  %v1112_v0 = vshll.u32 %v787_v58, 16  ;;  %v762_v1 = vld [vmem:[#allocation2] sm:$0xf]  ;;  %221 = vst.msk [vmem:[#allocation2 + $0xcc] sm:$0xf] %vm215_vm5, %v5636_v17 }
  0x33   : > { %v1208_v2 = vunpack.c.l.b16 %v933_v61  ;;  %v1024_v4 = vrot.slane %v1023_v57, 4  ;;  %v1105_v5 = vrot.slane %v1103_v59, 4  ;;  %v1108_v6 = vrot.slane %v1106_v60, 5  ;;  %222 = vst.msk [vmem:[#allocation2 + $0xd0] sm:$0xf] %vm215_vm5, %v5636_v17  ;;  %s5588_s24 = scalar_lea.hbm %s5587_s20, 2 }
  0x34   : > { %v1019_v8 = vsel %vm5807_vm13, %v1014_v63, %v1018_v48  ;;  %v1114_v9 = vrot.slane %v1112_v0, 5  ;;  %v1116_v10 = vshrl.u32 %v787_v58, 16  ;;  %v815_v11 = vshrl.u32 %v762_v1, 16  ;;  %223 = vst.msk [vmem:[#allocation2 + $0xd4] sm:$0x1] %vm218_vm0, %v5636_v17  ;;  %vm6101_vm0 = vmor %vm1661_vm14, %vm1662_vm15  ;;  %p5589_p11 = scmp.ne.s32.totalorder %s5587_s20, %s5588_s24  ;;  %s5592_s29 = scalar_lea.hbm %s7249_s3, 4 }
  0x35   : > { %v1235_v12 = vpack.c.b16 %v1208_v2, %v1207_v62  ;;  %v1029_v13 = vsel %vm5807_vm13, %v1024_v4, %v1028_v53  ;;  %v1215_v14 = vunpack.c.l.b16 %v1019_v8  ;;  %v1109_v15 = vor.u32 %v1108_v6, %v1105_v5  ;;  %v240_v33 = vld [vmem:[#allocation2 + $0x3c] sm:$0x1]  ;;  %v191_v37 = vld [vmem:[%s5734_s30 + $0x20] sm:$0xf]  ;;  %v290_v38 = vld [vmem:[#allocation2 + $0x44] sm:$0x1]  ;;  %p5594_p1 = scmp.lt.s32.totalorder %s5592_s29, %s5588_s24 }
  0x36   : > { %v1216_v16 = vunpack.c.l.b16 %v1029_v13  ;;  %v1118_v18 = vrot.slane %v1116_v10, 4  ;;  %v763_v19 = vld [vmem:[#allocation2 + $0x4] sm:$0xf]  ;;  %v817_v20 = vrot.slane %v815_v11, 4  ;;  %v818_v21 = vshll.u32 %v762_v1, 16  ;;  %p5590_p12 = pnand %p5589_p11, %p5695_p5 }
  0x37   : > { %5039 = vmatmul.msk.bf16.vlgmr.msra.gmra.mxu1 %vm1251_vm12, %v1235_v12  ;;  %v1110_v22 = vrot.slane %v1109_v15, 4  ;;  %v795_v23 = vld [vmem:[#allocation2 + $0x8] sm:$0x1]  ;;  %v824_v24 = vshll.u32 %v763_v19, 16  ;;  %v828_v26 = vshrl.u32 %v763_v19, 16  ;;  %v2163_v17 = vsel %vm1300_vm3, %v2113_v50, 0  ;;  %p5595_p2 = por %p5594_p1, %p5593_p0 }
  0x38   : > { %v1239_v27 = vpack.c.b16 %v1216_v16, %v1215_v14  ;;  %v807_v28 = vld [vmem:[#allocation2 + $0x98] sm:$0x1]  ;;  %v1119_v29 = vor.u32 %v1118_v18, %v1114_v9  ;;  %v820_v31 = vrot.slane %v818_v21, 5  ;;  %v834_v32 = vshll.u32 %v795_v23, 16  ;;  %2172 = vmatpush.bf16.msrb.mxu3 %v2163_v17  ;;  %v192_v43 = vld [vmem:[%s5734_s30 + $0x24] sm:$0xf]  ;;  %p5591_p13 = pneg %p5590_p12 }
  0x39   : > { %v1115_v34 = vsel %vm5807_vm13, %v1110_v22, %v1114_v9  ;;  %v1122_v35 = vshll.u32 %v807_v28, 16  ;;  %v826_v36 = vrot.slane %v824_v24, 5  ;;  %v830_v42 = vrot.slane %v828_v26, 4  ;;  %v252_v44 = vld [vmem:[#allocation2 + $0x6c] sm:$0x1] }
  0x3a   : > { %5043 = vmatmul.msk.bf16.vlgmr.msra.gmra.mxu2 %vm1251_vm12, %v1239_v27  ;;  %v1120_v39 = vrot.slane %v1119_v29, 4  ;;  %v821_v40 = vor.u32 %v820_v31, %v817_v20  ;;  %v1223_v46 = vunpack.c.l.b16 %v1115_v34  ;;  %v836_v47 = vrot.slane %v834_v32, 5  ;;  %v302_v49 = vld [vmem:[#allocation2 + $0x74] sm:$0x1]  ;;  %v199_v62 = vld [vmem:[%s5734_s30 + $0x40] sm:$0xf]  ;;  %p5596_p3 = pnand %p5595_p2, %p5591_p13 }
  0x3b   : > { %v1124_v45 = vrot.slane %v1122_v35, 5  ;;  %v241_v48 = vsel %vm5714_vm4, 0, %v240_v33  ;;  %v831_v51 = vor.u32 %v830_v42, %v826_v36  ;;  %v291_v52 = vsel %vm5722_vm6, 0, %v290_v38  ;;  %v200_v63 = vld [vmem:[%s5734_s30 + $0x44] sm:$0xf] }
  0x3c   : > { %v822_v50 = vrot.slane %v821_v40, 4  ;;  %242 = vst [vmem:[#allocation2 + $0x3c] sm:$0x1] %v241_v48  ;;  %v397_v53 = vshrl.u32 %v191_v37, 16  ;;  %v400_v55 = vshll.u32 %v191_v37, 16  ;;  %v405_v56 = vshrl.u32 %v192_v43, 16 }
  0x3d   : > { %v1125_v54 = vsel %vm5807_vm13, %v1120_v39, %v1124_v45  ;;  %292 = vst [vmem:[#allocation2 + $0x44] sm:$0x1] %v291_v52  ;;  %v408_v57 = vshll.u32 %v192_v43, 16  ;;  %v832_v60 = vrot.slane %v831_v51, 4  ;;  %v253_v2 = vsel %vm5714_vm4, 0, %v252_v44 }
  0x3e   : > { %v1224_v58 = vunpack.c.l.b16 %v1125_v54  ;;  %v827_v59 = vsel %vm5807_vm13, %v822_v50, %v826_v36  ;;  %v399_v61 = vrot.slane %v397_v53, 7  ;;  %v407_v1 = vrot.slane %v405_v56, 7  ;;  %v207_v5 = vld [vmem:[%s5734_s30 + $0x60] sm:$0xf]  ;;  %v264_v6 = vld [vmem:[#allocation2 + $0x9c] sm:$0x1] }
  0x3f   : > { %v1199_v0 = vunpack.c.l.b16 %v827_v59  ;;  %v303_v4 = vsel %vm5722_vm6, 0, %v302_v49  ;;  %v837_v9 = vsel %vm5807_vm13, %v832_v60, %v836_v47  ;;  %254 = vst [vmem:[#allocation2 + $0x6c] sm:$0x1] %v253_v2  ;;  %v314_v12 = vld [vmem:[#allocation2 + $0xa4] sm:$0x1]  ;;  %v465_v16 = vshrl.u32 %v199_v62, 16 }
  0x40   : > { %v1243_v8 = vpack.c.b16 %v1224_v58, %v1223_v46  ;;  %v402_v10 = vor.u32 %v400_v55, %v399_v61  ;;  %v403_v11 = vrot.slane %v399_v61, 4  ;;  %v1200_v13 = vunpack.c.l.b16 %v837_v9  ;;  %304 = vst [vmem:[#allocation2 + $0x74] sm:$0x1] %v303_v4  ;;  %v208_v18 = vld [vmem:[%s5734_s30 + $0x64] sm:$0xf] }
  0x41   : > { %v410_v14 = vor.u32 %v408_v57, %v407_v1  ;;  %v412_v15 = vrot.slane %v407_v1, 4  ;;  %v468_v19 = vshll.u32 %v199_v62, 16  ;;  %v473_v20 = vshrl.u32 %v200_v63, 16  ;;  %v228_v23 = vld [vmem:[#allocation2 + $0xc] sm:$0x1] }
  0x42   : > { %5047 = vmatmul.msk.bf16.vlgmr.msra.gmra.mxu3 %vm1251_vm12, %v1243_v8  ;;  %v476_v21 = vshll.u32 %v200_v63, 16  ;;  %v265_v22 = vsel %vm5714_vm4, 0, %v264_v6  ;;  %v1231_v24 = vpack.c.b16 %v1200_v13, %v1199_v0  ;;  %v467_v27 = vrot.slane %v465_v16, 7  ;;  %v5868_v34 = vld [vmem:[%s5734_s30] sm:$0xf] }
  0x43   : > { %v411_v26 = vsel %vm5747_vm8, %v403_v11, %v410_v14  ;;  %v678_v17 = vld [vmem:[#allocation2 + $0x3c] sm:$0xf]  ;;  %266 = vst [vmem:[#allocation2 + $0x9c] sm:$0x1] %v265_v22  ;;  %v315_v28 = vsel %vm5722_vm6, 0, %v314_v12  ;;  %v475_v32 = vrot.slane %v473_v20, 7 }
  0x44   : > { %v679_v29 = vsel %vm5753_vm9, %v402_v10, %v678_v17  ;;  %681 = vst.msk [vmem:[#allocation2 + $0x40] sm:$0xf] %vm215_vm5, %v411_v26  ;;  %v682_v31 = vld [vmem:[#allocation2 + $0x44] sm:$0x1]  ;;  %v533_v33 = vshrl.u32 %v207_v5, 16  ;;  %5035 = vmatmul.msk.bf16.vlgmr.msra.gmra.mxu0 %vm1251_vm12, %v1231_v24  ;;  %v470_v36 = vor.u32 %v468_v19, %v467_v27  ;;  %v471_v37 = vrot.slane %v467_v27, 4 }
  0x45   : > { %680 = vst [vmem:[#allocation2 + $0x3c] sm:$0xf] %v679_v29  ;;  %v683_v35 = vsel %vm5714_vm4, %v412_v15, %v682_v31  ;;  %v536_v38 = vshll.u32 %v207_v5, 16  ;;  %v5874_v39 = vld [vmem:[%s5734_s30 + $0x4] sm:$0xf]  ;;  %v478_v42 = vor.u32 %v476_v21, %v475_v32  ;;  %v480_v43 = vrot.slane %v475_v32, 4 }
  0x46   : > { %v278_v40 = vld [vmem:[#allocation2 + $0x14] sm:$0x1]  ;;  %684 = vst [vmem:[#allocation2 + $0x44] sm:$0x1] %v683_v35  ;;  %v535_v44 = vrot.slane %v533_v33, 7  ;;  %v541_v45 = vshrl.u32 %v208_v18, 16 }
  0x47   : > { %v706_v46 = vld [vmem:[#allocation2 + $0x6c] sm:$0xf]  ;;  %316 = vst [vmem:[#allocation2 + $0xa4] sm:$0x1] %v315_v28  ;;  %v544_v47 = vshll.u32 %v208_v18, 16  ;;  %v229_v48 = vsel %vm5714_vm4, 0, %v228_v23  ;;  %v479_v49 = vsel %vm5747_vm8, %v471_v37, %v478_v42 }
  0x48   : > { %v707_v50 = vsel %vm5753_vm9, %v470_v36, %v706_v46  ;;  %v710_v51 = vld [vmem:[#allocation2 + $0x74] sm:$0x1]  ;;  %v538_v52 = vor.u32 %v536_v38, %v535_v44  ;;  %v539_v53 = vrot.slane %v535_v44, 4  ;;  %230 = vst [vmem:[#allocation2 + $0xc] sm:$0x1] %v229_v48  ;;  %v543_v55 = vrot.slane %v541_v45, 7 }
  0x49   : > { %708 = vst [vmem:[#allocation2 + $0x6c] sm:$0xf] %v707_v50  ;;  %v711_v54 = vsel %vm5714_vm4, %v480_v43, %v710_v51  ;;  %v279_v56 = vsel %vm5722_vm6, 0, %v278_v40  ;;  %v329_v57 = vshrl.u32 %v5868_v34, 16  ;;  %v332_v59 = vshll.u32 %v5868_v34, 16 }
  0x4a   : > { %709 = vst.msk [vmem:[#allocation2 + $0x70] sm:$0xf] %vm215_vm5, %v479_v49  ;;  %v734_v58 = vld [vmem:[#allocation2 + $0x9c] sm:$0xf]  ;;  %v337_v60 = vshrl.u32 %v5874_v39, 16  ;;  %v546_v62 = vor.u32 %v544_v47, %v543_v55  ;;  %v548_v63 = vrot.slane %v543_v55, 4 }
  0x4b   : > { %v773_v61 = vld [vmem:[#allocation2 + $0x40] sm:$0xf]  ;;  %712 = vst [vmem:[#allocation2 + $0x74] sm:$0x1] %v711_v54  ;;  %v735_v0 = vsel %vm5753_vm9, %v538_v52, %v734_v58  ;;  %v331_v1 = vrot.slane %v329_v57, 7  ;;  %v340_v21 = vshll.u32 %v5874_v39, 16 }
  0x4c   : > { %v5893_v2 = vld [vmem:[%s5734_s30 + $0x28] sm:$0xf]  ;;  %v772_v4 = vld [vmem:[#allocation2 + $0x3c] sm:$0xf]  ;;  %v944_v5 = vshll.u32 %v773_v61, 16  ;;  %v948_v6 = vshrl.u32 %v773_v61, 16  ;;  %v547_v11 = vsel %vm5747_vm8, %v539_v53, %v546_v62 }
  0x4d   : > { %736 = vst [vmem:[#allocation2 + $0x9c] sm:$0xf] %v735_v0  ;;  %v800_v8 = vld [vmem:[#allocation2 + $0x44] sm:$0x1]  ;;  %v935_v9 = vshrl.u32 %v772_v4, 16  ;;  %v938_v10 = vshll.u32 %v772_v4, 16  ;;  %v334_v32 = vor.u32 %v332_v59, %v331_v1 }
  0x4e   : > { %280 = vst [vmem:[#allocation2 + $0x14] sm:$0x1] %v279_v56  ;;  %v946_v12 = vrot.slane %v944_v5, 5  ;;  %v950_v13 = vrot.slane %v948_v6, 4  ;;  %v954_v14 = vshll.u32 %v800_v8, 16  ;;  %v335_v15 = vrot.slane %v331_v1, 4 }
  0x4f   : > { %737 = vst.msk [vmem:[#allocation2 + $0xa0] sm:$0xf] %vm215_vm5, %v547_v11  ;;  %v937_v16 = vrot.slane %v935_v9, 4  ;;  %v940_v18 = vrot.slane %v938_v10, 5  ;;  %v738_v19 = vld [vmem:[#allocation2 + $0xa4] sm:$0x1] }
  0x50   : > { %v5898_v20 = vrot.slane %v337_v60, 7  ;;  %v951_v22 = vor.u32 %v950_v13, %v946_v12  ;;  %v956_v23 = vrot.slane %v954_v14, 5  ;;  %v780_v24 = vld [vmem:[#allocation2 + $0x6c] sm:$0xf]  ;;  %v739_v26 = vsel %vm5714_vm4, %v548_v63, %v738_v19  ;;  %v243_v63 = vld [vmem:[#allocation2 + $0x48] sm:$0x1] }
  0x51   : > { %v414_v17 = vshrl.u32 %v5893_v2, 16  ;;  %v941_v27 = vor.u32 %v940_v18, %v937_v16  ;;  %v781_v28 = vld [vmem:[#allocation2 + $0x70] sm:$0xf]  ;;  %v1031_v29 = vshrl.u32 %v780_v24, 16  ;;  %v1034_v31 = vshll.u32 %v780_v24, 16 }
  0x52   : > { %740 = vst [vmem:[#allocation2 + $0xa4] sm:$0x1] %v739_v26  ;;  %v952_v33 = vrot.slane %v951_v22, 4  ;;  %v804_v34 = vld [vmem:[#allocation2 + $0x74] sm:$0x1]  ;;  %v1040_v35 = vshll.u32 %v781_v28, 16  ;;  %v342_v37 = vor.u32 %v340_v21, %v5898_v20 }
  0x53   : > { %v1044_v36 = vshrl.u32 %v781_v28, 16  ;;  %v942_v38 = vrot.slane %v941_v27, 4  ;;  %v1033_v39 = vrot.slane %v1031_v29, 4  ;;  %v1036_v40 = vrot.slane %v1034_v31, 5  ;;  %v650_v57 = vld [vmem:[#allocation2 + $0xc] sm:$0xf] }
  0x54   : > { %v1050_v42 = vshll.u32 %v804_v34, 16  ;;  %v788_v43 = vld [vmem:[#allocation2 + $0x9c] sm:$0xf]  ;;  %v957_v44 = vsel %vm5807_vm13, %v952_v33, %v956_v23  ;;  %v1042_v45 = vrot.slane %v1040_v35, 5  ;;  %v344_v47 = vrot.slane %v5898_v20, 4 }
  0x55   : > { %v1046_v46 = vrot.slane %v1044_v36, 4  ;;  %v947_v48 = vsel %vm5807_vm13, %v942_v38, %v946_v12  ;;  %v1210_v49 = vunpack.c.l.b16 %v957_v44  ;;  %v1037_v50 = vor.u32 %v1036_v40, %v1033_v39  ;;  %v654_v62 = vld [vmem:[#allocation2 + $0x14] sm:$0x1]  ;;  %v293_v0 = vld [vmem:[#allocation2 + $0x50] sm:$0x1] }
  0x56   : > { %v1052_v51 = vrot.slane %v1050_v42, 5  ;;  %v789_v52 = vld [vmem:[#allocation2 + $0xa0] sm:$0xf]  ;;  %v1209_v53 = vunpack.c.l.b16 %v947_v48  ;;  %v1127_v55 = vshrl.u32 %v788_v43, 16  ;;  %v1130_v56 = vshll.u32 %v788_v43, 16 }
  0x57   : > { %v1047_v54 = vor.u32 %v1046_v46, %v1042_v45  ;;  %v1038_v58 = vrot.slane %v1037_v50, 4  ;;  %v1136_v59 = vshll.u32 %v789_v52, 16  ;;  %v1140_v60 = vshrl.u32 %v789_v52, 16  ;;  %v194_v16 = vld [vmem:[%s5734_s30 + $0x2c] sm:$0xf] }
  0x58   : > { %v343_v61 = vsel %vm5747_vm8, %v335_v15, %v342_v37  ;;  %v1236_v1 = vpack.c.b16 %v1210_v49, %v1209_v53  ;;  %v1129_v6 = vrot.slane %v1127_v55, 4  ;;  %v1132_v8 = vrot.slane %v1130_v56, 5  ;;  %v255_v22 = vld [vmem:[#allocation2 + $0x78] sm:$0x1]  ;;  %v305_v23 = vld [vmem:[#allocation2 + $0x80] sm:$0x1] }
  0x59   : > { %v1048_v4 = vrot.slane %v1047_v54, 4  ;;  %v808_v5 = vld [vmem:[#allocation2 + $0xa4] sm:$0x1]  ;;  %v1043_v9 = vsel %vm5807_vm13, %v1038_v58, %v1042_v45  ;;  %v1138_v10 = vrot.slane %v1136_v59, 5  ;;  %v1142_v11 = vrot.slane %v1140_v60, 4 }
  0x5a   : > { %v1146_v12 = vshll.u32 %v808_v5, 16  ;;  %653 = vst.msk [vmem:[#allocation2 + $0x10] sm:$0xf] %vm215_vm5, %v343_v61  ;;  %5040 = vmatmul.msk.bf16.gmra.mxu1 %vm1251_vm12, %v1236_v1  ;;  %v1217_v14 = vunpack.c.l.b16 %v1043_v9  ;;  %v1133_v15 = vor.u32 %v1132_v8, %v1129_v6  ;;  %v651_v21 = vsel %vm5753_vm9, %v334_v32, %v650_v57  ;;  %v201_v29 = vld [vmem:[%s5734_s30 + $0x48] sm:$0xf] }
  0x5b   : > { %v1053_v13 = vsel %vm5807_vm13, %v1048_v4, %v1052_v51  ;;  %v1143_v19 = vor.u32 %v1142_v11, %v1138_v10  ;;  %652 = vst [vmem:[#allocation2 + $0xc] sm:$0xf] %v651_v21  ;;  %v655_v26 = vsel %vm5714_vm4, %v344_v47, %v654_v62  ;;  %v244_v27 = vsel %vm5714_vm4, 0, %v243_v63  ;;  %v267_v1 = vld [vmem:[#allocation2 + $0xa8] sm:$0x1] }
  0x5c   : > { %v1218_v18 = vunpack.c.l.b16 %v1053_v13  ;;  %v1148_v20 = vrot.slane %v1146_v12, 5  ;;  %v1134_v24 = vrot.slane %v1133_v15, 4  ;;  %v294_v28 = vsel %vm5722_vm6, 0, %v293_v0  ;;  %656 = vst [vmem:[#allocation2 + $0x14] sm:$0x1] %v655_v26 }
  0x5d   : > { %v1144_v33 = vrot.slane %v1143_v19, 4  ;;  %v416_v32 = vrot.slane %v414_v17, 7  ;;  %v417_v34 = vshll.u32 %v5893_v2, 16  ;;  %245 = vst [vmem:[#allocation2 + $0x48] sm:$0x1] %v244_v27  ;;  %v422_v36 = vshrl.u32 %v194_v16, 16 }
  0x5e   : > { %v1240_v31 = vpack.c.b16 %v1218_v18, %v1217_v14  ;;  %v1139_v35 = vsel %vm5807_vm13, %v1134_v24, %v1138_v10  ;;  %v425_v37 = vshll.u32 %v194_v16, 16  ;;  %v256_v38 = vsel %vm5714_vm4, 0, %v255_v22  ;;  %295 = vst [vmem:[#allocation2 + $0x50] sm:$0x1] %v294_v28  ;;  %v202_v17 = vld [vmem:[%s5734_s30 + $0x4c] sm:$0xf] }
  0x5f   : > { %v1149_v39 = vsel %vm5807_vm13, %v1144_v33, %v1148_v20  ;;  %v1225_v40 = vunpack.c.l.b16 %v1139_v35  ;;  %v420_v42 = vrot.slane %v416_v32, 4  ;;  %v419_v44 = vor.u32 %v417_v34, %v416_v32  ;;  %257 = vst [vmem:[#allocation2 + $0x78] sm:$0x1] %v256_v38  ;;  %v209_v10 = vld [vmem:[%s5734_s30 + $0x68] sm:$0xf] }
  0x60   : > { %5044 = vmatmul.msk.bf16.gmra.mxu2 %vm1251_vm12, %v1240_v31  ;;  %v1226_v43 = vunpack.c.l.b16 %v1149_v39  ;;  %v424_v45 = vrot.slane %v422_v36, 7  ;;  %v306_v46 = vsel %vm5722_vm6, 0, %v305_v23  ;;  %v482_v49 = vshrl.u32 %v201_v29, 16  ;;  %v210_v16 = vld [vmem:[%s5734_s30 + $0x6c] sm:$0xf] }
  0x61   : > { %v5939_v2 = vld [vmem:[#allocation2 + $0x10] sm:$0xf]  ;;  %307 = vst [vmem:[#allocation2 + $0x80] sm:$0x1] %v306_v46  ;;  %v485_v50 = vshll.u32 %v201_v29, 16  ;;  %v490_v54 = vshrl.u32 %v202_v17, 16 }
  0x62   : > { %v848_v47 = vshll.u32 %v5939_v2, 16  ;;  %v852_v48 = vshrl.u32 %v5939_v2, 16  ;;  %v1244_v51 = vpack.c.b16 %v1226_v43, %v1225_v40  ;;  %v427_v52 = vor.u32 %v425_v37, %v424_v45  ;;  %v764_v55 = vld [vmem:[#allocation2 + $0xc] sm:$0xf]  ;;  %v317_v18 = vld [vmem:[#allocation2 + $0xb0] sm:$0x1] }
  0x63   : > { %v429_v53 = vrot.slane %v424_v45, 4  ;;  %v484_v58 = vrot.slane %v482_v49, 7  ;;  %v493_v59 = vshll.u32 %v202_v17, 16  ;;  %v5946_v60 = vld [vmem:[#allocation2 + $0x14] sm:$0x1]  ;;  %v839_v61 = vshrl.u32 %v764_v55, 16 }
  0x64   : > { %v850_v56 = vrot.slane %v848_v47, 5  ;;  %v854_v57 = vrot.slane %v852_v48, 4  ;;  %5048 = vmatmul.msk.bf16.gmra.mxu3 %vm1251_vm12, %v1244_v51  ;;  %v842_v62 = vshll.u32 %v764_v55, 16  ;;  %v428_v63 = vsel %vm5747_vm8, %v420_v42, %v427_v52  ;;  %v685_v6 = vld [vmem:[#allocation2 + $0x48] sm:$0xf] }
  0x65   : > { %v492_v0 = vrot.slane %v490_v54, 7  ;;  %v858_v5 = vshll.u32 %v5946_v60, 16  ;;  %688 = vst.msk [vmem:[#allocation2 + $0x4c] sm:$0xf] %vm215_vm5, %v428_v63  ;;  %v487_v8 = vor.u32 %v485_v50, %v484_v58  ;;  %v488_v9 = vrot.slane %v484_v58, 4 }
  0x66   : > { %v855_v4 = vor.u32 %v854_v57, %v850_v56  ;;  %v841_v11 = vrot.slane %v839_v61, 4  ;;  %v844_v12 = vrot.slane %v842_v62, 5  ;;  %v686_v13 = vsel %vm5753_vm9, %v419_v44, %v685_v6  ;;  %v689_v14 = vld [vmem:[#allocation2 + $0x50] sm:$0x1]  ;;  %v713_v26 = vld [vmem:[#allocation2 + $0x78] sm:$0xf] }
  0x67   : > { %v495_v15 = vor.u32 %v493_v59, %v492_v0  ;;  %v860_v20 = vrot.slane %v858_v5, 5  ;;  %687 = vst [vmem:[#allocation2 + $0x48] sm:$0xf] %v686_v13  ;;  %v690_v21 = vsel %vm5714_vm4, %v429_v53, %v689_v14  ;;  %v497_v22 = vrot.slane %v492_v0, 4  ;;  %v5972_v39 = vld [vmem:[%s5734_s30 + $0x8] sm:$0xf] }
  0x68   : > { %v856_v19 = vrot.slane %v855_v4, 4  ;;  %v845_v23 = vor.u32 %v844_v12, %v841_v11  ;;  %691 = vst [vmem:[#allocation2 + $0x50] sm:$0x1] %v690_v21  ;;  %v717_v27 = vld [vmem:[#allocation2 + $0x80] sm:$0x1]  ;;  %v714_v29 = vsel %vm5753_vm9, %v487_v8, %v713_v26  ;;  %v268_v33 = vsel %vm5714_vm4, 0, %v267_v1 }
  0x69   : > { %v496_v24 = vsel %vm5747_vm8, %v488_v9, %v495_v15  ;;  %v718_v31 = vsel %vm5714_vm4, %v497_v22, %v717_v27  ;;  %715 = vst [vmem:[#allocation2 + $0x78] sm:$0xf] %v714_v29  ;;  %v318_v34 = vsel %vm5722_vm6, 0, %v317_v18  ;;  %v550_v35 = vshrl.u32 %v209_v10, 16  ;;  %v231_v13 = vld [vmem:[#allocation2 + $0x18] sm:$0x1] }
  0x6a   : > { %v861_v28 = vsel %vm5807_vm13, %v856_v19, %v860_v20  ;;  %716 = vst.msk [vmem:[#allocation2 + $0x7c] sm:$0xf] %vm215_vm5, %v496_v24  ;;  %v846_v32 = vrot.slane %v845_v23, 4  ;;  %v553_v37 = vshll.u32 %v209_v10, 16  ;;  %v558_v38 = vshrl.u32 %v210_v16, 16 }
  0x6b   : > { %v1202_v36 = vunpack.c.l.b16 %v861_v28  ;;  %719 = vst [vmem:[#allocation2 + $0x80] sm:$0x1] %v718_v31  ;;  %v552_v17 = vrot.slane %v550_v35, 7  ;;  %v561_v43 = vshll.u32 %v210_v16, 16  ;;  %v346_v51 = vshrl.u32 %v5972_v39, 16 }
  0x6c   : > { %v851_v40 = vsel %vm5807_vm13, %v846_v32, %v850_v56  ;;  %v775_v42 = vld [vmem:[#allocation2 + $0x4c] sm:$0xf]  ;;  %269 = vst [vmem:[#allocation2 + $0xa8] sm:$0x1] %v268_v33  ;;  %v560_v47 = vrot.slane %v558_v38, 7  ;;  %v349_v52 = vshll.u32 %v5972_v39, 16 }
  0x6d   : > { %v1201_v44 = vunpack.c.l.b16 %v851_v40  ;;  %v968_v45 = vshll.u32 %v775_v42, 16  ;;  %v972_v46 = vshrl.u32 %v775_v42, 16  ;;  %319 = vst [vmem:[#allocation2 + $0xb0] sm:$0x1] %v318_v34  ;;  %v555_v49 = vor.u32 %v553_v37, %v552_v17  ;;  %v186_v31 = vld [vmem:[%s5734_s30 + $0xc] sm:$0xf] }
  0x6e   : > { %v774_v48 = vld [vmem:[#allocation2 + $0x48] sm:$0xf]  ;;  %v556_v50 = vrot.slane %v552_v17, 4  ;;  %v563_v62 = vor.u32 %v561_v43, %v560_v47  ;;  %v565_v63 = vrot.slane %v560_v47, 4  ;;  %v5979_v24 = vrot.slane %v346_v51, 7 }
  0x6f   : > { %v1232_v53 = vpack.c.b16 %v1202_v36, %v1201_v44  ;;  %v801_v54 = vld [vmem:[#allocation2 + $0x50] sm:$0x1]  ;;  %v959_v55 = vshrl.u32 %v774_v48, 16  ;;  %v962_v56 = vshll.u32 %v774_v48, 16  ;;  %v970_v57 = vrot.slane %v968_v45, 5 }
  0x70   : > { %v974_v58 = vrot.slane %v972_v46, 4  ;;  %v978_v59 = vshll.u32 %v801_v54, 16  ;;  %v782_v4 = vld [vmem:[#allocation2 + $0x78] sm:$0xf]  ;;  %v564_v29 = vsel %vm5747_vm8, %v556_v50, %v563_v62  ;;  %v281_v33 = vld [vmem:[#allocation2 + $0x20] sm:$0x1]  ;;  %v351_v48 = vor.u32 %v349_v52, %v5979_v24 }
  0x71   : > { %v783_v61 = vld [vmem:[#allocation2 + $0x7c] sm:$0xf]  ;;  %5036 = vmatmul.msk.bf16.gmra.mxu0 %vm1251_vm12, %v1232_v53  ;;  %v961_v0 = vrot.slane %v959_v55, 4  ;;  %v964_v1 = vrot.slane %v962_v56, 5  ;;  %v1055_v11 = vshrl.u32 %v782_v4, 16  ;;  %v1058_v12 = vshll.u32 %v782_v4, 16 }
  0x72   : > { %v1064_v5 = vshll.u32 %v783_v61, 16  ;;  %v1068_v6 = vshrl.u32 %v783_v61, 16  ;;  %v975_v8 = vor.u32 %v974_v58, %v970_v57  ;;  %v980_v9 = vrot.slane %v978_v59, 5  ;;  %v805_v10 = vld [vmem:[#allocation2 + $0x80] sm:$0x1] }
  0x73   : > { %v965_v14 = vor.u32 %v964_v1, %v961_v0  ;;  %v1074_v18 = vshll.u32 %v805_v10, 16  ;;  %v741_v19 = vld [vmem:[#allocation2 + $0xa8] sm:$0xf]  ;;  %v1057_v21 = vrot.slane %v1055_v11, 4  ;;  %v1060_v22 = vrot.slane %v1058_v12, 5 }
  0x74   : > { %v1066_v15 = vrot.slane %v1064_v5, 5  ;;  %v1070_v16 = vrot.slane %v1068_v6, 4  ;;  %v976_v20 = vrot.slane %v975_v8, 4  ;;  %v745_v23 = vld [vmem:[#allocation2 + $0xb0] sm:$0x1]  ;;  %v742_v35 = vsel %vm5753_vm9, %v555_v49, %v741_v19 }
  0x75   : > { %v966_v26 = vrot.slane %v965_v14, 4  ;;  %v1076_v28 = vrot.slane %v1074_v18, 5  ;;  %v1061_v34 = vor.u32 %v1060_v22, %v1057_v21  ;;  %744 = vst.msk [vmem:[#allocation2 + $0xac] sm:$0xf] %vm215_vm5, %v564_v29  ;;  %v746_v36 = vsel %vm5714_vm4, %v565_v63, %v745_v23  ;;  %v195_v37 = vld [vmem:[%s5734_s30 + $0x30] sm:$0xf] }
  0x76   : > { %v1071_v27 = vor.u32 %v1070_v16, %v1066_v15  ;;  %v981_v32 = vsel %vm5807_vm13, %v976_v20, %v980_v9  ;;  %v246_v38 = vld [vmem:[#allocation2 + $0x54] sm:$0x1]  ;;  %743 = vst [vmem:[#allocation2 + $0xa8] sm:$0xf] %v742_v35  ;;  %v232_v17 = vsel %vm5714_vm4, 0, %v231_v13  ;;  %v282_v47 = vsel %vm5722_vm6, 0, %v281_v33 }
  0x77   : > { %v971_v39 = vsel %vm5807_vm13, %v966_v26, %v970_v57  ;;  %v1212_v40 = vunpack.c.l.b16 %v981_v32  ;;  %v196_v43 = vld [vmem:[%s5734_s30 + $0x34] sm:$0xf]  ;;  %v296_v44 = vld [vmem:[#allocation2 + $0x5c] sm:$0x1]  ;;  %v1062_v46 = vrot.slane %v1061_v34, 4  ;;  %v352_v51 = vrot.slane %v5979_v24, 4 }
  0x78   : > { %v1072_v42 = vrot.slane %v1071_v27, 4  ;;  %v1211_v45 = vunpack.c.l.b16 %v971_v39  ;;  %747 = vst [vmem:[#allocation2 + $0xb0] sm:$0x1] %v746_v36  ;;  %v6001_v49 = vld [vmem:[%s5734_s30 + $0x50] sm:$0xf]  ;;  %v354_v53 = vshrl.u32 %v186_v31, 16 }
  0x79   : > { %233 = vst [vmem:[#allocation2 + $0x18] sm:$0x1] %v232_v17  ;;  %v357_v54 = vshll.u32 %v186_v31, 16  ;;  %v1067_v56 = vsel %vm5807_vm13, %v1062_v46, %v1066_v15  ;;  %v247_v58 = vsel %vm5714_vm4, 0, %v246_v38  ;;  %v297_v61 = vsel %vm5722_vm6, 0, %v296_v44 }
  0x7a   : > { %v1077_v50 = vsel %vm5807_vm13, %v1072_v42, %v1076_v28  ;;  %v1237_v55 = vpack.c.b16 %v1212_v40, %v1211_v45  ;;  %283 = vst [vmem:[#allocation2 + $0x20] sm:$0x1] %v282_v47  ;;  %v1219_v52 = vunpack.c.l.b16 %v1067_v56  ;;  %v356_v59 = vrot.slane %v354_v53, 7  ;;  %v258_v11 = vld [vmem:[#allocation2 + $0x84] sm:$0x1] }
  0x7b   : > { %v1220_v57 = vunpack.c.l.b16 %v1077_v50  ;;  %248 = vst [vmem:[#allocation2 + $0x54] sm:$0x1] %v247_v58  ;;  %v431_v62 = vshrl.u32 %v195_v37, 16  ;;  %v434_v63 = vshll.u32 %v195_v37, 16  ;;  %v439_v0 = vshrl.u32 %v196_v43, 16 }
  0x7c   : > { %5041 = vmatmul.msk.bf16.gmra.mxu1 %vm1251_vm12, %v1237_v55  ;;  %298 = vst [vmem:[#allocation2 + $0x5c] sm:$0x1] %v297_v61  ;;  %v442_v1 = vshll.u32 %v196_v43, 16  ;;  %v499_v4 = vshrl.u32 %v6001_v49, 16  ;;  %v791_v6 = vld [vmem:[#allocation2 + $0xac] sm:$0xf]  ;;  %v359_v8 = vor.u32 %v357_v54, %v356_v59 }
  0x7d   : > { %v1241_v5 = vpack.c.b16 %v1220_v57, %v1219_v52  ;;  %v361_v9 = vrot.slane %v356_v59, 4  ;;  %v433_v10 = vrot.slane %v431_v62, 7  ;;  %v790_v12 = vld [vmem:[#allocation2 + $0xa8] sm:$0xf]  ;;  %v1160_v13 = vshll.u32 %v791_v6, 16 }
  0x7e   : > { %v1164_v14 = vshrl.u32 %v791_v6, 16  ;;  %v441_v15 = vrot.slane %v439_v0, 7  ;;  %v259_v16 = vsel %vm5714_vm4, 0, %v258_v11  ;;  %v1151_v19 = vshrl.u32 %v790_v12, 16  ;;  %v204_v34 = vld [vmem:[%s5734_s30 + $0x54] sm:$0xf] }
  0x7f   : > { %5045 = vmatmul.msk.bf16.gmra.mxu2 %vm1251_vm12, %v1241_v5  ;;  %v809_v18 = vld [vmem:[#allocation2 + $0xb0] sm:$0x1]  ;;  %v1154_v20 = vshll.u32 %v790_v12, 16  ;;  %v360_v21 = vsel %vm5747_vm8, %v352_v51, %v359_v8  ;;  %v436_v22 = vor.u32 %v434_v63, %v433_v10  ;;  %260 = vst [vmem:[#allocation2 + $0x84] sm:$0x1] %v259_v16  ;;  %v1162_v23 = vrot.slane %v1160_v13, 5 }
  0x80   : > { %v1166_v24 = vrot.slane %v1164_v14, 4  ;;  %v1170_v26 = vshll.u32 %v809_v18, 16  ;;  %v657_v27 = vld [vmem:[#allocation2 + $0x18] sm:$0xf]  ;;  %v1153_v28 = vrot.slane %v1151_v19, 4  ;;  %v444_v32 = vor.u32 %v442_v1, %v441_v15 }
  0x81   : > { %v1156_v29 = vrot.slane %v1154_v20, 5  ;;  %v658_v31 = vsel %vm5753_vm9, %v351_v48, %v657_v27  ;;  %660 = vst.msk [vmem:[#allocation2 + $0x1c] sm:$0xf] %vm215_vm5, %v360_v21  ;;  %v661_v33 = vld [vmem:[#allocation2 + $0x20] sm:$0x1]  ;;  %v437_v38 = vrot.slane %v433_v10, 4 }
  0x82   : > { %v1167_v35 = vor.u32 %v1166_v24, %v1162_v23  ;;  %v1172_v36 = vrot.slane %v1170_v26, 5  ;;  %659 = vst [vmem:[#allocation2 + $0x18] sm:$0xf] %v658_v31  ;;  %v662_v37 = vsel %vm5714_vm4, %v361_v9, %v661_v33  ;;  %v692_v39 = vld [vmem:[#allocation2 + $0x54] sm:$0xf]  ;;  %v446_v42 = vrot.slane %v441_v15, 4 }
  0x83   : > { %v1157_v40 = vor.u32 %v1156_v29, %v1153_v28  ;;  %663 = vst [vmem:[#allocation2 + $0x20] sm:$0x1] %v662_v37  ;;  %v693_v17 = vsel %vm5753_vm9, %v436_v22, %v692_v39  ;;  %v696_v43 = vld [vmem:[#allocation2 + $0x5c] sm:$0x1]  ;;  %v501_v44 = vrot.slane %v499_v4, 7  ;;  %v445_v46 = vsel %vm5747_vm8, %v437_v38, %v444_v32 }
  0x84   : > { %v1168_v45 = vrot.slane %v1167_v35, 4  ;;  %694 = vst [vmem:[#allocation2 + $0x54] sm:$0xf] %v693_v17  ;;  %v308_v47 = vld [vmem:[#allocation2 + $0x8c] sm:$0x1]  ;;  %v502_v48 = vshll.u32 %v6001_v49, 16  ;;  %v697_v51 = vsel %vm5714_vm4, %v446_v42, %v696_v43 }
  0x85   : > { %v1158_v50 = vrot.slane %v1157_v40, 4  ;;  %695 = vst.msk [vmem:[#allocation2 + $0x58] sm:$0xf] %vm215_vm5, %v445_v46  ;;  %v309_v53 = vsel %vm5722_vm6, 0, %v308_v47  ;;  %v507_v56 = vshrl.u32 %v204_v34, 16  ;;  %v510_v57 = vshll.u32 %v204_v34, 16 }
  0x86   : > { %v1173_v54 = vsel %vm5807_vm13, %v1168_v45, %v1172_v36  ;;  %698 = vst [vmem:[#allocation2 + $0x5c] sm:$0x1] %v697_v51  ;;  %v504_v55 = vor.u32 %v502_v48, %v501_v44  ;;  %v720_v58 = vld [vmem:[#allocation2 + $0x84] sm:$0xf]  ;;  %v505_v59 = vrot.slane %v501_v44, 4  ;;  %vm4850_vm1 = vcmask 1040384  }
  0x87   : > { %v1163_v49 = vsel %vm5807_vm13, %v1158_v50, %v1162_v23  ;;  %v1228_v52 = vunpack.c.l.b16 %v1173_v54  ;;  %310 = vst [vmem:[#allocation2 + $0x8c] sm:$0x1] %v309_v53  ;;  %v6040_v61 = vld [vmem:[%s5734_s30 + $0x70] sm:$0xf]  ;;  %v509_v0 = vrot.slane %v507_v56, 7  ;;  %vm4852_vm2 = vcmask 25600  }
  0x88   : > { %v1227_v62 = vunpack.c.l.b16 %v1163_v49  ;;  %v6042_v63 = vld [vmem:[#allocation2 + $0x1c] sm:$0xf]  ;;  %v721_v1 = vsel %vm5753_vm9, %v504_v55, %v720_v58  ;;  %v567_v4 = vshrl.u32 %v6040_v61, 16  ;;  %v270_v42 = vld [vmem:[#allocation2 + $0xb4] sm:$0x1] }
  0x89   : > { %v766_v5 = vld [vmem:[#allocation2 + $0x18] sm:$0xf]  ;;  %v872_v6 = vshll.u32 %v6042_v63, 16  ;;  %v876_v8 = vshrl.u32 %v6042_v63, 16  ;;  %722 = vst [vmem:[#allocation2 + $0x84] sm:$0xf] %v721_v1  ;;  %v512_v13 = vor.u32 %v510_v57, %v509_v0 }
  0x8a   : > { %v1245_v9 = vpack.c.b16 %v1228_v52, %v1227_v62  ;;  %v6049_v10 = vld [vmem:[#allocation2 + $0x20] sm:$0x1]  ;;  %v863_v11 = vshrl.u32 %v766_v5, 16  ;;  %v866_v12 = vshll.u32 %v766_v5, 16  ;;  %v514_v19 = vrot.slane %v509_v0, 4 }
  0x8b   : > { %v874_v14 = vrot.slane %v872_v6, 5  ;;  %v878_v15 = vrot.slane %v876_v8, 4  ;;  %v882_v16 = vshll.u32 %v6049_v10, 16  ;;  %v776_v18 = vld [vmem:[#allocation2 + $0x54] sm:$0xf]  ;;  %v513_v40 = vsel %vm5747_vm8, %v505_v59, %v512_v13 }
  0x8c   : > { %5049 = vmatmul.msk.bf16.gmra.mxu3 %vm1251_vm12, %v1245_v9  ;;  %v865_v20 = vrot.slane %v863_v11, 4  ;;  %v868_v21 = vrot.slane %v866_v12, 5  ;;  %v6053_v22 = vld [vmem:[#allocation2 + $0x58] sm:$0xf]  ;;  %v983_v23 = vshrl.u32 %v776_v18, 16  ;;  %v986_v24 = vshll.u32 %v776_v18, 16 }
  0x8d   : > { %v879_v26 = vor.u32 %v878_v15, %v874_v14  ;;  %v884_v27 = vrot.slane %v882_v16, 5  ;;  %v6055_v28 = vld [vmem:[#allocation2 + $0x5c] sm:$0x1]  ;;  %v992_v29 = vshll.u32 %v6053_v22, 16  ;;  %v996_v31 = vshrl.u32 %v6053_v22, 16 }
  0x8e   : > { %v869_v33 = vor.u32 %v868_v21, %v865_v20  ;;  %v985_v32 = vrot.slane %v983_v23, 4  ;;  %v988_v34 = vrot.slane %v986_v24, 5  ;;  %v1002_v35 = vshll.u32 %v6055_v28, 16  ;;  %v724_v36 = vld [vmem:[#allocation2 + $0x8c] sm:$0x1] }
  0x8f   : > { %v880_v37 = vrot.slane %v879_v26, 4  ;;  %v994_v38 = vrot.slane %v992_v29, 5  ;;  %v998_v39 = vrot.slane %v996_v31, 4  ;;  %723 = vst.msk [vmem:[#allocation2 + $0x88] sm:$0xf] %vm215_vm5, %v513_v40  ;;  %v725_v45 = vsel %vm5714_vm4, %v514_v19, %v724_v36 }
  0x90   : > { %v870_v17 = vrot.slane %v869_v33, 4  ;;  %v989_v43 = vor.u32 %v988_v34, %v985_v32  ;;  %v1004_v44 = vrot.slane %v1002_v35, 5  ;;  %v784_v46 = vld [vmem:[#allocation2 + $0x84] sm:$0xf]  ;;  %726 = vst [vmem:[#allocation2 + $0x8c] sm:$0x1] %v725_v45 }
  0x91   : > { %v885_v47 = vsel %vm5807_vm13, %v880_v37, %v884_v27  ;;  %v999_v48 = vor.u32 %v998_v39, %v994_v38  ;;  %v1079_v50 = vshrl.u32 %v784_v46, 16  ;;  %v1082_v51 = vshll.u32 %v784_v46, 16  ;;  %v320_v53 = vld [vmem:[#allocation2 + $0xbc] sm:$0x1]  ;;  %v212_v57 = vld [vmem:[%s5734_s30 + $0x74] sm:$0xf] }
  0x92   : > { %v875_v54 = vsel %vm5807_vm13, %v870_v17, %v874_v14  ;;  %v1204_v55 = vunpack.c.l.b16 %v885_v47  ;;  %v990_v56 = vrot.slane %v989_v43, 4  ;;  %v271_v58 = vsel %vm5714_vm4, 0, %v270_v42  ;;  %v234_v49 = vld [vmem:[#allocation2 + $0x24] sm:$0x1]  ;;  %v284_v9 = vld [vmem:[#allocation2 + $0x2c] sm:$0x1] }
  0x93   : > { %v1203_v52 = vunpack.c.l.b16 %v875_v54  ;;  %v1000_v59 = vrot.slane %v999_v48, 4  ;;  %v1081_v62 = vrot.slane %v1079_v50, 4  ;;  %v1084_v0 = vrot.slane %v1082_v51, 5  ;;  %272 = vst [vmem:[#allocation2 + $0xb4] sm:$0x1] %v271_v58 }
  0x94   : > { %v995_v1 = vsel %vm5807_vm13, %v990_v56, %v994_v38  ;;  %v321_v5 = vsel %vm5722_vm6, 0, %v320_v53  ;;  %v569_v6 = vrot.slane %v567_v4, 7  ;;  %v570_v8 = vshll.u32 %v6040_v61, 16  ;;  %v187_v20 = vld [vmem:[%s5734_s30 + $0x10] sm:$0xf] }
  0x95   : > { %v1233_v11 = vpack.c.b16 %v1204_v55, %v1203_v52  ;;  %v1005_v12 = vsel %vm5807_vm13, %v1000_v59, %v1004_v44  ;;  %v1213_v13 = vunpack.c.l.b16 %v995_v1  ;;  %v1085_v14 = vor.u32 %v1084_v0, %v1081_v62  ;;  %322 = vst [vmem:[#allocation2 + $0xbc] sm:$0x1] %v321_v5  ;;  %v188_v21 = vld [vmem:[%s5734_s30 + $0x14] sm:$0xf]  ;;  %v1613_v56 = vld [vmem:[#allocation2] sm:$0xe] }
  0x96   : > { %v1214_v15 = vunpack.c.l.b16 %v1005_v12  ;;  %v572_v16 = vor.u32 %v570_v8, %v569_v6  ;;  %v573_v18 = vrot.slane %v569_v6, 4  ;;  %v575_v19 = vshrl.u32 %v212_v57, 16  ;;  %v785_v23 = vld [vmem:[#allocation2 + $0x88] sm:$0xf]  ;;  %v5516_v52 = vld [vmem:[#allocation2 + $0x4] sm:$0xf] }
  0x97   : > { %5037 = vmatmul.msk.bf16.gmra.mxu0 %vm1251_vm12, %v1233_v11  ;;  %v1086_v4 = vrot.slane %v1085_v14, 4  ;;  %v578_v24 = vshll.u32 %v212_v57, 16  ;;  %v235_v61 = vsel %vm5714_vm4, 0, %v234_v49  ;;  %v285_v26 = vsel %vm5722_vm6, 0, %v284_v9  ;;  %v806_v29 = vld [vmem:[#allocation2 + $0x8c] sm:$0x1] }
  0x98   : > { %v1238_v27 = vpack.c.b16 %v1214_v15, %v1213_v13  ;;  %v1088_v31 = vshll.u32 %v785_v23, 16  ;;  %v1092_v33 = vshrl.u32 %v785_v23, 16  ;;  %v577_v32 = vrot.slane %v575_v19, 7  ;;  %236 = vst [vmem:[#allocation2 + $0x24] sm:$0x1] %v235_v61 }
  0x99   : > { %v1098_v34 = vshll.u32 %v806_v29, 16  ;;  %v363_v35 = vshrl.u32 %v187_v20, 16  ;;  %v366_v36 = vshll.u32 %v187_v20, 16  ;;  %286 = vst [vmem:[#allocation2 + $0x2c] sm:$0x1] %v285_v26  ;;  %v371_v45 = vshrl.u32 %v188_v21, 16 }
  0x9a   : > { %5042 = vmatmul.msk.bf16.gmra.mxu1 %vm1251_vm12, %v1238_v27  ;;  %v1090_v37 = vrot.slane %v1088_v31, 5  ;;  %v1094_v38 = vrot.slane %v1092_v33, 4  ;;  %v580_v39 = vor.u32 %v578_v24, %v577_v32  ;;  %v582_v40 = vrot.slane %v577_v32, 4  ;;  %v748_v42 = vld [vmem:[#allocation2 + $0xb4] sm:$0xf] }
  0x9b   : > { %v1100_v17 = vrot.slane %v1098_v34, 5  ;;  %v749_v43 = vsel %vm5753_vm9, %v572_v16, %v748_v42  ;;  %v365_v44 = vrot.slane %v363_v35, 7  ;;  %v374_v51 = vshll.u32 %v188_v21, 16  ;;  %v2286_v8 = vld [vmem:[#allocation2 + $0xc] sm:$0xf] }
  0x9c   : > { %v1091_v46 = vsel %vm5807_vm13, %v1086_v4, %v1090_v37  ;;  %v1095_v47 = vor.u32 %v1094_v38, %v1090_v37  ;;  %v581_v48 = vsel %vm5747_vm8, %v573_v18, %v580_v39  ;;  %750 = vst [vmem:[#allocation2 + $0xb4] sm:$0xf] %v749_v43  ;;  %v752_v50 = vld [vmem:[#allocation2 + $0xbc] sm:$0x1]  ;;  %v373_v58 = vrot.slane %v371_v45, 7  ;;  %v5425_v39 = vld [vmem:[#allocation2] sm:$0xff] }
  0x9d   : > { %751 = vst.msk [vmem:[#allocation2 + $0xb8] sm:$0xf] %vm215_vm5, %v581_v48  ;;  %v753_v53 = vsel %vm5714_vm4, %v582_v40, %v752_v50  ;;  %v368_v54 = vor.u32 %v366_v36, %v365_v44  ;;  %v369_v55 = vrot.slane %v365_v44, 4  ;;  %v1221_v49 = vunpack.c.l.b16 %v1091_v46  ;;  %v5517_v9 = vld [vmem:[#allocation2 + $0x8] sm:$0x1] }
  0x9e   : > { %v1096_v57 = vrot.slane %v1095_v47, 4  ;;  %754 = vst [vmem:[#allocation2 + $0xbc] sm:$0x1] %v753_v53  ;;  %v1666_v59 = vrot.slane %v5516_v52, 5  ;;  %v376_v0 = vor.u32 %v374_v51, %v373_v58  ;;  %v378_v1 = vrot.slane %v373_v58, 4 }
  0x9f   : > { %v664_v5 = vld [vmem:[#allocation2 + $0x24] sm:$0xf]  ;;  %v5131_v6 = vrot.slane %v1613_v56, 9  ;;  %v1669_v11 = vrot.slane %v5517_v9, 5  ;;  %v3373_v19 = vld [vmem:[%s7247_s1 + $0xc] sm:$0x3] }
  0xa0   : > { %v1101_v62 = vsel %vm5807_vm13, %v1096_v57, %v1100_v17  ;;  %v665_v13 = vsel %vm5753_vm9, %v368_v54, %v664_v5  ;;  %v1668_v15 = vrot.slane %v1666_v59, 4  ;;  %v377_v16 = vsel %vm5747_vm8, %v369_v55, %v376_v0  ;;  %v668_v18 = vld [vmem:[#allocation2 + $0x2c] sm:$0x1]  ;;  %v2287_v17 = vld [vmem:[#allocation2 + $0x10] sm:$0xf] }
  0xa1   : > { %v1222_v12 = vunpack.c.l.b16 %v1101_v62  ;;  %666 = vst [vmem:[#allocation2 + $0x24] sm:$0xf] %v665_v13  ;;  %v669_v23 = vsel %vm5714_vm4, %v378_v1, %v668_v18  ;;  %v3503_v4 = vsel %vm1300_vm3, %v3373_v19, 0  ;;  %v2335_v24 = vshrl.u32 %v2286_v8, 16  ;;  %v4058_v18 = vld [vmem:[%s7247_s1 + $0xc] sm:$0xc] }
  0xa2   : > { %667 = vst.msk [vmem:[#allocation2 + $0x28] sm:$0xf] %vm215_vm5, %v377_v16  ;;  %v1667_v29 = vsel %vm6101_vm0, %v5131_v6, %v1666_v59  ;;  %3512 = vmatpush.bf16.msra.mxu2 %v3503_v4  ;;  %v1670_v34 = vsel %vm6101_vm0, %v1668_v15, %v1669_v11  ;;  %v2338_v35 = vshll.u32 %v2286_v8, 16  ;;  %v2344_v57 = vshll.u32 %v2287_v17, 16  ;;  %v2288_v16 = vld [vmem:[#allocation2 + $0x14] sm:$0x1] }
  0xa3   : > { %v1242_v20 = vpack.c.b16 %v1222_v12, %v1221_v49  ;;  %v792_v21 = vld [vmem:[#allocation2 + $0xb4] sm:$0xf]  ;;  %670 = vst [vmem:[#allocation2 + $0x2c] sm:$0x1] %v669_v23  ;;  %v1777_v44 = vunpack.c.l.b16 %v1667_v29  ;;  %v1778_v45 = vunpack.c.l.b16 %v1670_v34  ;;  %v2337_v50 = vrot.slane %v2335_v24, 4 }
  0xa4   : > { %v793_v61 = vld [vmem:[#allocation2 + $0xb8] sm:$0xf]  ;;  %v1175_v26 = vshrl.u32 %v792_v21, 16  ;;  %v1178_v27 = vshll.u32 %v792_v21, 16  ;;  %v2340_v51 = vrot.slane %v2338_v35, 5  ;;  %v2348_v62 = vshrl.u32 %v2287_v17, 16 }
  0xa5   : > { %5046 = vmatmul.msk.bf16.gmra.mxu2 %vm1251_vm12, %v1242_v20  ;;  %v810_v31 = vld [vmem:[#allocation2 + $0xbc] sm:$0x1]  ;;  %v1184_v33 = vshll.u32 %v793_v61, 16  ;;  %v1188_v32 = vshrl.u32 %v793_v61, 16  ;;  %v3115_v19 = vld [vmem:[%s7247_s1 + $0x8] sm:$0xc] }
  0xa6   : > { %v1177_v36 = vrot.slane %v1175_v26, 4  ;;  %v1180_v37 = vrot.slane %v1178_v27, 5  ;;  %v1194_v38 = vshll.u32 %v810_v31, 16  ;;  %v2346_v23 = vrot.slane %v2344_v57, 5  ;;  %v4459_v24 = vld [vmem:[%s7247_s1 + $0x10] sm:$0x3] }
  0xa7   : > { %v1186_v40 = vrot.slane %v1184_v33, 5  ;;  %v1190_v42 = vrot.slane %v1188_v32, 4  ;;  %v2350_v4 = vrot.slane %v2348_v62, 4  ;;  %v1809_v27 = vpack.c.b16 %v1778_v45, %v1777_v44  ;;  %v1614_v34 = vld [vmem:[#allocation2 + $0xc] sm:$0xe] }
  0xa8   : > { %v1181_v43 = vor.u32 %v1180_v37, %v1177_v36  ;;  %v1196_v47 = vrot.slane %v1194_v38, 5  ;;  %v768_v48 = vld [vmem:[#allocation2 + $0x24] sm:$0xf]  ;;  %v2341_v31 = vor.u32 %v2340_v51, %v2337_v50  ;;  %v4108_v33 = vunpack.c.l.b16 %v4058_v18  ;;  %v5426_v50 = vld [vmem:[#allocation2 + $0xc] sm:$0xff]  ;;  %v2289_v62 = vld [vmem:[#allocation2 + $0x18] sm:$0xf] }
  0xa9   : > { %v1191_v46 = vor.u32 %v1190_v42, %v1186_v40  ;;  %v6119_v54 = vld [vmem:[#allocation2 + $0x28] sm:$0xf]  ;;  %v887_v55 = vshrl.u32 %v768_v48, 16  ;;  %v890_v56 = vshll.u32 %v768_v48, 16  ;;  %v3165_v32 = vunpack.c.l.b16 %v3115_v19 }
  0xaa   : > { %v1182_v53 = vrot.slane %v1181_v43, 4  ;;  %5115 = vmatmul.msk.bf16.vlgmr.msrb.gmra.mxu1 %vm1251_vm12, %v5425_v39  ;;  %v6122_v49 = vld [vmem:[#allocation2 + $0x2c] sm:$0x1]  ;;  %v896_v52 = vshll.u32 %v6119_v54, 16  ;;  %v900_v59 = vshrl.u32 %v6119_v54, 16  ;;  %v2354_v36 = vshll.u32 %v2288_v16, 16 }
  0xab   : > { %v1192_v58 = vrot.slane %v1191_v46, 4  ;;  %v889_v1 = vrot.slane %v887_v55, 4  ;;  %v892_v5 = vrot.slane %v890_v56, 5  ;;  %v906_v6 = vshll.u32 %v6122_v49, 16 }
  0xac   : > { %v1187_v0 = vsel %vm5807_vm13, %v1182_v53, %v1186_v40  ;;  %v898_v11 = vrot.slane %v896_v52, 5  ;;  %v902_v12 = vrot.slane %v900_v59, 4  ;;  %v4557_v37 = vsel %vm1300_vm3, %v4459_v24, 0  ;;  %v1615_v59 = vld [vmem:[#allocation2 + $0x18] sm:$0xe] }
  0xad   : > { %v1197_v8 = vsel %vm5807_vm13, %v1192_v58, %v1196_v47  ;;  %v1229_v9 = vunpack.c.l.b16 %v1187_v0  ;;  %v893_v15 = vor.u32 %v892_v5, %v889_v1  ;;  %v908_v21 = vrot.slane %v906_v6, 5  ;;  %4566 = vmatpush.bf16.msra.mxu0 %v4557_v37  ;;  %v2290_v0 = vld [vmem:[#allocation2 + $0x1c] sm:$0xf] }
  0xae   : > { %v1230_v13 = vunpack.c.l.b16 %v1197_v8  ;;  %v903_v20 = vor.u32 %v902_v12, %v898_v11  ;;  %v1673_v38 = vrot.slane %v5939_v2, 5  ;;  %v2351_v42 = vor.u32 %v2350_v4, %v2346_v23 }
  0xaf   : > { %v894_v26 = vrot.slane %v893_v15, 4  ;;  %v4109_v17 = vpack.c.b16 %v4108_v33, %v4108_v33  ;;  %v3166_v44 = vpack.c.b16 %v3165_v32, %v3165_v32  ;;  %v5132_v45 = vrot.slane %v1614_v34, 9  ;;  %v2291_v32 = vld [vmem:[#allocation2 + $0x20] sm:$0x1] }
  0xb0   : > { %v1246_v61 = vpack.c.b16 %v1230_v13, %v1229_v9  ;;  %v904_v29 = vrot.slane %v903_v20, 4  ;;  %v1675_v51 = vrot.slane %v1673_v38, 4  ;;  %v1676_v53 = vrot.slane %v5946_v60, 5 }
  0xb1   : > { %v899_v35 = vsel %vm5807_vm13, %v894_v26, %v898_v11  ;;  %v4110_v46 = vrot.slane %v4109_v17, 2  ;;  %v3167_v48 = vrot.slane %v3166_v44, 2  ;;  %v2342_v2 = vrot.slane %v2341_v31, 4  ;;  %v2292_v17 = vld [vmem:[#allocation2 + $0x24] sm:$0xf] }
  0xb2   : > { %5050 = vmatmul.msk.bf16.gmra.mxu3 %vm1251_vm12, %v1246_v61  ;;  %v909_v39 = vsel %vm5807_vm13, %v904_v29, %v908_v21  ;;  %v1205_v40 = vunpack.c.l.b16 %v899_v35  ;;  %v2352_v55 = vrot.slane %v2351_v42, 4  ;;  %v2356_v56 = vrot.slane %v2354_v36, 5 }
  0xb3   : > { %v1206_v43 = vunpack.c.l.b16 %v909_v39  ;;  %v4160_v57 = vsel %vm1300_vm3, %v4110_v46, 0  ;;  %v3217_v58 = vsel %vm1300_vm3, %v3167_v48, 0  ;;  %v1674_v52 = vsel %vm6101_vm0, %v5132_v45, %v1673_v38  ;;  %v5427_v38 = vld [vmem:[#allocation2 + $0x18] sm:$0xff] }
  0xb4   : > { %4169 = vmatpush.bf16.msra.mxu3 %v4160_v57  ;;  %3226 = vmatpush.bf16.msra.mxu1 %v3217_v58  ;;  %v1677_v60 = vsel %vm6101_vm0, %v1675_v51, %v1676_v53  ;;  %v5133_v1 = vrot.slane %v1615_v59, 9  ;;  %v1680_v5 = vrot.slane %v6042_v63, 5  ;;  %v2347_v6 = vsel %vm5807_vm13, %v2342_v2, %v2346_v23  ;;  %v5441_v63 = vld [vmem:[#allocation2 + $0xc] sm:$0xff]  ;;  %v5442_v51 = vld [vmem:[#allocation2 + $0x18] sm:$0xff] }
  0xb5   : > { %5147 = vmatmul.msk.bf16.vlgmr.msrb.gmra.mxu2 %vm1251_vm12, %v1809_v27  ;;  %v1234_v47 = vpack.c.b16 %v1206_v43, %v1205_v40  ;;  %v2357_v8 = vsel %vm5807_vm13, %v2352_v55, %v2356_v56  ;;  %v1779_v9 = vunpack.c.l.b16 %v1674_v52  ;;  %v1683_v11 = vrot.slane %v6049_v10, 5  ;;  %v2293_v43 = vld [vmem:[#allocation2 + $0x28] sm:$0xf]  ;;  %v2294_v52 = vld [vmem:[#allocation2 + $0x2c] sm:$0x1] }
  0xb6   : > { %v2359_v12 = vshrl.u32 %v2289_v62, 16  ;;  %v2362_v13 = vshll.u32 %v2289_v62, 16  ;;  %v1681_v15 = vsel %vm6101_vm0, %v5133_v1, %v1680_v5  ;;  %v1682_v16 = vrot.slane %v1680_v5, 4  ;;  %v1616_v62 = vld [vmem:[#allocation2 + $0x24] sm:$0xe] }
  0xb7   : > { %5038 = vmatmul.msk.bf16.gmra.mxu0 %vm1251_vm12, %v1234_v47  ;;  %v1780_v18 = vunpack.c.l.b16 %v1677_v60  ;;  %v2368_v19 = vshll.u32 %v2290_v0, 16  ;;  %v2372_v20 = vshrl.u32 %v2290_v0, 16  ;;  %v1781_v21 = vunpack.c.l.b16 %v1681_v15 }
  0xb8   : > { %v1684_v23 = vsel %vm6101_vm0, %v1682_v16, %v1683_v11  ;;  %v2719_v24 = vunpack.c.l.b16 %v2347_v6  ;;  %v2720_v61 = vunpack.c.l.b16 %v2357_v8  ;;  %v2361_v26 = vrot.slane %v2359_v12, 4  ;;  %v5428_v6 = vld [vmem:[#allocation2 + $0x24] sm:$0xff]  ;;  %v2295_v12 = vld [vmem:[#allocation2 + $0x30] sm:$0xf] }
  0xb9   : > { %v1782_v4 = vunpack.c.l.b16 %v1684_v23  ;;  %v2364_v27 = vrot.slane %v2362_v13, 5  ;;  %v1810_v10 = vpack.c.b16 %v1780_v18, %v1779_v9  ;;  %v2370_v29 = vrot.slane %v2368_v19, 5  ;;  %v2296_v13 = vld [vmem:[#allocation2 + $0x34] sm:$0xf] }
  0xba   : > { %5116 = vmatmul.msk.bf16.gmra.mxu1 %vm1251_vm12, %v5426_v50  ;;  %v2374_v31 = vrot.slane %v2372_v20, 4  ;;  %v2751_v34 = vpack.c.b16 %v2720_v61, %v2719_v24  ;;  %v2378_v37 = vshll.u32 %v2291_v32, 16  ;;  %v2383_v44 = vshrl.u32 %v2292_v17, 16 }
  0xbb   : > { %v1811_v33 = vpack.c.b16 %v1782_v4, %v1781_v21  ;;  %v2365_v35 = vor.u32 %v2364_v27, %v2361_v26  ;;  %v2386_v45 = vshll.u32 %v2292_v17, 16  ;;  %v2392_v48 = vshll.u32 %v2293_v43, 16  ;;  %v5443_v26 = vld [vmem:[#allocation2 + $0x24] sm:$0xff]  ;;  %v1617_v17 = vld [vmem:[#allocation2 + $0x30] sm:$0xe] }
  0xbc   : > { %v2375_v36 = vor.u32 %v2374_v31, %v2370_v29  ;;  %v2380_v42 = vrot.slane %v2378_v37, 5  ;;  %v2396_v50 = vshrl.u32 %v2293_v43, 16  ;;  %v2385_v55 = vrot.slane %v2383_v44, 4  ;;  %v5518_v37 = vld [vmem:[#allocation2 + $0x34] sm:$0xf] }
  0xbd   : > { %v2366_v39 = vrot.slane %v2365_v35, 4  ;;  %v2388_v56 = vrot.slane %v2386_v45, 5  ;;  %v2394_v57 = vrot.slane %v2392_v48, 5  ;;  %v1687_v59 = vrot.slane %v6119_v54, 5  ;;  %v2297_v35 = vld [vmem:[#allocation2 + $0x38] sm:$0x1] }
  0xbe   : > { %v2376_v40 = vrot.slane %v2375_v36, 4  ;;  %v2398_v58 = vrot.slane %v2396_v50, 4  ;;  %v2402_v5 = vshll.u32 %v2294_v52, 16  ;;  %v5134_v8 = vrot.slane %v1616_v62, 9  ;;  %v5429_v44 = vld [vmem:[#allocation2 + $0x30] sm:$0xff] }
  0xbf   : > { %v2371_v46 = vsel %vm5807_vm13, %v2366_v39, %v2370_v29  ;;  %v2389_v0 = vor.u32 %v2388_v56, %v2385_v55  ;;  %v1689_v9 = vrot.slane %v1687_v59, 4  ;;  %v1690_v11 = vrot.slane %v6122_v49, 5  ;;  %v2299_v55 = vld [vmem:[#allocation2 + $0x40] sm:$0xf] }
  0xc0   : > { %v2381_v47 = vsel %vm5807_vm13, %v2376_v40, %v2380_v42  ;;  %v2721_v53 = vunpack.c.l.b16 %v2371_v46  ;;  %v2399_v1 = vor.u32 %v2398_v58, %v2394_v57  ;;  %v2404_v18 = vrot.slane %v2402_v5, 5  ;;  %v6205_v5 = vpop.f32.mrf.mxu2 }
  0xc1   : > { %v2722_v2 = vunpack.c.l.b16 %v2381_v47  ;;  %v2390_v15 = vrot.slane %v2389_v0, 4  ;;  %v1688_v54 = vsel %vm6101_vm0, %v5134_v8, %v1687_v59  ;;  %v1691_v19 = vsel %vm6101_vm0, %v1689_v9, %v1690_v11  ;;  %v5519_v47 = vld [vmem:[#allocation2 + $0x38] sm:$0x1]  ;;  %v5444_v9 = vld [vmem:[#allocation2 + $0x30] sm:$0xff] }
  0xc2   : > { %5227 = vmatmul.msk.bf16.vlgmr.msrb.gmra.mxu3 %vm1251_vm12, %v5441_v63  ;;  %v2400_v16 = vrot.slane %v2399_v1, 4  ;;  %v2407_v20 = vshrl.u32 %v2295_v12, 16  ;;  %v2410_v21 = vshll.u32 %v2295_v12, 16  ;;  %v2416_v63 = vshll.u32 %v2296_v13, 16 }
  0xc3   : > { %v2752_v60 = vpack.c.b16 %v2722_v2, %v2721_v53  ;;  %v2420_v23 = vshrl.u32 %v2296_v13, 16  ;;  %v2395_v49 = vsel %vm5807_vm13, %v2390_v15, %v2394_v57  ;;  %v1783_v24 = vunpack.c.l.b16 %v1688_v54  ;;  %v2298_v2 = vld [vmem:[#allocation2 + $0x3c] sm:$0xf] }
  0xc4   : > { %v2405_v4 = vsel %vm5807_vm13, %v2400_v16, %v2404_v18  ;;  %v1784_v61 = vunpack.c.l.b16 %v1691_v19  ;;  %v2409_v27 = vrot.slane %v2407_v20, 4  ;;  %v2418_v29 = vrot.slane %v2416_v63, 5  ;;  %v2300_v19 = vld [vmem:[#allocation2 + $0x44] sm:$0x1] }
  0xc5   : > { %5148 = vmatmul.msk.bf16.gmra.mxu2 %vm1251_vm12, %v1810_v10  ;;  %v2412_v10 = vrot.slane %v2410_v21, 5  ;;  %v2422_v31 = vrot.slane %v2420_v23, 4  ;;  %v2723_v32 = vunpack.c.l.b16 %v2395_v49  ;;  %v2426_v42 = vshll.u32 %v2297_v35, 16  ;;  %v5520_v21 = vld [vmem:[#allocation2 + $0x40] sm:$0xf] }
  0xc6   : > { %v1812_v36 = vpack.c.b16 %v1784_v61, %v1783_v24  ;;  %v5135_v45 = vrot.slane %v1617_v17, 9  ;;  %v1697_v48 = vrot.slane %v5519_v47, 5  ;;  %v2431_v62 = vshrl.u32 %v2298_v2, 16  ;;  %v1618_v23 = vld [vmem:[#allocation2 + $0x3c] sm:$0xe] }
  0xc7   : > { %5243 = vmatmul.msk.bf16.vlgmr.msrb.gmra.mxu0 %vm1251_vm12, %v2751_v34  ;;  %v2724_v34 = vunpack.c.l.b16 %v2405_v4  ;;  %v2413_v39 = vor.u32 %v2412_v10, %v2409_v27  ;;  %v2423_v40 = vor.u32 %v2422_v31, %v2418_v29  ;;  %v2428_v53 = vrot.slane %v2426_v42, 5  ;;  %v5430_v27 = vld [vmem:[#allocation2 + $0x3c] sm:$0xff]  ;;  %v5521_v31 = vld [vmem:[#allocation2 + $0x44] sm:$0x1] }
  0xc8   : > { %v2440_v0 = vshll.u32 %v2299_v55, 16  ;;  %v2444_v1 = vshrl.u32 %v2299_v55, 16  ;;  %v2433_v13 = vrot.slane %v2431_v62, 4  ;;  %v1701_v63 = vrot.slane %v5520_v21, 5 }
  0xc9   : > { %v2753_v43 = vpack.c.b16 %v2724_v34, %v2723_v32  ;;  %v2414_v50 = vrot.slane %v2413_v39, 4  ;;  %v2450_v61 = vshll.u32 %v2300_v19, 16  ;;  %v5136_v10 = vrot.slane %v1618_v23, 9  ;;  %v6214_v34 = vpop.f32.mrf.mxu0  ;;  %v2301_v39 = vld [vmem:[#allocation2 + $0x48] sm:$0xf] }
  0xca   : > { %5117 = vmatmul.msk.bf16.gmra.mxu1 %vm1251_vm12, %v5427_v38  ;;  %v1694_v38 = vrot.slane %v5518_v37, 5  ;;  %v2442_v16 = vrot.slane %v2440_v0, 5  ;;  %v2446_v18 = vrot.slane %v2444_v1, 4  ;;  %v1704_v32 = vrot.slane %v5521_v31, 5  ;;  %v5431_v19 = vld [vmem:[#allocation2 + $0x48] sm:$0xff] }
  0xcb   : > { %v2419_v52 = vsel %vm5807_vm13, %v2414_v50, %v2418_v29  ;;  %v1703_v29 = vrot.slane %v1701_v63, 4  ;;  %v2452_v37 = vrot.slane %v2450_v61, 5  ;;  %v1702_v42 = vsel %vm6101_vm0, %v5136_v10, %v1701_v63  ;;  %v5523_v23 = vld [vmem:[#allocation2 + $0x50] sm:$0x1] }
  0xcc   : > { %v1696_v46 = vrot.slane %v1694_v38, 4  ;;  %v1695_v57 = vsel %vm6101_vm0, %v5135_v45, %v1694_v38  ;;  %v2725_v11 = vunpack.c.l.b16 %v2419_v52  ;;  %v2447_v24 = vor.u32 %v2446_v18, %v2442_v16  ;;  %v6216_v38 = vpop.f32.mrf.mxu3 }
  0xcd   : > { %v1705_v17 = vsel %vm6101_vm0, %v1703_v29, %v1704_v32  ;;  %v2458_v47 = vshll.u32 %v2301_v39, 16 }
  0xce   : > { %v1698_v58 = vsel %vm6101_vm0, %v1696_v46, %v1697_v48  ;;  %v2455_v46 = vshrl.u32 %v2301_v39, 16  ;;  %v1787_v48 = vunpack.c.l.b16 %v1702_v42  ;;  %v1788_v50 = vunpack.c.l.b16 %v1705_v17 }
  0xcf   : > { %v1786_v8 = vunpack.c.l.b16 %v1698_v58  ;;  %v2460_v62 = vrot.slane %v2458_v47, 5 }
  0xd0   : > { %v2457_v58 = vrot.slane %v2455_v46, 4 }
  0xd1   : > { %v6232_v1 = vpop.f32.mrf.mxu0 }
  0xd2   : > { %5228 = vmatmul.msk.bf16.gmra.mxu3 %vm1251_vm12, %v5442_v51  ;;  %v2424_v51 = vrot.slane %v2423_v40, 4 }
  0xd4   : > { %v2429_v59 = vsel %vm5807_vm13, %v2424_v51, %v2428_v53 }
  0xd5   : > { %5149 = vmatmul.msk.bf16.gmra.mxu2 %vm1251_vm12, %v1811_v33  ;;  %v6189_v33 = vpop.f32.mrf.mxu1  ;;  %v2726_v12 = vunpack.c.l.b16 %v2429_v59  ;;  %v1814_v59 = vpack.c.b16 %v1788_v50, %v1787_v48  ;;  %v5446_v48 = vld [vmem:[#allocation2 + $0x48] sm:$0xff] }
  0xd7   : > { %5244 = vmatmul.msk.bf16.gmra.mxu0 %vm1251_vm12, %v2752_v60  ;;  %v2434_v60 = vshll.u32 %v2298_v2, 16  ;;  %v2754_v49 = vpack.c.b16 %v2726_v12, %v2725_v11  ;;  %v5445_v2 = vld [vmem:[#allocation2 + $0x3c] sm:$0xff]  ;;  %v6234_v11 = vpop.f32.mrf.mxu3 }
  0xd9   : > { %v2436_v15 = vrot.slane %v2434_v60, 5 }
  0xda   : > { %5118 = vmatmul.msk.bf16.gmra.mxu1 %vm1251_vm12, %v5428_v6  ;;  %v1785_v6 = vunpack.c.l.b16 %v1695_v57 }
  0xdb   : > { %v2437_v4 = vor.u32 %v2436_v15, %v2433_v13  ;;  %v1619_v13 = vld [vmem:[#allocation2 + $0x48] sm:$0xe] }
  0xdc   : > { %v1813_v54 = vpack.c.b16 %v1786_v8, %v1785_v6  ;;  %v2303_v6 = vld [vmem:[#allocation2 + $0x50] sm:$0x1]  ;;  %v5522_v8 = vld [vmem:[#allocation2 + $0x4c] sm:$0xf]  ;;  %v5137_v21 = vrot.slane %v1619_v13, 9 }
  0xdd   : > { %v6194_v56 = vpop.f32.mrf.mxu1  ;;  %v2438_v35 = vrot.slane %v2437_v4, 4  ;;  %v2304_v4 = vld [vmem:[#allocation2 + $0x54] sm:$0xf] }
  0xe2   : > { %5229 = vmatmul.msk.bf16.gmra.mxu3 %vm1251_vm12, %v5443_v26  ;;  %v6211_v26 = vpop.f32.mrf.mxu2 }
  0xe5   : > { %5150 = vmatmul.msk.bf16.gmra.mxu2 %vm1251_vm12, %v1812_v36  ;;  %v6207_v20 = vpop.f32.mrf.mxu1  ;;  %v2448_v36 = vrot.slane %v2447_v24, 4  ;;  %v2305_v24 = vld [vmem:[#allocation2 + $0x58] sm:$0xf] }
  0xe6   : > { %v2492_v39 = vshrl.u32 %v2305_v24, 16 }
  0xe7   : > { %5245 = vmatmul.msk.bf16.gmra.mxu0 %vm1251_vm12, %v2753_v43  ;;  %v2302_v43 = vld [vmem:[#allocation2 + $0x4c] sm:$0xf]  ;;  %v2453_v45 = vsel %vm5807_vm13, %v2448_v36, %v2452_v37  ;;  %v2482_v36 = vshll.u32 %v2304_v4, 16  ;;  %v2488_v37 = vshll.u32 %v2305_v24, 16  ;;  %v2308_v24 = vld [vmem:[#allocation2 + $0x64] sm:$0xf] }
  0xe8   : > { %v2464_v51 = vshll.u32 %v2302_v43, 16  ;;  %v2468_v53 = vshrl.u32 %v2302_v43, 16  ;;  %v2728_v57 = vunpack.c.l.b16 %v2453_v45 }
  0xea   : > { %5119 = vmatmul.msk.bf16.gmra.mxu1 %vm1251_vm12, %v5429_v44  ;;  %v2443_v44 = vsel %vm5807_vm13, %v2438_v35, %v2442_v16  ;;  %v6229_v52 = vpop.f32.mrf.mxu2  ;;  %v2466_v60 = vrot.slane %v2464_v51, 5  ;;  %v2470_v0 = vrot.slane %v2468_v53, 4  ;;  %v2461_v16 = vor.u32 %v2460_v62, %v2457_v58  ;;  %v2306_v58 = vld [vmem:[#allocation2 + $0x5c] sm:$0x1] }
  0xeb   : > { %v2727_v55 = vunpack.c.l.b16 %v2443_v44  ;;  %v2479_v35 = vshrl.u32 %v2304_v4, 16  ;;  %v6253_v44 = vpop.f32.mrf.mxu3  ;;  %v2484_v51 = vrot.slane %v2482_v36, 5  ;;  %v2490_v53 = vrot.slane %v2488_v37, 5  ;;  %v2307_v4 = vld [vmem:[#allocation2 + $0x60] sm:$0xf] }
  0xec   : > { %v2471_v18 = vor.u32 %v2470_v0, %v2466_v60  ;;  %v2462_v61 = vrot.slane %v2461_v16, 4  ;;  %v1715_v62 = vrot.slane %v6053_v22, 5  ;;  %v5432_v16 = vld [vmem:[#allocation2 + $0x54] sm:$0xff]  ;;  %v2516_v36 = vshrl.u32 %v2308_v24, 16 }
  0xed   : > { %v6218_v40 = vpop.f32.mrf.mxu1  ;;  %v2755_v15 = vpack.c.b16 %v2728_v57, %v2727_v55  ;;  %v2481_v50 = vrot.slane %v2479_v35, 4  ;;  %v2512_v35 = vshll.u32 %v2308_v24, 16 }
  0xee   : > { %v6247_v42 = vpop.f32.mrf.mxu0  ;;  %v2467_v17 = vsel %vm5807_vm13, %v2462_v61, %v2466_v60 }
  0xef   : > { %v2729_v55 = vunpack.c.l.b16 %v2467_v17  ;;  %v2485_v60 = vor.u32 %v2484_v51, %v2481_v50  ;;  %v5447_v17 = vld [vmem:[#allocation2 + $0x54] sm:$0xff] }
  0xf2   : > { %5230 = vmatmul.msk.bf16.gmra.mxu3 %vm1251_vm12, %v5444_v9  ;;  %v1708_v9 = vrot.slane %v5522_v8, 5  ;;  %v6240_v29 = vpop.f32.mrf.mxu2  ;;  %v1620_v8 = vld [vmem:[#allocation2 + $0x54] sm:$0xe] }
  0xf4   : > { %v1710_v63 = vrot.slane %v1708_v9, 4  ;;  %v1709_v31 = vsel %vm6101_vm0, %v5137_v21, %v1708_v9  ;;  %v6265_v21 = vpop.f32.mrf.mxu3 }
  0xf5   : > { %5151 = vmatmul.msk.bf16.gmra.mxu2 %vm1251_vm12, %v1813_v54  ;;  %v2474_v54 = vshll.u32 %v2303_v6, 16  ;;  %v1789_v45 = vunpack.c.l.b16 %v1709_v31  ;;  %v2498_v6 = vshll.u32 %v2306_v58, 16  ;;  %v2503_v31 = vshrl.u32 %v2307_v4, 16 }
  0xf7   : > { %5246 = vmatmul.msk.bf16.gmra.mxu0 %vm1251_vm12, %v2754_v49  ;;  %v1711_v49 = vrot.slane %v5523_v23, 5  ;;  %v2476_v10 = vrot.slane %v2474_v54, 5  ;;  %v1717_v54 = vrot.slane %v1715_v62, 4  ;;  %v2500_v23 = vrot.slane %v2498_v6, 5 }
  0xf8   : > { %v2505_v50 = vrot.slane %v2503_v31, 4 }
  0xf9   : > { %v6236_v12 = vpop.f32.mrf.mxu1  ;;  %v1712_v32 = vsel %vm6101_vm0, %v1710_v63, %v1711_v49  ;;  %v2486_v63 = vrot.slane %v2485_v60, 4 }
  0xfa   : > { %5120 = vmatmul.msk.bf16.gmra.mxu1 %vm1251_vm12, %v5430_v27  ;;  %v2472_v27 = vrot.slane %v2471_v18, 4  ;;  %v1790_v46 = vunpack.c.l.b16 %v1712_v32  ;;  %v5138_v18 = vrot.slane %v1620_v8, 9  ;;  %v2506_v32 = vshll.u32 %v2307_v4, 16 }
  0xfc   : > { %v2477_v43 = vsel %vm5807_vm13, %v2472_v27, %v2476_v10  ;;  %v1716_v61 = vsel %vm6101_vm0, %v5138_v18, %v1715_v62  ;;  %v2508_v51 = vrot.slane %v2506_v32, 5  ;;  %v5524_v62 = vld [vmem:[#allocation2 + $0x64] sm:$0xf]  ;;  %v5525_v18 = vld [vmem:[#allocation2 + $0x68] sm:$0x1] }
  0xfd   : > { %v2730_v57 = vunpack.c.l.b16 %v2477_v43  ;;  %v1791_v37 = vunpack.c.l.b16 %v1716_v61  ;;  %v1722_v60 = vrot.slane %v5524_v62, 5 }
  0xfe   : > { %v2509_v8 = vor.u32 %v2508_v51, %v2505_v50 }
  0xff   : > { %v2756_v9 = vpack.c.b16 %v2730_v57, %v2729_v55 }
 0x100   : > { %v2510_v4 = vrot.slane %v2509_v8, 4 }
 0x101   : > { %v6255_v47 = vpop.f32.mrf.mxu1 }
 0x102   : > { %5231 = vmatmul.msk.bf16.gmra.mxu3 %vm1251_vm12, %v5445_v2  ;;  %v2494_v2 = vrot.slane %v2492_v39, 4  ;;  %v6259_v13 = vpop.f32.mrf.mxu2 }
 0x104   : > { %v2495_v0 = vor.u32 %v2494_v2, %v2490_v53  ;;  %v2514_v2 = vrot.slane %v2512_v35, 5  ;;  %v2311_v35 = vld [vmem:[#allocation2 + $0x70] sm:$0xf] }
 0x105   : > { %5152 = vmatmul.msk.bf16.gmra.mxu2 %vm1251_vm12, %v1814_v59  ;;  %v1815_v59 = vpack.c.b16 %v1790_v46, %v1789_v45  ;;  %v2536_v51 = vshll.u32 %v2311_v35, 16 }
 0x106   : > { %v2496_v22 = vrot.slane %v2495_v0, 4  ;;  %v1621_v0 = vld [vmem:[#allocation2 + $0x60] sm:$0xe] }
 0x107   : > { %5247 = vmatmul.msk.bf16.gmra.mxu0 %vm1251_vm12, %v2755_v15  ;;  %v6262_v15 = vpop.f32.mrf.mxu0 }
 0x108   : > { %v2501_v10 = vsel %vm5807_vm13, %v2496_v22, %v2500_v23  ;;  %v1724_v22 = vrot.slane %v1722_v60, 4 }
 0x109   : > { %v2732_v46 = vunpack.c.l.b16 %v2501_v10  ;;  %v2310_v10 = vld [vmem:[#allocation2 + $0x6c] sm:$0xf] }
 0x10a   : > { %5121 = vmatmul.msk.bf16.gmra.mxu1 %vm1251_vm12, %v5431_v19  ;;  %v1718_v19 = vrot.slane %v6055_v28, 5  ;;  %v2491_v28 = vsel %vm5807_vm13, %v2486_v63, %v2490_v53  ;;  %v6279_v43 = vpop.f32.mrf.mxu2  ;;  %v2518_v53 = vrot.slane %v2516_v36, 4  ;;  %v5139_v63 = vrot.slane %v1621_v0, 9 }
 0x10b   : > { %v2731_v45 = vunpack.c.l.b16 %v2491_v28 }
 0x10c   : > { %v1719_v27 = vsel %vm6101_vm0, %v1717_v54, %v1718_v19  ;;  %v1725_v54 = vrot.slane %v5525_v18, 5  ;;  %v5433_v19 = vld [vmem:[#allocation2 + $0x60] sm:$0xff]  ;;  %v1723_v31 = vsel %vm6101_vm0, %v5139_v63, %v1722_v60  ;;  %v2312_v18 = vld [vmem:[#allocation2 + $0x74] sm:$0x1]  ;;  %v1622_v63 = vld [vmem:[#allocation2 + $0x6c] sm:$0xe] }
 0x10d   : > { %v1792_v39 = vunpack.c.l.b16 %v1719_v27  ;;  %v2757_v6 = vpack.c.b16 %v2732_v46, %v2731_v45  ;;  %v2530_v45 = vshll.u32 %v2310_v10, 16  ;;  %v1793_v46 = vunpack.c.l.b16 %v1723_v31  ;;  %v5527_v31 = vld [vmem:[#allocation2 + $0x74] sm:$0x1] }
 0x10e   : > { %v1726_v32 = vsel %vm6101_vm0, %v1724_v22, %v1725_v54  ;;  %v5526_v54 = vld [vmem:[#allocation2 + $0x70] sm:$0xf] }
 0x10f   : > { %v6285_v57 = vpop.f32.mrf.mxu3  ;;  %v1816_v58 = vpack.c.b16 %v1792_v39, %v1791_v37  ;;  %v2515_v39 = vsel %vm5807_vm13, %v2510_v4, %v2514_v2  ;;  %v1794_v50 = vunpack.c.l.b16 %v1726_v32  ;;  %v1732_v32 = vrot.slane %v5527_v31, 5 }
 0x110   : > { %v2733_v62 = vunpack.c.l.b16 %v2515_v39  ;;  %v5140_v39 = vrot.slane %v1622_v63, 9 }
 0x111   : > { %v1817_v8 = vpack.c.b16 %v1794_v50, %v1793_v46  ;;  %v2313_v50 = vld [vmem:[#allocation2 + $0x78] sm:$0xf] }
 0x112   : > { %5232 = vmatmul.msk.bf16.gmra.mxu3 %vm1251_vm12, %v5446_v48 }
 0x114   : > { %v6283_v55 = vpop.f32.mrf.mxu0 }
 0x115   : > { %5153 = vmatmul.msk.bf16.gmra.mxu2 %vm1251_vm12, %v1815_v59  ;;  %v2309_v59 = vld [vmem:[#allocation2 + $0x68] sm:$0x1] }
 0x117   : > { %v6267_v49 = vpop.f32.mrf.mxu1  ;;  %5248 = vmatmul.msk.bf16.gmra.mxu0 %vm1251_vm12, %v2756_v9  ;;  %v2519_v9 = vor.u32 %v2518_v53, %v2514_v2  ;;  %v6300_v37 = vpop.f32.mrf.mxu3  ;;  %v2540_v53 = vshrl.u32 %v2311_v35, 16  ;;  %v5434_v35 = vld [vmem:[#allocation2 + $0x6c] sm:$0xff] }
 0x119   : > { %v2520_v24 = vrot.slane %v2519_v9, 4  ;;  %v2532_v9 = vrot.slane %v2530_v45, 5  ;;  %v2542_v2 = vrot.slane %v2540_v53, 4 }
 0x11a   : > { %5122 = vmatmul.msk.bf16.gmra.mxu1 %vm1251_vm12, %v5432_v16  ;;  %v2522_v16 = vshll.u32 %v2309_v59, 16 }
 0x11c   : > { %v2524_v61 = vrot.slane %v2522_v16, 5  ;;  %v6298_v36 = vpop.f32.mrf.mxu0  ;;  %v2538_v16 = vrot.slane %v2536_v51, 5 }
 0x11f   : > { %v6281_v48 = vpop.f32.mrf.mxu1 }
 0x122   : > { %5233 = vmatmul.msk.bf16.gmra.mxu3 %vm1251_vm12, %v5447_v17  ;;  %v2527_v17 = vshrl.u32 %v2310_v10, 16  ;;  %v2546_v10 = vshll.u32 %v2312_v18, 16 }
 0x125   : > { %5154 = vmatmul.msk.bf16.gmra.mxu2 %vm1251_vm12, %v1816_v58  ;;  %v5448_v58 = vld [vmem:[#allocation2 + $0x60] sm:$0xff] }
 0x127   : > { %v1533_v23 = vpop.f32.mrf.mxu1  ;;  %5249 = vmatmul.msk.bf16.gmra.mxu0 %vm1251_vm12, %v2757_v6  ;;  %v2529_v6 = vrot.slane %v2527_v17, 4 }
 0x128   : > { %v6290_v27 = vpop.f32.mrf.mxu2  ;;  %v1534_v28 = vadd.f32 %v1533_v23, %v6214_v34  ;;  %v2525_v34 = vsel %vm5807_vm13, %v2520_v24, %v2524_v61  ;;  %v2543_v61 = vor.u32 %v2542_v2, %v2538_v16  ;;  %v2554_v2 = vshll.u32 %v2313_v50, 16 }
 0x129   : > { %v2734_v60 = vunpack.c.l.b16 %v2525_v34  ;;  %v2533_v24 = vor.u32 %v2532_v9, %v2529_v6  ;;  %v2551_v9 = vshrl.u32 %v2313_v50, 16 }
 0x12a   : > { %5123 = vmatmul.msk.bf16.gmra.mxu1 %vm1251_vm12, %v5433_v19  ;;  %v1729_v19 = vrot.slane %v5526_v54, 5  ;;  %v2544_v53 = vrot.slane %v2543_v61, 4 }
 0x12b   : > { %v2758_v22 = vpack.c.b16 %v2734_v60, %v2733_v62  ;;  %v2534_v51 = vrot.slane %v2533_v24, 4  ;;  %v2314_v60 = vld [vmem:[#allocation2 + $0x7c] sm:$0xf]  ;;  %v2553_v31 = vrot.slane %v2551_v9, 4 }
 0x12c   : > { %v1731_v34 = vrot.slane %v1729_v19, 4  ;;  %v1730_v6 = vsel %vm6101_vm0, %v5140_v39, %v1729_v19  ;;  %v2560_v18 = vshll.u32 %v2314_v60, 16  ;;  %v2564_v54 = vshrl.u32 %v2314_v60, 16  ;;  %v5449_v19 = vld [vmem:[#allocation2 + $0x6c] sm:$0xff] }
 0x12d   : > { %v1795_v24 = vunpack.c.l.b16 %v1730_v6 }
 0x12e   : > { %v2566_v50 = vrot.slane %v2564_v54, 4  ;;  %v5435_v54 = vld [vmem:[#allocation2 + $0x78] sm:$0xff] }
 0x12f   : > { %v1535_v59 = vpop.f32.mrf.mxu1 }
 0x130   : > { %v6306_v0 = vpop.f32.mrf.mxu2 }
 0x132   : > { %5234 = vmatmul.msk.bf16.gmra.mxu3 %vm1251_vm12, %v5448_v58  ;;  %v2548_v58 = vrot.slane %v2546_v10, 5  ;;  %v1536_v10 = vadd.f32 %v1535_v59, %v6232_v1 }
 0x134   : > { %v6309_v23 = vpop.f32.mrf.mxu0 }
 0x135   : > { %v6311_v4 = vpop.f32.mrf.mxu3  ;;  %5155 = vmatmul.msk.bf16.gmra.mxu2 %vm1251_vm12, %v1817_v8  ;;  %v1733_v8 = vsel %vm6101_vm0, %v1731_v34, %v1732_v32  ;;  %v2556_v32 = vrot.slane %v2554_v2, 5  ;;  %v5529_v2 = vld [vmem:[#allocation2 + $0x80] sm:$0x1] }
 0x136   : > { %7264 = vst [vmem:[#allocation6_spill] sm:$0xff] %v6311_v4  ;;  %v1796_v61 = vunpack.c.l.b16 %v1733_v8  ;;  %v2315_v4 = vld [vmem:[#allocation2 + $0x80] sm:$0x1] }
 0x137   : > { %v1538_v17 = vpop.f32.mrf.mxu1  ;;  %5250 = vmatmul.msk.bf16.gmra.mxu0 %vm1251_vm12, %v2758_v22  ;;  %v2549_v22 = vsel %vm5807_vm13, %v2544_v53, %v2548_v58  ;;  %v2557_v53 = vor.u32 %v2556_v32, %v2553_v31  ;;  %v1623_v58 = vld [vmem:[#allocation2 + $0x78] sm:$0xe]  ;;  %v2570_v1 = vshll.u32 %v2315_v4, 16  ;;  %v2316_v4 = vld [vmem:[#allocation2 + $0x84] sm:$0xf] }
 0x138   : > { %v1885_v45 = vpop.f32.mrf.mxu2  ;;  %v1539_v46 = vadd.f32 %v1538_v17, %v6247_v42  ;;  %v2736_v34 = vunpack.c.l.b16 %v2549_v22  ;;  %v5141_v22 = vrot.slane %v1623_v58, 9  ;;  %v2578_v58 = vshll.u32 %v2316_v4, 16 }
 0x139   : > { %v1965_v62 = vadd.f32 %v1885_v45, %v1534_v28  ;;  %v2539_v28 = vsel %vm5807_vm13, %v2534_v51, %v2538_v16  ;;  %v2562_v45 = vrot.slane %v2560_v18, 5  ;;  %v5528_v16 = vld [vmem:[#allocation2 + $0x7c] sm:$0xf]  ;;  %v2572_v31 = vrot.slane %v2570_v1, 5 }
 0x13a   : > { %5124 = vmatmul.msk.bf16.gmra.mxu1 %vm1251_vm12, %v5434_v35  ;;  %v2735_v39 = vunpack.c.l.b16 %v2539_v28  ;;  %v1736_v51 = vrot.slane %v5528_v16, 5  ;;  %v1739_v28 = vrot.slane %v5529_v2, 5 }
 0x13b   : > { %v2567_v8 = vor.u32 %v2566_v50, %v2562_v45 }
 0x13c   : > { %v6321_v63 = vpop.f32.mrf.mxu0  ;;  %v2759_v6 = vpack.c.b16 %v2736_v34, %v2735_v39 }
 0x13d   : > { %v6323_v42 = vpop.f32.mrf.mxu3 }
 0x13e   : > { %7265 = vst [vmem:[#allocation7_spill] sm:$0xff] %v6323_v42  ;;  %v1818_v42 = vpack.c.b16 %v1796_v61, %v1795_v24  ;;  %v1738_v24 = vrot.slane %v1736_v51, 4  ;;  %v2558_v61 = vrot.slane %v2557_v53, 4  ;;  %v2575_v53 = vshrl.u32 %v2316_v4, 16 }
 0x13f   : > { %v1540_v35 = vpop.f32.mrf.mxu1 }
 0x140   : > { %v1887_v17 = vpop.f32.mrf.mxu2  ;;  %v1740_v50 = vsel %vm6101_vm0, %v1738_v24, %v1739_v28  ;;  %v2563_v16 = vsel %vm5807_vm13, %v2558_v61, %v2562_v45  ;;  %v1541_v28 = vadd.f32 %v1540_v35, %v6262_v15  ;;  %v2580_v24 = vrot.slane %v2578_v58, 5 }
 0x141   : > { %v1966_v60 = vadd.f32 %v1887_v17, %v1536_v10 }
 0x142   : > { %5235 = vmatmul.msk.bf16.gmra.mxu3 %vm1251_vm12, %v5449_v19  ;;  %v2568_v19 = vrot.slane %v2567_v8, 4 }
 0x144   : > { %v2827_v59 = vpop.f32.mrf.mxu0 }
 0x145   : > { %v2174_v9 = vpop.f32.mrf.mxu3  ;;  %5156 = vmatmul.msk.bf16.gmra.mxu2 %vm1251_vm12, %v1818_v42  ;;  %v2317_v42 = vld [vmem:[#allocation2 + $0x88] sm:$0xf] }
 0x146   : > { %v2254_v18 = vadd.f32 %v2174_v9, %v1965_v62  ;;  %v1737_v62 = vsel %vm6101_vm0, %v5141_v22, %v1736_v51  ;;  %v2588_v8 = vshrl.u32 %v2317_v42, 16  ;;  %v1798_v9 = vunpack.c.l.b16 %v1740_v50 }
 0x147   : > { %v1543_v10 = vpop.f32.mrf.mxu1  ;;  %5251 = vmatmul.msk.bf16.gmra.mxu0 %vm1251_vm12, %v2759_v6  ;;  %v2584_v6 = vshll.u32 %v2317_v42, 16  ;;  %v2737_v51 = vunpack.c.l.b16 %v2563_v16  ;;  %v2577_v22 = vrot.slane %v2575_v53, 4 }
 0x148   : > { %v1890_v32 = vpop.f32.mrf.mxu2  ;;  %v1544_v39 = vadd.f32 %v1543_v10, %v6283_v55  ;;  %v6334_v34 = vadd.f32 %v2827_v59, %v2254_v18  ;;  %v2573_v55 = vsel %vm5807_vm13, %v2568_v19, %v2572_v31  ;;  %v1797_v59 = vunpack.c.l.b16 %v1737_v62  ;;  %v5450_v18 = vld [vmem:[#allocation2 + $0x78] sm:$0xff]  ;;  %v2318_v62 = vld [vmem:[#allocation2 + $0x8c] sm:$0x1] }
 0x149   : > { %v1967_v17 = vadd.f32 %v1890_v32, %v1539_v46  ;;  %v2586_v10 = vrot.slane %v2584_v6, 5  ;;  %v2590_v32 = vrot.slane %v2588_v8, 4  ;;  %v2581_v16 = vor.u32 %v2580_v24, %v2577_v22  ;;  %v5531_v6 = vld [vmem:[#allocation2 + $0x8c] sm:$0x1] }
 0x14a   : > { %5125 = vmatmul.msk.bf16.gmra.mxu1 %vm1251_vm12, %v5435_v54  ;;  %v2738_v54 = vunpack.c.l.b16 %v2573_v55  ;;  %v1819_v42 = vpack.c.b16 %v1798_v9, %v1797_v59  ;;  %v1624_v55 = vld [vmem:[#allocation2 + $0x84] sm:$0xe]  ;;  %v2594_v53 = vshll.u32 %v2318_v62, 16 }
 0x14b   : > { %v2591_v35 = vor.u32 %v2590_v32, %v2586_v10  ;;  %v2582_v9 = vrot.slane %v2581_v16, 4 }
 0x14c   : > { %v2829_v46 = vpop.f32.mrf.mxu0  ;;  %v2760_v15 = vpack.c.b16 %v2738_v54, %v2737_v51  ;;  %v2596_v22 = vrot.slane %v2594_v53, 5 }
 0x14d   : > { %v2176_v1 = vpop.f32.mrf.mxu3  ;;  %v2587_v62 = vsel %vm5807_vm13, %v2582_v9, %v2586_v10 }
 0x14e   : > { %v2255_v2 = vadd.f32 %v2176_v1, %v1966_v60  ;;  %v5530_v60 = vld [vmem:[#allocation2 + $0x88] sm:$0xf] }
 0x14f   : > { %v1545_v45 = vpop.f32.mrf.mxu1  ;;  %v1743_v50 = vrot.slane %v5530_v60, 5 }
 0x150   : > { %v1892_v61 = vpop.f32.mrf.mxu2  ;;  %v1546_v19 = vadd.f32 %v1545_v45, %v6298_v36  ;;  %v6347_v31 = vadd.f32 %v2829_v46, %v2255_v2  ;;  %v1746_v36 = vrot.slane %v5531_v6, 5  ;;  %v5436_v46 = vld [vmem:[#allocation2 + $0x84] sm:$0xff]  ;;  %v5142_v2 = vrot.slane %v1624_v55, 9 }
 0x151   : > { %v1968_v4 = vadd.f32 %v1892_v61, %v1541_v28  ;;  %v1745_v59 = vrot.slane %v1743_v50, 4  ;;  %v2319_v61 = vld [vmem:[#allocation2 + $0x90] sm:$0xf]  ;;  %v2739_v6 = vunpack.c.l.b16 %v2587_v62 }
 0x152   : > { %5236 = vmatmul.msk.bf16.gmra.mxu3 %vm1251_vm12, %v5450_v18  ;;  %v2592_v18 = vrot.slane %v2591_v35, 4  ;;  %v2602_v16 = vshll.u32 %v2319_v61, 16 }
 0x153   : > { %v1747_v32 = vsel %vm6101_vm0, %v1745_v59, %v1746_v36 }
 0x154   : > { %v2832_v58 = vpop.f32.mrf.mxu0  ;;  %v2597_v60 = vsel %vm5807_vm13, %v2592_v18, %v2596_v22  ;;  %v1800_v35 = vunpack.c.l.b16 %v1747_v32  ;;  %v2604_v59 = vrot.slane %v2602_v16, 5  ;;  %v1625_v32 = vld [vmem:[#allocation2 + $0x90] sm:$0xe] }
 0x155   : > { %v2179_v1 = vpop.f32.mrf.mxu3  ;;  %5157 = vmatmul.msk.bf16.gmra.mxu2 %vm1251_vm12, %v1819_v42  ;;  %v2320_v42 = vld [vmem:[#allocation2 + $0x94] sm:$0xf] }
 0x156   : > { %v2256_v8 = vadd.f32 %v2179_v1, %v1967_v17  ;;  %v1744_v17 = vsel %vm6101_vm0, %v5142_v2, %v1743_v50  ;;  %v2608_v53 = vshll.u32 %v2320_v42, 16  ;;  %v5451_v50 = vld [vmem:[#allocation2 + $0x84] sm:$0xff] }
 0x157   : > { %v1548_v28 = vpop.f32.mrf.mxu1  ;;  %5252 = vmatmul.msk.bf16.gmra.mxu0 %vm1251_vm12, %v2760_v15  ;;  %v1799_v15 = vunpack.c.l.b16 %v1744_v17  ;;  %v5532_v17 = vld [vmem:[#allocation2 + $0x94] sm:$0xf] }
 0x158   : > { %v1895_v24 = vpop.f32.mrf.mxu2  ;;  %v1549_v51 = vadd.f32 %v1548_v28, %v6309_v23  ;;  %v6353_v54 = vadd.f32 %v2832_v58, %v2256_v8  ;;  %v2599_v23 = vshrl.u32 %v2319_v61, 16  ;;  %v2612_v58 = vshrl.u32 %v2320_v42, 16  ;;  %v2321_v61 = vld [vmem:[#allocation2 + $0x98] sm:$0x1] }
 0x159   : > { %v1969_v45 = vadd.f32 %v1895_v24, %v1544_v39  ;;  %v2740_v8 = vunpack.c.l.b16 %v2597_v60  ;;  %v1820_v18 = vpack.c.b16 %v1800_v35, %v1799_v15  ;;  %v2610_v22 = vrot.slane %v2608_v53, 5  ;;  %v5437_v15 = vld [vmem:[#allocation2 + $0x90] sm:$0xff] }
 0x15a   : > { %5126 = vmatmul.msk.bf16.gmra.mxu1 %vm1251_vm12, %v5436_v46  ;;  %v2601_v2 = vrot.slane %v2599_v23, 4  ;;  %v2614_v24 = vrot.slane %v2612_v58, 4  ;;  %v5143_v35 = vrot.slane %v1625_v32, 9 }
 0x15b   : > { %v2761_v42 = vpack.c.b16 %v2740_v8, %v2739_v6 }
 0x15c   : > { %v2834_v55 = vpop.f32.mrf.mxu0  ;;  %v2605_v23 = vor.u32 %v2604_v59, %v2601_v2  ;;  %v2615_v16 = vor.u32 %v2614_v24, %v2610_v22 }
 0x15d   : > { %v2181_v39 = vpop.f32.mrf.mxu3 }
 0x15e   : > { %v2257_v1 = vadd.f32 %v2181_v39, %v1968_v4  ;;  %v1750_v4 = vrot.slane %v5532_v17, 5  ;;  %v2606_v8 = vrot.slane %v2605_v23, 4 }
 0x15f   : > { %v1550_v36 = vpop.f32.mrf.mxu1 }
 0x160   : > { %v1897_v46 = vpop.f32.mrf.mxu2  ;;  %v1551_v10 = vadd.f32 %v1550_v36, %v6321_v63  ;;  %v6365_v9 = vadd.f32 %v2834_v55, %v2257_v1  ;;  %v2618_v63 = vshll.u32 %v2321_v61, 16  ;;  %v5533_v55 = vld [vmem:[#allocation2 + $0x98] sm:$0x1]  ;;  %v1752_v53 = vrot.slane %v1750_v4, 4  ;;  %v2323_v36 = vld [vmem:[#allocation2 + $0xa0] sm:$0xf] }
 0x161   : > { %v1970_v28 = vadd.f32 %v1897_v46, %v1546_v19  ;;  %v1753_v39 = vrot.slane %v5533_v55, 5  ;;  %v2616_v46 = vrot.slane %v2615_v16, 4  ;;  %v2632_v17 = vshll.u32 %v2323_v36, 16  ;;  %v5452_v55 = vld [vmem:[#allocation2 + $0x90] sm:$0xff] }
 0x162   : > { %7266 = vst [vmem:[#allocation8_spill] sm:$0xff] %v6365_v9  ;;  %5237 = vmatmul.msk.bf16.gmra.mxu3 %vm1251_vm12, %v5451_v50  ;;  %v2322_v50 = vld [vmem:[#allocation2 + $0x9c] sm:$0xf]  ;;  %v2636_v32 = vshrl.u32 %v2323_v36, 16  ;;  %v2324_v36 = vld [vmem:[#allocation2 + $0xa4] sm:$0x1] }
 0x163   : > { %v1754_v59 = vsel %vm6101_vm0, %v1752_v53, %v1753_v39  ;;  %v2623_v24 = vshrl.u32 %v2322_v50, 16  ;;  %v2626_v61 = vshll.u32 %v2322_v50, 16 }
 0x164   : > { %v2837_v62 = vpop.f32.mrf.mxu0  ;;  %v1802_v16 = vunpack.c.l.b16 %v1754_v59  ;;  %v2638_v39 = vrot.slane %v2636_v32, 4  ;;  %v1626_v59 = vld [vmem:[#allocation2 + $0x9c] sm:$0xe]  ;;  %v5535_v32 = vld [vmem:[#allocation2 + $0xa4] sm:$0x1] }
 0x165   : > { %v2184_v60 = vpop.f32.mrf.mxu3  ;;  %5158 = vmatmul.msk.bf16.gmra.mxu2 %vm1251_vm12, %v1820_v18  ;;  %v2620_v18 = vrot.slane %v2618_v63, 5 }
 0x166   : > { %v2258_v19 = vadd.f32 %v2184_v60, %v1969_v45  ;;  %v1751_v45 = vsel %vm6101_vm0, %v5143_v35, %v1750_v4  ;;  %v2625_v4 = vrot.slane %v2623_v24, 4 }
 0x167   : > { %v1553_v58 = vpop.f32.mrf.mxu1  ;;  %5253 = vmatmul.msk.bf16.gmra.mxu0 %vm1251_vm12, %v2761_v42  ;;  %v1801_v23 = vunpack.c.l.b16 %v1751_v45  ;;  %v2642_v45 = vshll.u32 %v2324_v36, 16 }
 0x168   : > { %v1900_v1 = vpop.f32.mrf.mxu2  ;;  %v6370_v6 = vadd.f32 %v2837_v62, %v2258_v19  ;;  %v2611_v62 = vsel %vm5807_vm13, %v2606_v8, %v2610_v22  ;;  %v2628_v19 = vrot.slane %v2626_v61, 5  ;;  %v5534_v8 = vld [vmem:[#allocation2 + $0xa0] sm:$0xf] }
 0x169   : > { %v1971_v2 = vadd.f32 %v1900_v1, %v1549_v51  ;;  %v2621_v51 = vsel %vm5807_vm13, %v2616_v46, %v2620_v18  ;;  %v2741_v53 = vunpack.c.l.b16 %v2611_v62  ;;  %v1821_v22 = vpack.c.b16 %v1802_v16, %v1801_v23 }
 0x16a   : > { %7267 = vst [vmem:[#allocation9_spill] sm:$0xff] %v6370_v6  ;;  %5127 = vmatmul.msk.bf16.gmra.mxu1 %vm1251_vm12, %v5437_v15  ;;  %v2634_v15 = vrot.slane %v2632_v17, 5  ;;  %v2742_v1 = vunpack.c.l.b16 %v2621_v51  ;;  %v1757_v46 = vrot.slane %v5534_v8, 5  ;;  %v2629_v18 = vor.u32 %v2628_v19, %v2625_v4 }
 0x16b   : > { %v5144_v51 = vrot.slane %v1626_v59, 9  ;;  %v1554_v23 = vadd.f32 %v1553_v58, %v6189_v33 }
 0x16c   : > { %v2839_v42 = vpop.f32.mrf.mxu0  ;;  %v2762_v24 = vpack.c.b16 %v2742_v1, %v2741_v53  ;;  %v2630_v16 = vrot.slane %v2629_v18, 4  ;;  %v273_v53 = vld [vmem:[#allocation2 + $0xc0] sm:$0x1] }
 0x16d   : > { %v2186_v60 = vpop.f32.mrf.mxu3  ;;  %v274_v36 = vsel %vm5714_vm4, 0, %v273_v53  ;;  %v1758_v33 = vsel %vm6101_vm0, %v5144_v51, %v1757_v46 }
 0x16e   : > { %v2259_v63 = vadd.f32 %v2186_v60, %v1970_v28  ;;  %v2639_v28 = vor.u32 %v2638_v39, %v2634_v15  ;;  %v1760_v60 = vrot.slane %v5535_v32, 5  ;;  %v2325_v39 = vld [vmem:[#allocation2 + $0xa8] sm:$0xf]  ;;  %275 = vst [vmem:[#allocation2 + $0xc0] sm:$0x1] %v274_v36 }
 0x16f   : > { %v1555_v35 = vpop.f32.mrf.mxu1  ;;  %v2647_v18 = vshrl.u32 %v2325_v39, 16 }
 0x170   : > { %v1902_v50 = vpop.f32.mrf.mxu2  ;;  %v6381_v6 = vadd.f32 %v2839_v42, %v2259_v63  ;;  %v5438_v42 = vld [vmem:[#allocation2 + $0x9c] sm:$0xff]  ;;  %v2640_v63 = vrot.slane %v2639_v28, 4  ;;  %v213_v28 = vld [vmem:[%s5734_s30 + $0x78] sm:$0xf] }
 0x171   : > { %v1972_v9 = vadd.f32 %v1902_v50, %v1551_v10  ;;  %v1759_v10 = vrot.slane %v1757_v46, 4  ;;  %v1803_v46 = vunpack.c.l.b16 %v1758_v33  ;;  %v587_v36 = vshll.u32 %v213_v28, 16 }
 0x172   : > { %7268 = vst [vmem:[#allocation10_spill] sm:$0xff] %v6381_v6  ;;  %5238 = vmatmul.msk.bf16.gmra.mxu3 %vm1251_vm12, %v5452_v55  ;;  %v2644_v55 = vrot.slane %v2642_v45, 5  ;;  %v2650_v45 = vshll.u32 %v2325_v39, 16 }
 0x173   : > { %v1761_v58 = vsel %vm6101_vm0, %v1759_v10, %v1760_v60  ;;  %v5453_v60 = vld [vmem:[#allocation2 + $0x9c] sm:$0xff] }
 0x174   : > { %v2842_v61 = vpop.f32.mrf.mxu0  ;;  %v2645_v8 = vsel %vm5807_vm13, %v2640_v63, %v2644_v55 }
 0x175   : > { %v2189_v17 = vpop.f32.mrf.mxu3  ;;  %5159 = vmatmul.msk.bf16.gmra.mxu2 %vm1251_vm12, %v1821_v22  ;;  %v2635_v22 = vsel %vm5807_vm13, %v2630_v16, %v2634_v15  ;;  %v2744_v10 = vunpack.c.l.b16 %v2645_v8  ;;  %v1556_v15 = vadd.f32 %v1555_v35, %v6194_v56  ;;  %v755_v35 = vld [vmem:[#allocation2 + $0xc0] sm:$0xf] }
 0x176   : > { %v2260_v62 = vadd.f32 %v2189_v17, %v1971_v2  ;;  %v2326_v2 = vld [vmem:[#allocation2 + $0xac] sm:$0xf]  ;;  %v2743_v51 = vunpack.c.l.b16 %v2635_v22 }
 0x177   : > { %v6386_v4 = vpop.f32.mrf.mxu1  ;;  %5254 = vmatmul.msk.bf16.gmra.mxu0 %vm1251_vm12, %v2762_v24  ;;  %v2656_v59 = vshll.u32 %v2326_v2, 16  ;;  %v2660_v24 = vshrl.u32 %v2326_v2, 16  ;;  %v214_v2 = vld [vmem:[%s5734_s30 + $0x7c] sm:$0xf]  ;;  %v5536_v22 = vld [vmem:[#allocation2 + $0xac] sm:$0xf] }
 0x178   : > { %v1905_v19 = vpop.f32.mrf.mxu2  ;;  %v6389_v1 = vadd.f32 %v2842_v61, %v2260_v62  ;;  %v584_v61 = vshrl.u32 %v213_v28, 16  ;;  %v1804_v62 = vunpack.c.l.b16 %v1761_v58  ;;  %v323_v58 = vld [vmem:[#allocation2 + $0xc8] sm:$0x1]  ;;  %v1764_v56 = vrot.slane %v5536_v22, 5 }
 0x179   : > { %v1973_v50 = vadd.f32 %v1905_v19, %v1554_v23  ;;  %v2649_v23 = vrot.slane %v2647_v18, 4  ;;  %v2652_v19 = vrot.slane %v2650_v45, 5  ;;  %v6406_v39 = vrot.slane %v2656_v59, 5  ;;  %v1627_v18 = vld [vmem:[#allocation2 + $0xa8] sm:$0xe] }
 0x17a   : > { %7269 = vst [vmem:[#allocation11_spill] sm:$0xff] %v6389_v1  ;;  %5128 = vmatmul.msk.bf16.gmra.mxu1 %vm1251_vm12, %v5438_v42  ;;  %v586_v63 = vrot.slane %v584_v61, 7  ;;  %v2662_v53 = vrot.slane %v2660_v24, 4  ;;  %v1822_v33 = vpack.c.b16 %v1804_v62, %v1803_v46  ;;  %v2763_v8 = vpack.c.b16 %v2744_v10, %v2743_v51 }
 0x17b   : > { %v595_v45 = vshll.u32 %v214_v2, 16  ;;  %v2653_v59 = vor.u32 %v2652_v19, %v2649_v23  ;;  %v324_v28 = vsel %vm5722_vm6, 0, %v323_v58  ;;  %v1559_v7 = vadd.f32 %v6386_v4, %v6207_v20 }
 0x17c   : > { %v2844_v17 = vpop.f32.mrf.mxu0  ;;  %v589_v61 = vor.u32 %v587_v36, %v586_v63  ;;  %v2663_v24 = vor.u32 %v2662_v53, %v6406_v39  ;;  %325 = vst [vmem:[#allocation2 + $0xc8] sm:$0x1] %v324_v28  ;;  %v5439_v53 = vld [vmem:[#allocation2 + $0xa8] sm:$0xff]  ;;  %v1766_v36 = vrot.slane %v1764_v56, 4 }
 0x17d   : > { %v2191_v32 = vpop.f32.mrf.mxu3  ;;  %v2654_v30 = vrot.slane %v2653_v59, 4 }
 0x17e   : > { %v2261_v42 = vadd.f32 %v2191_v32, %v1972_v9  ;;  %v2327_v9 = vld [vmem:[#allocation2 + $0xb0] sm:$0x1]  ;;  %v592_v32 = vshrl.u32 %v214_v2, 16  ;;  %v756_v51 = vsel %vm5753_vm9, %v589_v61, %v755_v35  ;;  %v5145_v2 = vrot.slane %v1627_v18, 9 }
 0x17f   : > { %v6404_v16 = vpop.f32.mrf.mxu1  ;;  %v2666_v6 = vshll.u32 %v2327_v9, 16  ;;  %757 = vst [vmem:[#allocation2 + $0xc0] sm:$0xf] %v756_v51  ;;  %v2664_v58 = vrot.slane %v2663_v24, 4  ;;  %v2659_v25 = vsel %vm5807_vm13, %v2654_v30, %v6406_v39  ;;  %v5454_v51 = vld [vmem:[#allocation2 + $0xa8] sm:$0xff] }
 0x180   : > { %v1907_v55 = vpop.f32.mrf.mxu2  ;;  %v6418_v10 = vadd.f32 %v2844_v17, %v2261_v42  ;;  %v2329_v17 = vld [vmem:[#allocation2 + $0xb8] sm:$0xf]  ;;  %v1765_v20 = vsel %vm6101_vm0, %v5145_v2, %v1764_v56 }
 0x181   : > { %v6409_v1 = vadd.f32 %v1907_v55, %v1556_v15  ;;  %v594_v15 = vrot.slane %v592_v32, 7  ;;  %v5537_v55 = vld [vmem:[#allocation2 + $0xb0] sm:$0x1]  ;;  %v2668_v35 = vrot.slane %v2666_v6, 5  ;;  %v2684_v59 = vshrl.u32 %v2329_v17, 16 }
 0x182   : > { %5239 = vmatmul.msk.bf16.gmra.mxu3 %vm1251_vm12, %v5453_v60  ;;  %v590_v60 = vrot.slane %v586_v63, 4  ;;  %v1767_v23 = vrot.slane %v5537_v55, 5  ;;  %v1805_v56 = vunpack.c.l.b16 %v1765_v20 }
 0x183   : > { %v597_v63 = vor.u32 %v595_v45, %v594_v15  ;;  %v599_v61 = vrot.slane %v594_v15, 4  ;;  %v2680_v45 = vshll.u32 %v2329_v17, 16  ;;  %v759_v6 = vld [vmem:[#allocation2 + $0xc8] sm:$0x1]  ;;  %v1628_v17 = vld [vmem:[#allocation2 + $0xb4] sm:$0xe] }
 0x184   : > { %v2847_v46 = vpop.f32.mrf.mxu0  ;;  %v1768_v4 = vsel %vm6101_vm0, %v1766_v36, %v1767_v23  ;;  %v1561_v23 = vadd.f32 %v6404_v16, %v6218_v40  ;;  %v2745_v36 = vunpack.c.l.b16 %v2659_v25  ;;  %v5440_v25 = vld [vmem:[#allocation2 + $0xb4] sm:$0xff] }
 0x185   : > { %v2194_v62 = vpop.f32.mrf.mxu3  ;;  %5160 = vmatmul.msk.bf16.gmra.mxu2 %vm1251_vm12, %v1822_v33  ;;  %v2328_v33 = vld [vmem:[#allocation2 + $0xb4] sm:$0xf]  ;;  %v598_v18 = vsel %vm5747_vm8, %v590_v60, %v597_v63  ;;  %v760_v60 = vsel %vm5714_vm4, %v599_v61, %v759_v6  ;;  %v2330_v63 = vld [vmem:[#allocation2 + $0xbc] sm:$0x1] }
 0x186   : > { %v2262_v19 = vadd.f32 %v2194_v62, %v1973_v50  ;;  %758 = vst.msk [vmem:[#allocation2 + $0xc4] sm:$0xf] %vm215_vm5, %v598_v18  ;;  %v2674_v32 = vshll.u32 %v2328_v33, 16  ;;  %v1806_v62 = vunpack.c.l.b16 %v1768_v4  ;;  %v2690_v40 = vshll.u32 %v2330_v63, 16  ;;  %v5539_v61 = vld [vmem:[#allocation2 + $0xbc] sm:$0x1] }
 0x187   : > { %v1563_v9 = vpop.f32.mrf.mxu1  ;;  %5255 = vmatmul.msk.bf16.gmra.mxu0 %vm1251_vm12, %v2763_v8  ;;  %v2671_v8 = vshrl.u32 %v2328_v33, 16  ;;  %761 = vst [vmem:[#allocation2 + $0xc8] sm:$0x1] %v760_v60  ;;  %v1774_v20 = vrot.slane %v5539_v61, 5  ;;  %v2331_v60 = vld [vmem:[#allocation2 + $0xc0] sm:$0xf] }
 0x188   : > { %v1910_v22 = vpop.f32.mrf.mxu2  ;;  %v6423_v42 = vadd.f32 %v2847_v46, %v2262_v19  ;;  %v2669_v46 = vsel %vm5807_vm13, %v2664_v58, %v2668_v35  ;;  %v2676_v39 = vrot.slane %v2674_v32, 5  ;;  %v2682_v19 = vrot.slane %v2680_v45, 5  ;;  %v5455_v61 = vld [vmem:[#allocation2 + $0xb4] sm:$0xff] }
 0x189   : > { %v1975_v50 = vadd.f32 %v1910_v22, %v1559_v7  ;;  %v2673_v55 = vrot.slane %v2671_v8, 4  ;;  %v2746_v7 = vunpack.c.l.b16 %v2669_v46  ;;  %v1823_v58 = vpack.c.b16 %v1806_v62, %v1805_v56  ;;  %v5538_v22 = vld [vmem:[#allocation2 + $0xb8] sm:$0xf] }
 0x18a   : > { %5129 = vmatmul.msk.bf16.gmra.mxu1 %vm1251_vm12, %v5439_v53  ;;  %v2686_v53 = vrot.slane %v2684_v59, 4  ;;  %v5146_v32 = vrot.slane %v1628_v17, 9  ;;  %v1564_v6 = vadd.f32 %v1563_v9, %v6236_v12  ;;  %v2692_v46 = vrot.slane %v2690_v40, 5  ;;  %v5541_v17 = vld [vmem:[#allocation2 + $0x14] sm:$0x1] }
 0x18b   : > { %v2677_v35 = vor.u32 %v2676_v39, %v2673_v55  ;;  %v2764_v16 = vpack.c.b16 %v2746_v7, %v2745_v36  ;;  %v2695_v36 = vshrl.u32 %v2331_v60, 16  ;;  %v2698_v63 = vshll.u32 %v2331_v60, 16 }
 0x18c   : > { %v2849_v24 = vpop.f32.mrf.mxu0  ;;  %v2687_v18 = vor.u32 %v2686_v53, %v2682_v19 }
 0x18d   : > { %v2196_v28 = vpop.f32.mrf.mxu3  ;;  %v2332_v12 = vld [vmem:[#allocation2 + $0xc4] sm:$0xf] }
 0x18e   : > { %v2263_v15 = vadd.f32 %v2196_v28, %v6409_v1  ;;  %v1771_v1 = vrot.slane %v5538_v22, 5  ;;  %v2688_v28 = vrot.slane %v2687_v18, 4  ;;  %v2708_v40 = vshrl.u32 %v2332_v12, 16  ;;  %v2333_v60 = vld [vmem:[#allocation2 + $0xc8] sm:$0x1] }
 0x18f   : > { %v1565_v2 = vpop.f32.mrf.mxu1 }
 0x190   : > { %v1912_v33 = vpop.f32.mrf.mxu2  ;;  %v6443_v30 = vadd.f32 %v2849_v24, %v2263_v15  ;;  %v1773_v45 = vrot.slane %v1771_v1, 4  ;;  %v2678_v24 = vrot.slane %v2677_v35, 4  ;;  %v1772_v39 = vsel %vm6101_vm0, %v5146_v32, %v1771_v1 }
 0x191   : > { %v1976_v3 = vadd.f32 %v1912_v33, %v1561_v23  ;;  %v2693_v53 = vsel %vm5807_vm13, %v2688_v28, %v2692_v46  ;;  %v1807_v7 = vunpack.c.l.b16 %v1772_v39  ;;  %v3008_v1 = vrot.slane %v5541_v17, 5 }
 0x192   : > { %5240 = vmatmul.msk.bf16.gmra.mxu3 %vm1251_vm12, %v5454_v51  ;;  %v5540_v51 = vld [vmem:[#allocation2 + $0x10] sm:$0xf]  ;;  %v2683_v9 = vsel %vm5807_vm13, %v2678_v24, %v2682_v19  ;;  %v1566_v19 = vadd.f32 %v1565_v2, %v6255_v47  ;;  %v2697_v32 = vrot.slane %v2695_v36, 4  ;;  %v2700_v24 = vrot.slane %v2698_v63, 5 }
 0x193   : > { %v3005_v55 = vrot.slane %v5540_v51, 5  ;;  %v2710_v51 = vrot.slane %v2708_v40, 4 }
 0x194   : > { %v2852_v4 = vpop.f32.mrf.mxu0 }
 0x195   : > { %v2199_v8 = vpop.f32.mrf.mxu3  ;;  %5161 = vmatmul.msk.bf16.gmra.mxu2 %vm1251_vm12, %v1823_v58  ;;  %v2704_v58 = vshll.u32 %v2332_v12, 16  ;;  %v3007_v22 = vrot.slane %v3005_v55, 4 }
 0x196   : > { %v2264_v59 = vadd.f32 %v2199_v8, %v1975_v50  ;;  %v1775_v50 = vsel %vm6101_vm0, %v1773_v45, %v1774_v20  ;;  %v2747_v20 = vunpack.c.l.b16 %v2683_v9  ;;  %v2748_v8 = vunpack.c.l.b16 %v2693_v53 }
 0x197   : > { %v1568_v56 = vpop.f32.mrf.mxu1  ;;  %5256 = vmatmul.msk.bf16.gmra.mxu0 %vm1251_vm12, %v2764_v16  ;;  %v1808_v33 = vunpack.c.l.b16 %v1775_v50  ;;  %v2706_v28 = vrot.slane %v2704_v58, 5  ;;  %v3009_v39 = vsel %vm6101_vm0, %v3007_v22, %v3008_v1  ;;  %v3626_v50 = vld [vmem:[#allocation2 + $0x18] sm:$0xf]  ;;  %v2701_v9 = vor.u32 %v2700_v24, %v2697_v32 }
 0x198   : > { %v1915_v62 = vpop.f32.mrf.mxu2  ;;  %v6449_v15 = vadd.f32 %v2852_v4, %v2264_v59  ;;  %v2939_v4 = vld [vmem:[#allocation2 + $0xc] sm:$0xe]  ;;  %v3117_v2 = vunpack.c.l.b16 %v3009_v39  ;;  %v2765_v12 = vpack.c.b16 %v2748_v8, %v2747_v20  ;;  %v2714_v53 = vshll.u32 %v2333_v60, 16 }
 0x199   : > { %v1977_v23 = vadd.f32 %v1915_v62, %v1564_v6  ;;  %v5259_v59 = vrot.slane %v2939_v4, 9  ;;  %v1824_v6 = vpack.c.b16 %v1808_v33, %v1807_v7  ;;  %v6468_v7 = vld [vmem:[#allocation2 + $0x1c] sm:$0xf]  ;;  %v2711_v58 = vor.u32 %v2710_v51, %v2706_v28 }
 0x19a   : > { %5130 = vmatmul.msk.bf16.gmra.mxu1 %vm1251_vm12, %v5440_v25  ;;  %v3678_v17 = vshll.u32 %v3626_v50, 16  ;;  %v1569_v22 = vadd.f32 %v1568_v56, %v6267_v49  ;;  %v3688_v40 = vshrl.u32 %v6468_v7, 16 }
 0x19b   : > { %v2712_v8 = vrot.slane %v2711_v58, 4 }
 0x19c   : > { %v2854_v35 = vpop.f32.mrf.mxu0  ;;  %v3690_v56 = vrot.slane %v3688_v40, 4  ;;  %v5457_v40 = vld [vmem:[#allocation2 + $0x18] sm:$0xff] }
 0x19d   : > { %v2201_v18 = vpop.f32.mrf.mxu3 }
 0x19e   : > { %v2265_v16 = vadd.f32 %v2201_v18, %v1976_v3  ;;  %v3006_v3 = vsel %vm6101_vm0, %v5259_v59, %v3005_v55  ;;  %v3675_v55 = vshrl.u32 %v3626_v50, 16  ;;  %v3684_v18 = vshll.u32 %v6468_v7, 16 }
 0x19f   : > { %v1570_v45 = vpop.f32.mrf.mxu1  ;;  %v3116_v47 = vunpack.c.l.b16 %v3006_v3  ;;  %v3680_v59 = vrot.slane %v3678_v17, 5 }
 0x1a0   : > { %v1917_v25 = vpop.f32.mrf.mxu2  ;;  %v6461_v46 = vadd.f32 %v2854_v35, %v2265_v16  ;;  %v2702_v16 = vrot.slane %v2701_v9, 4  ;;  %v3677_v32 = vrot.slane %v3675_v55, 4  ;;  %v3686_v49 = vrot.slane %v3684_v18, 5 }
 0x1a1   : > { %v1978_v62 = vadd.f32 %v1917_v25, %v1566_v19  ;;  %v3148_v36 = vpack.c.b16 %v3117_v2, %v3116_v47  ;;  %v5542_v25 = vld [vmem:[#allocation2 + $0x20] sm:$0x1]  ;;  %v5543_v47 = vld [vmem:[#allocation2 + $0x1c] sm:$0xf] }
 0x1a2   : > { %5241 = vmatmul.msk.bf16.gmra.mxu3 %vm1251_vm12, %v5455_v61  ;;  %v2716_v61 = vrot.slane %v2714_v53, 5  ;;  %v2707_v51 = vsel %vm5807_vm13, %v2702_v16, %v2706_v28  ;;  %v3681_v39 = vor.u32 %v3680_v59, %v3677_v32  ;;  %v3012_v2 = vrot.slane %v5543_v47, 5  ;;  %v2940_v53 = vld [vmem:[#allocation2 + $0x18] sm:$0xe]  ;;  %v3629_v32 = vld [vmem:[#allocation2 + $0x24] sm:$0xf] }
 0x1a3   : > { %v5260_v58 = vrot.slane %v2940_v53, 9  ;;  %v2749_v17 = vunpack.c.l.b16 %v2707_v51  ;;  %v4349_v51 = vrot.slane %v6468_v7, 5  ;;  %v3699_v47 = vshrl.u32 %v3629_v32, 16 }
 0x1a4   : > { %v2857_v33 = vpop.f32.mrf.mxu0  ;;  %v2717_v3 = vsel %vm5807_vm13, %v2712_v8, %v2716_v61  ;;  %v3014_v55 = vrot.slane %v3012_v2, 4  ;;  %v3682_v16 = vrot.slane %v3681_v39, 4 }
 0x1a5   : > { %v2204_v63 = vpop.f32.mrf.mxu3  ;;  %5162 = vmatmul.msk.bf16.gmra.mxu2 %vm1251_vm12, %v1824_v6  ;;  %v3015_v6 = vrot.slane %v5542_v25, 5  ;;  %v2750_v28 = vunpack.c.l.b16 %v2717_v3  ;;  %v4283_v3 = vld [vmem:[#allocation2 + $0x18] sm:$0xe] }
 0x1a6   : > { %v2266_v35 = vadd.f32 %v2204_v63, %v1977_v23  ;;  %v6478_v23 = vld [vmem:[#allocation2 + $0x20] sm:$0x1] }
 0x1a7   : > { %v1573_v1 = vpop.f32.mrf.mxu1  ;;  %5257 = vmatmul.msk.bf16.gmra.mxu0 %vm1251_vm12, %v2765_v12  ;;  %v5456_v12 = vld [vmem:[#allocation2 + $0xc0] sm:$0xff]  ;;  %v3694_v9 = vshll.u32 %v6478_v23, 16  ;;  %v3016_v61 = vsel %vm6101_vm0, %v3014_v55, %v3015_v6  ;;  %v2766_v59 = vpack.c.b16 %v2750_v28, %v2749_v17  ;;  %v3701_v17 = vrot.slane %v3699_v47, 4 }
 0x1a8   : > { %v1920_v20 = vpop.f32.mrf.mxu2  ;;  %v6475_v4 = vadd.f32 %v2857_v33, %v2266_v35  ;;  %v3691_v33 = vor.u32 %v3690_v56, %v3686_v49  ;;  %v6495_v56 = vld [vmem:[#allocation2 + $0x28] sm:$0xf] }
 0x1a9   : > { %v1979_v19 = vadd.f32 %v1920_v20, %v1569_v22  ;;  %v3696_v8 = vrot.slane %v3694_v9, 5  ;;  %v3708_v53 = vshll.u32 %v6495_v56, 16 }
 0x1aa   : > { %5275 = vmatmul.msk.bf16.vlgmr.msra.gmra.mxu1 %vm1251_vm12, %v3148_v36  ;;  %v1571_v36 = vadd.f32 %v1570_v45, %v6281_v48  ;;  %v3119_v45 = vunpack.c.l.b16 %v3016_v61  ;;  %v3692_v20 = vrot.slane %v3691_v33, 4  ;;  %v4351_v33 = vrot.slane %v4349_v51, 4 }
 0x1ac   : > { %v2859_v24 = vpop.f32.mrf.mxu0 }
 0x1ad   : > { %v2206_v60 = vpop.f32.mrf.mxu3 }
 0x1ae   : > { %v2267_v50 = vadd.f32 %v2206_v60, %v1978_v62  ;;  %v3013_v62 = vsel %vm6101_vm0, %v5260_v58, %v3012_v2  ;;  %v3687_v60 = vsel %vm5807_vm13, %v3682_v16, %v3686_v49  ;;  %v3702_v2 = vshll.u32 %v3629_v32, 16 }
 0x1af   : > { %v6486_v63 = vpop.f32.mrf.mxu1  ;;  %v3118_v48 = vunpack.c.l.b16 %v3013_v62  ;;  %v4352_v58 = vrot.slane %v6478_v23, 5  ;;  %v5544_v62 = vld [vmem:[#allocation2 + $0x2c] sm:$0x1] }
 0x1b0   : > { %v1922_v35 = vpop.f32.mrf.mxu2  ;;  %v6488_v22 = vadd.f32 %v2859_v24, %v2267_v50  ;;  %v1574_v50 = vadd.f32 %v1573_v1, %v6205_v5  ;;  %v4059_v5 = vunpack.c.l.b16 %v3687_v60  ;;  %v3704_v28 = vrot.slane %v3702_v2, 5 }
 0x1b1   : > { %v1980_v18 = vadd.f32 %v1922_v35, %v1571_v36  ;;  %v3149_v39 = vpack.c.b16 %v3119_v45, %v3118_v48  ;;  %v3712_v36 = vshrl.u32 %v6495_v56, 16  ;;  %v6513_v35 = vld [vmem:[#allocation2 + $0x2c] sm:$0x1]  ;;  %v3022_v61 = vrot.slane %v5544_v62, 5  ;;  %v6532_v62 = vld [vmem:[#allocation2 + $0x34] sm:$0xf] }
 0x1b2   : > { %5242 = vmatmul.msk.bf16.gmra.mxu3 %vm1251_vm12, %v5456_v12  ;;  %v3697_v12 = vsel %vm5807_vm13, %v3692_v20, %v3696_v8  ;;  %v4353_v23 = vsel %vm6101_vm0, %v4351_v33, %v4352_v58  ;;  %v5545_v8 = vld [vmem:[#allocation2 + $0x28] sm:$0xf]  ;;  %v3718_v60 = vshll.u32 %v6513_v35, 16 }
 0x1b3   : > { %v4060_v1 = vunpack.c.l.b16 %v3697_v12  ;;  %v3714_v16 = vrot.slane %v3712_v36, 4  ;;  %v3019_v32 = vrot.slane %v5545_v8, 5  ;;  %v4461_v12 = vunpack.c.l.b16 %v4353_v23 }
 0x1b4   : > { %v2862_v25 = vpop.f32.mrf.mxu0 }
 0x1b5   : > { %v2209_v24 = vpop.f32.mrf.mxu3  ;;  %5355 = vmatmul.msk.bf16.vlgmr.msra.gmra.mxu2 %vm1251_vm12, %v5457_v40  ;;  %v3710_v40 = vrot.slane %v3708_v53, 5 }
 0x1b6   : > { %v2268_v6 = vadd.f32 %v2209_v24, %v1979_v19  ;;  %v5387_v19 = vrot.slane %v4283_v3, 9  ;;  %v3705_v24 = vor.u32 %v3704_v28, %v3701_v17  ;;  %v1576_v3 = vadd.f32 %v6486_v63, %v6211_v26 }
 0x1b7   : > { %v6504_v9 = vpop.f32.mrf.mxu1  ;;  %5258 = vmatmul.msk.bf16.gmra.mxu0 %vm1251_vm12, %v2766_v59  ;;  %v3720_v17 = vrot.slane %v3718_v60, 5  ;;  %v3732_v60 = vshll.u32 %v6532_v62, 16 }
 0x1b8   : > { %v1925_v49 = vpop.f32.mrf.mxu2  ;;  %v6509_v7 = vadd.f32 %v2862_v25, %v2268_v6  ;;  %v4350_v20 = vsel %vm6101_vm0, %v5387_v19, %v4349_v51  ;;  %v4091_v25 = vpack.c.b16 %v4060_v1, %v4059_v5  ;;  %v2941_v6 = vld [vmem:[#allocation2 + $0x24] sm:$0xe]  ;;  %v3706_v26 = vrot.slane %v3705_v24, 4  ;;  %v3632_v5 = vld [vmem:[#allocation2 + $0x30] sm:$0xf] }
 0x1b9   : > { %v1981_v55 = vadd.f32 %v1925_v49, %v1574_v50  ;;  %v5261_v2 = vrot.slane %v2941_v6, 9  ;;  %v3021_v50 = vrot.slane %v3019_v32, 4  ;;  %v4460_v51 = vunpack.c.l.b16 %v4350_v20  ;;  %v4284_v20 = vld [vmem:[#allocation2 + $0x24] sm:$0xe] }
 0x1ba   : > { %5276 = vmatmul.msk.bf16.gmra.mxu1 %vm1251_vm12, %v3149_v39  ;;  %v3715_v39 = vor.u32 %v3714_v16, %v3710_v40  ;;  %v4356_v16 = vrot.slane %v6495_v56, 5  ;;  %v3723_v23 = vshrl.u32 %v3632_v5, 16  ;;  %v3736_v6 = vshrl.u32 %v6532_v62, 16 }
 0x1bb   : > { %v3020_v19 = vsel %vm6101_vm0, %v5261_v2, %v3019_v32  ;;  %v3023_v33 = vsel %vm6101_vm0, %v3021_v50, %v3022_v61  ;;  %v4492_v28 = vpack.c.b16 %v4461_v12, %v4460_v51  ;;  %v3726_v61 = vshll.u32 %v3632_v5, 16 }
 0x1bc   : > { %v2864_v48 = vpop.f32.mrf.mxu0  ;;  %v3120_v63 = vunpack.c.l.b16 %v3020_v19  ;;  %v3121_v58 = vunpack.c.l.b16 %v3023_v33  ;;  %v3716_v1 = vrot.slane %v3715_v39, 4  ;;  %v3711_v32 = vsel %vm5807_vm13, %v3706_v26, %v3710_v40  ;;  %v5546_v33 = vld [vmem:[#allocation2 + $0x38] sm:$0x1] }
 0x1bd   : > { %v2211_v45 = vpop.f32.mrf.mxu3  ;;  %v4359_v40 = vrot.slane %v6513_v35, 5  ;;  %v4061_v51 = vunpack.c.l.b16 %v3711_v32  ;;  %v3738_v19 = vrot.slane %v3736_v6, 4  ;;  %v3029_v26 = vrot.slane %v5546_v33, 5 }
 0x1be   : > { %v2269_v59 = vadd.f32 %v2211_v45, %v1980_v18  ;;  %v5458_v18 = vld [vmem:[#allocation2 + $0x24] sm:$0xff]  ;;  %v3721_v56 = vsel %vm5807_vm13, %v3716_v1, %v3720_v17  ;;  %v5547_v17 = vld [vmem:[#allocation2 + $0x34] sm:$0xf] }
 0x1bf   : > { %v6522_v47 = vpop.f32.mrf.mxu1  ;;  %v4062_v12 = vunpack.c.l.b16 %v3721_v56 }
 0x1c0   : > { %v1927_v53 = vpop.f32.mrf.mxu2  ;;  %v6524_v36 = vadd.f32 %v2864_v48, %v2269_v59  ;;  %v3150_v59 = vpack.c.b16 %v3121_v58, %v3120_v63 }
 0x1c1   : > { %v1982_v49 = vadd.f32 %v1927_v53, %v1576_v3  ;;  %v5388_v3 = vrot.slane %v4284_v20, 9  ;;  %v6550_v53 = vld [vmem:[#allocation2 + $0x38] sm:$0x1] }
 0x1c2   : > { %5371 = vmatmul.msk.bf16.vlgmr.msra.gmra.mxu3 %vm1251_vm12, %v4091_v25  ;;  %v1579_v25 = vadd.f32 %v6504_v9, %v6229_v52  ;;  %v3725_v52 = vrot.slane %v3723_v23, 4  ;;  %v3728_v9 = vrot.slane %v3726_v61, 5  ;;  %v3742_v20 = vshll.u32 %v6550_v53, 16  ;;  %v2942_v23 = vld [vmem:[#allocation2 + $0x30] sm:$0xe] }
 0x1c3   : > { %v4357_v5 = vsel %vm6101_vm0, %v5388_v3, %v4356_v16  ;;  %v1581_v61 = vadd.f32 %v6522_v47, %v6240_v29 }
 0x1c4   : > { %v2867_v48 = vpop.f32.mrf.mxu0  ;;  %v3729_v1 = vor.u32 %v3728_v9, %v3725_v52  ;;  %v3744_v9 = vrot.slane %v3742_v20, 5 }
 0x1c5   : > { %v2214_v45 = vpop.f32.mrf.mxu3  ;;  %5356 = vmatmul.msk.bf16.gmra.mxu2 %vm1251_vm12, %v5458_v18  ;;  %v3734_v18 = vrot.slane %v3732_v60, 5 }
 0x1c6   : > { %v2270_v8 = vadd.f32 %v2214_v45, %v1981_v55  ;;  %v4358_v55 = vrot.slane %v4356_v16, 4  ;;  %v4092_v45 = vpack.c.b16 %v4062_v12, %v4061_v51  ;;  %v4462_v16 = vunpack.c.l.b16 %v4357_v5  ;;  %v3635_v51 = vld [vmem:[#allocation2 + $0x3c] sm:$0xf] }
 0x1c7   : > { %v6541_v24 = vpop.f32.mrf.mxu1  ;;  %5403 = vmatmul.msk.bf16.vlgmr.msra.gmra.mxu0 %vm1251_vm12, %v4492_v28  ;;  %v3026_v28 = vrot.slane %v5547_v17, 5  ;;  %v4363_v5 = vrot.slane %v6532_v62, 5  ;;  %v3747_v17 = vshrl.u32 %v3635_v51, 16 }
 0x1c8   : > { %v1930_v39 = vpop.f32.mrf.mxu2  ;;  %v6546_v2 = vadd.f32 %v2867_v48, %v2270_v8  ;;  %v4360_v35 = vsel %vm6101_vm0, %v4358_v55, %v4359_v40  ;;  %v3739_v8 = vor.u32 %v3738_v19, %v3734_v18  ;;  %v5459_v55 = vld [vmem:[#allocation2 + $0x30] sm:$0xff]  ;;  %v6568_v19 = vld [vmem:[#allocation2 + $0x40] sm:$0xf] }
 0x1c9   : > { %v1983_v50 = vadd.f32 %v1930_v39, %v1579_v25  ;;  %v3028_v25 = vrot.slane %v3026_v28, 4  ;;  %v4463_v56 = vunpack.c.l.b16 %v4360_v35  ;;  %v4285_v35 = vld [vmem:[#allocation2 + $0x30] sm:$0xe] }
 0x1ca   : > { %5277 = vmatmul.msk.bf16.gmra.mxu1 %vm1251_vm12, %v3150_v59  ;;  %v5262_v59 = vrot.slane %v2942_v23, 9  ;;  %v3740_v52 = vrot.slane %v3739_v8, 4  ;;  %v3756_v23 = vshll.u32 %v6568_v19, 16  ;;  %v4365_v8 = vrot.slane %v4363_v5, 4 }
 0x1cb   : > { %v3030_v40 = vsel %vm6101_vm0, %v3028_v25, %v3029_v26  ;;  %v4493_v12 = vpack.c.b16 %v4463_v56, %v4462_v16  ;;  %v3749_v16 = vrot.slane %v3747_v17, 4 }
 0x1cc   : > { %v2869_v63 = vpop.f32.mrf.mxu0  ;;  %v3027_v39 = vsel %vm6101_vm0, %v5262_v59, %v3026_v28  ;;  %v3123_v47 = vunpack.c.l.b16 %v3030_v40  ;;  %v3750_v28 = vshll.u32 %v3635_v51, 16  ;;  %v4366_v59 = vrot.slane %v6550_v53, 5 }
 0x1cd   : > { %v2216_v58 = vpop.f32.mrf.mxu3  ;;  %v3122_v29 = vunpack.c.l.b16 %v3027_v39  ;;  %v5548_v39 = vld [vmem:[#allocation2 + $0x44] sm:$0x1] }
 0x1ce   : > { %v2271_v48 = vadd.f32 %v2216_v58, %v1982_v49  ;;  %v3730_v49 = vrot.slane %v3729_v1, 4  ;;  %v3752_v56 = vrot.slane %v3750_v28, 5  ;;  %v3036_v40 = vrot.slane %v5548_v39, 5  ;;  %v6606_v39 = vld [vmem:[#allocation2 + $0x4c] sm:$0xf] }
 0x1cf   : > { %v6559_v32 = vpop.f32.mrf.mxu1  ;;  %v3151_v1 = vpack.c.b16 %v3123_v47, %v3122_v29  ;;  %v4367_v53 = vsel %vm6101_vm0, %v4365_v8, %v4366_v59 }
 0x1d0   : > { %v1932_v60 = vpop.f32.mrf.mxu2  ;;  %v6561_v6 = vadd.f32 %v2869_v63, %v2271_v48  ;;  %v3735_v58 = vsel %vm5807_vm13, %v3730_v49, %v3734_v18  ;;  %v1584_v48 = vadd.f32 %v6541_v24, %v6259_v13  ;;  %v5389_v18 = vrot.slane %v4285_v35, 9 }
 0x1d1   : > { %v1984_v3 = vadd.f32 %v1932_v60, %v1581_v61  ;;  %v3760_v61 = vshrl.u32 %v6568_v19, 16  ;;  %v4063_v13 = vunpack.c.l.b16 %v3735_v58  ;;  %v6587_v60 = vld [vmem:[#allocation2 + $0x44] sm:$0x1]  ;;  %v1586_v35 = vadd.f32 %v6559_v32, %v6279_v43 }
 0x1d2   : > { %5372 = vmatmul.msk.bf16.gmra.mxu3 %vm1251_vm12, %v4092_v45  ;;  %v3745_v45 = vsel %vm5807_vm13, %v3740_v52, %v3744_v9  ;;  %v4364_v52 = vsel %vm6101_vm0, %v5389_v18, %v4363_v5  ;;  %v5549_v9 = vld [vmem:[#allocation2 + $0x40] sm:$0xf]  ;;  %v3766_v58 = vshll.u32 %v6587_v60, 16 }
 0x1d3   : > { %v4064_v24 = vunpack.c.l.b16 %v3745_v45  ;;  %v3762_v49 = vrot.slane %v3760_v61, 4  ;;  %v3033_v51 = vrot.slane %v5549_v9, 5  ;;  %v4464_v5 = vunpack.c.l.b16 %v4364_v52  ;;  %v4286_v52 = vld [vmem:[#allocation2 + $0x3c] sm:$0xe] }
 0x1d4   : > { %v2872_v33 = vpop.f32.mrf.mxu0  ;;  %v4465_v45 = vunpack.c.l.b16 %v4367_v53 }
 0x1d5   : > { %v2219_v63 = vpop.f32.mrf.mxu3  ;;  %5357 = vmatmul.msk.bf16.gmra.mxu2 %vm1251_vm12, %v5459_v55  ;;  %v3758_v55 = vrot.slane %v3756_v23, 5 }
 0x1d6   : > { %v2272_v26 = vadd.f32 %v2219_v63, %v1983_v50  ;;  %v3753_v63 = vor.u32 %v3752_v56, %v3749_v16  ;;  %v3768_v16 = vrot.slane %v3766_v58, 5  ;;  %v4494_v56 = vpack.c.b16 %v4465_v45, %v4464_v5 }
 0x1d7   : > { %v6578_v20 = vpop.f32.mrf.mxu1  ;;  %5404 = vmatmul.msk.bf16.gmra.mxu0 %vm1251_vm12, %v4493_v12  ;;  %v3780_v58 = vshll.u32 %v6606_v39, 16 }
 0x1d8   : > { %v1935_v62 = vpop.f32.mrf.mxu2  ;;  %v6583_v50 = vadd.f32 %v2872_v33, %v2272_v26  ;;  %v4093_v33 = vpack.c.b16 %v4064_v24, %v4063_v13  ;;  %v2943_v26 = vld [vmem:[#allocation2 + $0x3c] sm:$0xe]  ;;  %v3754_v43 = vrot.slane %v3753_v63, 4  ;;  %v3638_v13 = vld [vmem:[#allocation2 + $0x48] sm:$0xf] }
 0x1d9   : > { %v1985_v25 = vadd.f32 %v1935_v62, %v1584_v48  ;;  %v5263_v28 = vrot.slane %v2943_v26, 9  ;;  %v3035_v48 = vrot.slane %v3033_v51, 4  ;;  %v3771_v53 = vshrl.u32 %v3638_v13, 16 }
 0x1da   : > { %5278 = vmatmul.msk.bf16.gmra.mxu1 %vm1251_vm12, %v3151_v1  ;;  %v3763_v1 = vor.u32 %v3762_v49, %v3758_v55  ;;  %v4370_v49 = vrot.slane %v6568_v19, 5  ;;  %v3784_v26 = vshrl.u32 %v6606_v39, 16 }
 0x1db   : > { %v3034_v18 = vsel %vm6101_vm0, %v5263_v28, %v3033_v51  ;;  %v3037_v8 = vsel %vm6101_vm0, %v3035_v48, %v3036_v40  ;;  %v3774_v40 = vshll.u32 %v3638_v13, 16  ;;  %v3759_v51 = vsel %vm5807_vm13, %v3754_v43, %v3758_v55 }
 0x1dc   : > { %v2874_v29 = vpop.f32.mrf.mxu0  ;;  %v3124_v32 = vunpack.c.l.b16 %v3034_v18  ;;  %v3125_v59 = vunpack.c.l.b16 %v3037_v8  ;;  %v3764_v24 = vrot.slane %v3763_v1, 4  ;;  %v4373_v55 = vrot.slane %v6587_v60, 5  ;;  %v5550_v8 = vld [vmem:[#allocation2 + $0x50] sm:$0x1] }
 0x1dd   : > { %v2221_v47 = vpop.f32.mrf.mxu3  ;;  %v4065_v5 = vunpack.c.l.b16 %v3759_v51  ;;  %v3786_v18 = vrot.slane %v3784_v26, 4  ;;  %v3043_v43 = vrot.slane %v5550_v8, 5 }
 0x1de   : > { %v2273_v12 = vadd.f32 %v2221_v47, %v1984_v3  ;;  %v5460_v3 = vld [vmem:[#allocation2 + $0x3c] sm:$0xff]  ;;  %v3769_v19 = vsel %vm5807_vm13, %v3764_v24, %v3768_v16  ;;  %v5551_v16 = vld [vmem:[#allocation2 + $0x4c] sm:$0xf] }
 0x1df   : > { %v6596_v17 = vpop.f32.mrf.mxu1  ;;  %v4066_v45 = vunpack.c.l.b16 %v3769_v19 }
 0x1e0   : > { %v1937_v23 = vpop.f32.mrf.mxu2  ;;  %v6598_v61 = vadd.f32 %v2874_v29, %v2273_v12  ;;  %v3152_v12 = vpack.c.b16 %v3125_v59, %v3124_v32 }
 0x1e1   : > { %v1986_v62 = vadd.f32 %v1937_v23, %v1586_v35  ;;  %v5390_v35 = vrot.slane %v4286_v52, 9  ;;  %v6624_v23 = vld [vmem:[#allocation2 + $0x50] sm:$0x1] }
 0x1e2   : > { %5373 = vmatmul.msk.bf16.gmra.mxu3 %vm1251_vm12, %v4093_v33  ;;  %v1589_v33 = vadd.f32 %v6578_v20, %v6290_v27  ;;  %v3773_v27 = vrot.slane %v3771_v53, 4  ;;  %v3776_v20 = vrot.slane %v3774_v40, 5  ;;  %v3790_v52 = vshll.u32 %v6624_v23, 16  ;;  %v2944_v53 = vld [vmem:[#allocation2 + $0x48] sm:$0xe] }
 0x1e3   : > { %v4371_v13 = vsel %vm6101_vm0, %v5390_v35, %v4370_v49  ;;  %v1591_v40 = vadd.f32 %v6596_v17, %v6306_v0 }
 0x1e4   : > { %v2877_v29 = vpop.f32.mrf.mxu0  ;;  %v3777_v24 = vor.u32 %v3776_v20, %v3773_v27  ;;  %v3792_v20 = vrot.slane %v3790_v52, 5 }
 0x1e5   : > { %v2224_v47 = vpop.f32.mrf.mxu3  ;;  %5358 = vmatmul.msk.bf16.gmra.mxu2 %vm1251_vm12, %v5460_v3  ;;  %v3782_v3 = vrot.slane %v3780_v58, 5 }
 0x1e6   : > { %v2274_v9 = vadd.f32 %v2224_v47, %v1985_v25  ;;  %v4372_v25 = vrot.slane %v4370_v49, 4  ;;  %v4094_v47 = vpack.c.b16 %v4066_v45, %v4065_v5  ;;  %v4466_v49 = vunpack.c.l.b16 %v4371_v13  ;;  %v3641_v5 = vld [vmem:[#allocation2 + $0x54] sm:$0xf] }
 0x1e7   : > { %v6615_v63 = vpop.f32.mrf.mxu1  ;;  %5405 = vmatmul.msk.bf16.gmra.mxu0 %vm1251_vm12, %v4494_v56  ;;  %v3040_v56 = vrot.slane %v5551_v16, 5  ;;  %v4377_v13 = vrot.slane %v6606_v39, 5  ;;  %v3795_v16 = vshrl.u32 %v3641_v5, 16 }
 0x1e8   : > { %v1940_v1 = vpop.f32.mrf.mxu2  ;;  %v6620_v28 = vadd.f32 %v2877_v29, %v2274_v9  ;;  %v4374_v60 = vsel %vm6101_vm0, %v4372_v25, %v4373_v55  ;;  %v3787_v9 = vor.u32 %v3786_v18, %v3782_v3  ;;  %v5461_v25 = vld [vmem:[#allocation2 + $0x48] sm:$0xff]  ;;  %v6642_v18 = vld [vmem:[#allocation2 + $0x58] sm:$0xf] }
 0x1e9   : > { %v1987_v48 = vadd.f32 %v1940_v1, %v1589_v33  ;;  %v3042_v33 = vrot.slane %v3040_v56, 4  ;;  %v4467_v19 = vunpack.c.l.b16 %v4374_v60  ;;  %v4287_v60 = vld [vmem:[#allocation2 + $0x48] sm:$0xe] }
 0x1ea   : > { %5279 = vmatmul.msk.bf16.gmra.mxu1 %vm1251_vm12, %v3152_v12  ;;  %v5264_v12 = vrot.slane %v2944_v53, 9  ;;  %v3788_v27 = vrot.slane %v3787_v9, 4  ;;  %v3804_v53 = vshll.u32 %v6642_v18, 16  ;;  %v4379_v9 = vrot.slane %v4377_v13, 4 }
 0x1eb   : > { %v3044_v55 = vsel %vm6101_vm0, %v3042_v33, %v3043_v43  ;;  %v4495_v45 = vpack.c.b16 %v4467_v19, %v4466_v49  ;;  %v3797_v49 = vrot.slane %v3795_v16, 4 }
 0x1ec   : > { %v2879_v32 = vpop.f32.mrf.mxu0  ;;  %v3041_v1 = vsel %vm6101_vm0, %v5264_v12, %v3040_v56  ;;  %v3127_v17 = vunpack.c.l.b16 %v3044_v55  ;;  %v3798_v56 = vshll.u32 %v3641_v5, 16  ;;  %v4380_v12 = vrot.slane %v6624_v23, 5 }
 0x1ed   : > { %v2226_v59 = vpop.f32.mrf.mxu3  ;;  %v3126_v0 = vunpack.c.l.b16 %v3041_v1  ;;  %v5552_v1 = vld [vmem:[#allocation2 + $0x5c] sm:$0x1] }
 0x1ee   : > { %v2275_v29 = vadd.f32 %v2226_v59, %v1986_v62  ;;  %v3778_v62 = vrot.slane %v3777_v24, 4  ;;  %v3800_v19 = vrot.slane %v3798_v56, 5  ;;  %v3050_v55 = vrot.slane %v5552_v1, 5 }
 0x1ef   : > { %v6633_v51 = vpop.f32.mrf.mxu1  ;;  %v3153_v24 = vpack.c.b16 %v3127_v17, %v3126_v0  ;;  %v4381_v23 = vsel %vm6101_vm0, %v4379_v9, %v4380_v12  ;;  %v3644_v12 = vld [vmem:[#allocation2 + $0x60] sm:$0xf]  ;;  %v4384_v1 = vrot.slane %v6642_v18, 5 }
 0x1f0   : > { %v1942_v58 = vpop.f32.mrf.mxu2  ;;  %v6635_v26 = vadd.f32 %v2879_v32, %v2275_v29  ;;  %v3783_v59 = vsel %vm5807_vm13, %v3778_v62, %v3782_v3  ;;  %v1594_v29 = vadd.f32 %v6615_v63, %v6216_v38  ;;  %v5391_v3 = vrot.slane %v4287_v60, 9 }
 0x1f1   : > { %v1988_v35 = vadd.f32 %v1942_v58, %v1591_v40  ;;  %v3808_v40 = vshrl.u32 %v6642_v18, 16  ;;  %v4067_v38 = vunpack.c.l.b16 %v3783_v59  ;;  %v6661_v58 = vld [vmem:[#allocation2 + $0x5c] sm:$0x1]  ;;  %v1596_v60 = vadd.f32 %v6633_v51, %v6234_v11 }
 0x1f2   : > { %5374 = vmatmul.msk.bf16.gmra.mxu3 %vm1251_vm12, %v4094_v47  ;;  %v3793_v47 = vsel %vm5807_vm13, %v3788_v27, %v3792_v20  ;;  %v4378_v27 = vsel %vm6101_vm0, %v5391_v3, %v4377_v13  ;;  %v5553_v20 = vld [vmem:[#allocation2 + $0x58] sm:$0xf]  ;;  %v3814_v59 = vshll.u32 %v6661_v58, 16 }
 0x1f3   : > { %v4068_v63 = vunpack.c.l.b16 %v3793_v47  ;;  %v3810_v62 = vrot.slane %v3808_v40, 4  ;;  %v3047_v5 = vrot.slane %v5553_v20, 5  ;;  %v4468_v13 = vunpack.c.l.b16 %v4378_v27  ;;  %v4288_v27 = vld [vmem:[#allocation2 + $0x54] sm:$0xe] }
 0x1f4   : > { %v2882_v8 = vpop.f32.mrf.mxu0  ;;  %v4469_v47 = vunpack.c.l.b16 %v4381_v23  ;;  %v3819_v23 = vshrl.u32 %v3644_v12, 16 }
 0x1f5   : > { %v2229_v32 = vpop.f32.mrf.mxu3  ;;  %5359 = vmatmul.msk.bf16.gmra.mxu2 %vm1251_vm12, %v5461_v25  ;;  %v3806_v25 = vrot.slane %v3804_v53, 5 }
 0x1f6   : > { %v2276_v43 = vadd.f32 %v2229_v32, %v1987_v48  ;;  %v3801_v32 = vor.u32 %v3800_v19, %v3797_v49  ;;  %v3816_v49 = vrot.slane %v3814_v59, 5  ;;  %v6679_v19 = vld [vmem:[#allocation2 + $0x64] sm:$0xf] }
 0x1f7   : > { %v6652_v52 = vpop.f32.mrf.mxu1  ;;  %5406 = vmatmul.msk.bf16.gmra.mxu0 %vm1251_vm12, %v4495_v45 }
 0x1f8   : > { %v1945_v39 = vpop.f32.mrf.mxu2  ;;  %v6657_v48 = vadd.f32 %v2882_v8, %v2276_v43  ;;  %v4095_v8 = vpack.c.b16 %v4068_v63, %v4067_v38  ;;  %v2945_v43 = vld [vmem:[#allocation2 + $0x54] sm:$0xe]  ;;  %v3802_v38 = vrot.slane %v3801_v32, 4  ;;  %v1599_v32 = vadd.f32 %v6652_v52, %v6253_v44 }
 0x1f9   : > { %v1989_v33 = vadd.f32 %v1945_v39, %v1594_v29  ;;  %v5265_v56 = vrot.slane %v2945_v43, 9  ;;  %v3049_v29 = vrot.slane %v3047_v5, 4 }
 0x1fa   : > { %5280 = vmatmul.msk.bf16.gmra.mxu1 %vm1251_vm12, %v3153_v24  ;;  %v3811_v24 = vor.u32 %v3810_v62, %v3806_v25  ;;  %v4496_v62 = vpack.c.b16 %v4469_v47, %v4468_v13  ;;  %v3807_v59 = vsel %vm5807_vm13, %v3802_v38, %v3806_v25  ;;  %v3821_v47 = vrot.slane %v3819_v23, 4 }
 0x1fb   : > { %v3048_v3 = vsel %vm6101_vm0, %v5265_v56, %v3047_v5  ;;  %v3051_v9 = vsel %vm6101_vm0, %v3049_v29, %v3050_v55  ;;  %v3822_v55 = vshll.u32 %v3644_v12, 16  ;;  %v4387_v29 = vrot.slane %v6661_v58, 5 }
 0x1fc   : > { %v2884_v0 = vpop.f32.mrf.mxu0  ;;  %v3128_v11 = vunpack.c.l.b16 %v3048_v3  ;;  %v3129_v51 = vunpack.c.l.b16 %v3051_v9  ;;  %v3812_v63 = vrot.slane %v3811_v24, 4  ;;  %v4069_v52 = vunpack.c.l.b16 %v3807_v59  ;;  %v6700_v3 = vld [vmem:[#allocation2 + $0x68] sm:$0x1] }
 0x1fd   : > { %v2231_v17 = vpop.f32.mrf.mxu3  ;;  %v3824_v44 = vrot.slane %v3822_v55, 5  ;;  %v5554_v9 = vld [vmem:[#allocation2 + $0x68] sm:$0x1]  ;;  %v3838_v23 = vshll.u32 %v6700_v3, 16  ;;  %v2946_v55 = vld [vmem:[#allocation2 + $0x60] sm:$0xe] }
 0x1fe   : > { %v2277_v45 = vadd.f32 %v2231_v17, %v1988_v35  ;;  %v5462_v35 = vld [vmem:[#allocation2 + $0x54] sm:$0xff]  ;;  %v3154_v5 = vpack.c.b16 %v3129_v51, %v3128_v11  ;;  %v3817_v18 = vsel %vm5807_vm13, %v3812_v63, %v3816_v49  ;;  %v3057_v11 = vrot.slane %v5554_v9, 5  ;;  %v5555_v49 = vld [vmem:[#allocation2 + $0x64] sm:$0xf] }
 0x1ff   : > { %v6670_v16 = vpop.f32.mrf.mxu1  ;;  %v3825_v63 = vor.u32 %v3824_v44, %v3821_v47  ;;  %v3840_v44 = vrot.slane %v3838_v23, 5  ;;  %v4391_v9 = vrot.slane %v6679_v19, 5 }
 0x200   : > { %v1947_v53 = vpop.f32.mrf.mxu2  ;;  %v6672_v40 = vadd.f32 %v2884_v0, %v2277_v45  ;;  %v3828_v45 = vshll.u32 %v6679_v19, 16 }
 0x201   : > { %v1990_v39 = vadd.f32 %v1947_v53, %v1596_v60  ;;  %v5392_v60 = vrot.slane %v4288_v27, 9  ;;  %v4070_v53 = vunpack.c.l.b16 %v3817_v18  ;;  %v3647_v18 = vld [vmem:[#allocation2 + $0x6c] sm:$0xf] }
 0x202   : > { %5375 = vmatmul.msk.bf16.gmra.mxu3 %vm1251_vm12, %v4095_v8  ;;  %v3832_v8 = vshrl.u32 %v6679_v19, 16  ;;  %v6698_v25 = vrot.slane %v3828_v45, 5  ;;  %v5266_v45 = vrot.slane %v2946_v55, 9  ;;  %v4393_v55 = vrot.slane %v4391_v9, 4 }
 0x203   : > { %v4385_v38 = vsel %vm6101_vm0, %v5392_v60, %v4384_v1 }
 0x204   : > { %v2887_v0 = vpop.f32.mrf.mxu0 }
 0x205   : > { %v2234_v17 = vpop.f32.mrf.mxu3  ;;  %5360 = vmatmul.msk.bf16.gmra.mxu2 %vm1251_vm12, %v5462_v35  ;;  %v3834_v35 = vrot.slane %v3832_v8, 4  ;;  %v4470_v8 = vunpack.c.l.b16 %v4385_v38  ;;  %v3846_v38 = vshll.u32 %v3647_v18, 16 }
 0x206   : > { %v2278_v20 = vadd.f32 %v2234_v17, %v1989_v33  ;;  %v4386_v33 = vrot.slane %v4384_v1, 4  ;;  %v4096_v17 = vpack.c.b16 %v4070_v53, %v4069_v52 }
 0x207   : > { %v6691_v43 = vpop.f32.mrf.mxu1  ;;  %5407 = vmatmul.msk.bf16.gmra.mxu0 %vm1251_vm12, %v4496_v62  ;;  %v3054_v62 = vrot.slane %v5555_v49, 5  ;;  %v3835_v27 = vor.u32 %v3834_v35, %v6698_v25  ;;  %v4289_v35 = vld [vmem:[#allocation2 + $0x60] sm:$0xe] }
 0x208   : > { %v1950_v24 = vpop.f32.mrf.mxu2  ;;  %v6694_v56 = vadd.f32 %v2887_v0, %v2278_v20  ;;  %v4388_v58 = vsel %vm6101_vm0, %v4386_v33, %v4387_v29  ;;  %v1601_v20 = vadd.f32 %v6670_v16, %v6265_v21  ;;  %v5463_v33 = vld [vmem:[#allocation2 + $0x60] sm:$0xff]  ;;  %v6718_v21 = vld [vmem:[#allocation2 + $0x70] sm:$0xf]  ;;  %v5393_v19 = vrot.slane %v4289_v35, 9 }
 0x209   : > { %v1991_v13 = vadd.f32 %v1950_v24, %v1599_v32  ;;  %v3056_v1 = vrot.slane %v3054_v62, 4  ;;  %v4471_v32 = vunpack.c.l.b16 %v4388_v58  ;;  %v3826_v24 = vrot.slane %v3825_v63, 4 }
 0x20a   : > { %5281 = vmatmul.msk.bf16.gmra.mxu1 %vm1251_vm12, %v3154_v5  ;;  %v3055_v29 = vsel %vm6101_vm0, %v5266_v45, %v3054_v62  ;;  %v3836_v16 = vrot.slane %v3835_v27, 4  ;;  %v3852_v58 = vshll.u32 %v6718_v21, 16  ;;  %v3856_v63 = vshrl.u32 %v6718_v21, 16 }
 0x20b   : > { %v3058_v47 = vsel %vm6101_vm0, %v3056_v1, %v3057_v11  ;;  %v3130_v52 = vunpack.c.l.b16 %v3055_v29  ;;  %v3831_v62 = vsel %vm5807_vm13, %v3826_v24, %v6698_v25  ;;  %v1604_v23 = vadd.f32 %v6691_v43, %v6285_v57 }
 0x20c   : > { %v2889_v51 = vpop.f32.mrf.mxu0  ;;  %v3131_v53 = vunpack.c.l.b16 %v3058_v47  ;;  %v3854_v25 = vrot.slane %v3852_v58, 5  ;;  %v4071_v24 = vunpack.c.l.b16 %v3831_v62  ;;  %v4392_v57 = vsel %vm6101_vm0, %v5393_v19, %v4391_v9 }
 0x20d   : > { %v2236_v12 = vpop.f32.mrf.mxu3 }
 0x20e   : > { %v2279_v0 = vadd.f32 %v2236_v12, %v1990_v39  ;;  %v4497_v12 = vpack.c.b16 %v4471_v32, %v4470_v8  ;;  %v3155_v27 = vpack.c.b16 %v3131_v53, %v3130_v52  ;;  %v3848_v32 = vrot.slane %v3846_v38, 5  ;;  %v5556_v53 = vld [vmem:[#allocation2 + $0x70] sm:$0xf] }
 0x20f   : > { %v6710_v5 = vpop.f32.mrf.mxu1  ;;  %v3061_v35 = vrot.slane %v5556_v53, 5  ;;  %v4472_v38 = vunpack.c.l.b16 %v4392_v57  ;;  %v6756_v57 = vld [vmem:[#allocation2 + $0x7c] sm:$0xf] }
 0x210   : > { %v1952_v59 = vpop.f32.mrf.mxu2  ;;  %v6712_v60 = vadd.f32 %v2889_v51, %v2279_v0  ;;  %v3843_v51 = vshrl.u32 %v3647_v18, 16 }
 0x211   : > { %v1992_v39 = vadd.f32 %v1952_v59, %v1601_v20  ;;  %v4394_v20 = vrot.slane %v6700_v3, 5  ;;  %v3063_v62 = vrot.slane %v3061_v35, 4 }
 0x212   : > { %5376 = vmatmul.msk.bf16.gmra.mxu3 %vm1251_vm12, %v4096_v17  ;;  %v3841_v17 = vsel %vm5807_vm13, %v3836_v16, %v3840_v44  ;;  %v3845_v1 = vrot.slane %v3843_v51, 4 }
 0x213   : > { %v4072_v29 = vunpack.c.l.b16 %v3841_v17  ;;  %v4395_v43 = vsel %vm6101_vm0, %v4393_v55, %v4394_v20 }
 0x214   : > { %v2892_v49 = vpop.f32.mrf.mxu0  ;;  %v3849_v3 = vor.u32 %v3848_v32, %v3845_v1  ;;  %v4473_v58 = vunpack.c.l.b16 %v4395_v43  ;;  %v5464_v1 = vld [vmem:[#allocation2 + $0x6c] sm:$0xff] }
 0x215   : > { %v2239_v11 = vpop.f32.mrf.mxu3  ;;  %5361 = vmatmul.msk.bf16.gmra.mxu2 %vm1251_vm12, %v5463_v33  ;;  %v6738_v33 = vld [vmem:[#allocation2 + $0x74] sm:$0x1] }
 0x216   : > { %v2280_v0 = vadd.f32 %v2239_v11, %v1991_v13  ;;  %v3858_v13 = vrot.slane %v3856_v63, 4  ;;  %v3862_v16 = vshll.u32 %v6738_v33, 16  ;;  %v2947_v63 = vld [vmem:[#allocation2 + $0x6c] sm:$0xe] }
 0x217   : > { %v6733_v45 = vpop.f32.mrf.mxu1  ;;  %5408 = vmatmul.msk.bf16.gmra.mxu0 %vm1251_vm12, %v4497_v12  ;;  %v4097_v12 = vpack.c.b16 %v4072_v29, %v4071_v24  ;;  %v5267_v11 = vrot.slane %v2947_v63, 9  ;;  %v3650_v24 = vld [vmem:[#allocation2 + $0x78] sm:$0xf]  ;;  %v4498_v29 = vpack.c.b16 %v4473_v58, %v4472_v38 }
 0x218   : > { %v1955_v8 = vpop.f32.mrf.mxu2  ;;  %v6736_v59 = vadd.f32 %v2892_v49, %v2280_v0  ;;  %v3859_v47 = vor.u32 %v3858_v13, %v3854_v25  ;;  %v1606_v49 = vadd.f32 %v6710_v5, %v6300_v37  ;;  %v5557_v0 = vld [vmem:[#allocation2 + $0x74] sm:$0x1]  ;;  %v3864_v55 = vrot.slane %v3862_v16, 5 }
 0x219   : > { %v1993_v18 = vadd.f32 %v1955_v8, %v1604_v23  ;;  %v3064_v17 = vrot.slane %v5557_v0, 5  ;;  %v4398_v8 = vrot.slane %v6718_v21, 5  ;;  %v3062_v32 = vsel %vm6101_vm0, %v5267_v11, %v3061_v35  ;;  %v7270_v11 = vld [vmem:[#allocation6_spill] sm:$0xff] }
 0x21a   : > { %5282 = vmatmul.msk.bf16.gmra.mxu1 %vm1251_vm12, %v3155_v27  ;;  %v3850_v27 = vrot.slane %v3849_v3, 4  ;;  %v3860_v23 = vrot.slane %v3859_v47, 4  ;;  %v3132_v5 = vunpack.c.l.b16 %v3062_v32  ;;  %v4401_v35 = vrot.slane %v6738_v33, 5 }
 0x21b   : > { %v3065_v37 = vsel %vm6101_vm0, %v3063_v62, %v3064_v17  ;;  %v4400_v53 = vrot.slane %v4398_v8, 4  ;;  %v3870_v38 = vshll.u32 %v3650_v24, 16  ;;  %v1609_v62 = vadd.f32 %v6733_v45, %v7270_v11  ;;  %v3653_v11 = vld [vmem:[#allocation2 + $0x84] sm:$0xf] }
 0x21c   : > { %v2894_v44 = vpop.f32.mrf.mxu0  ;;  %v3133_v13 = vunpack.c.l.b16 %v3065_v37  ;;  %v3855_v43 = vsel %vm5807_vm13, %v3850_v27, %v3854_v25  ;;  %v3865_v21 = vsel %vm5807_vm13, %v3860_v23, %v3864_v55  ;;  %v3880_v25 = vshrl.u32 %v6756_v57, 16 }
 0x21d   : > { %v2241_v52 = vpop.f32.mrf.mxu3  ;;  %v4074_v33 = vunpack.c.l.b16 %v3865_v21  ;;  %v3872_v45 = vrot.slane %v3870_v38, 5 }
 0x21e   : > { %v2281_v51 = vadd.f32 %v2241_v52, %v1992_v39  ;;  %v4290_v39 = vld [vmem:[#allocation2 + $0x6c] sm:$0xe]  ;;  %v3156_v63 = vpack.c.b16 %v3133_v13, %v3132_v5 }
 0x21f   : > { %v6748_v9 = vpop.f32.mrf.mxu1  ;;  %v5394_v3 = vrot.slane %v4290_v39, 9  ;;  %v6780_v39 = vld [vmem:[#allocation2 + $0x80] sm:$0x1] }
 0x220   : > { %v1957_v19 = vpop.f32.mrf.mxu2  ;;  %v6762_v47 = vadd.f32 %v2894_v44, %v2281_v51  ;;  %v4073_v51 = vunpack.c.l.b16 %v3855_v43 }
 0x221   : > { %v1994_v20 = vadd.f32 %v1957_v19, %v1606_v49  ;;  %v3876_v49 = vshll.u32 %v6756_v57, 16  ;;  %v4402_v19 = vsel %vm6101_vm0, %v4400_v53, %v4401_v35  ;;  %v7271_v53 = vld [vmem:[#allocation7_spill] sm:$0xff] }
 0x222   : > { %5377 = vmatmul.msk.bf16.gmra.mxu3 %vm1251_vm12, %v4097_v12  ;;  %v3867_v12 = vshrl.u32 %v3650_v24, 16  ;;  %v4098_v5 = vpack.c.b16 %v4074_v33, %v4073_v51  ;;  %v4475_v24 = vunpack.c.l.b16 %v4402_v19  ;;  %v1611_v35 = vadd.f32 %v6748_v9, %v7271_v53  ;;  %v5465_v51 = vld [vmem:[#allocation2 + $0x78] sm:$0xff]  ;;  %v6791_v33 = vld [vmem:[#allocation2 + $0x88] sm:$0xf] }
 0x223   : > { %v3878_v55 = vrot.slane %v3876_v49, 5  ;;  %v3900_v53 = vshll.u32 %v6791_v33, 16 }
 0x224   : > { %v2897_v16 = vpop.f32.mrf.mxu0  ;;  %v3869_v23 = vrot.slane %v3867_v12, 4 }
 0x225   : > { %v2244_v52 = vpop.f32.mrf.mxu3  ;;  %5362 = vmatmul.msk.bf16.gmra.mxu2 %vm1251_vm12, %v5464_v1  ;;  %v3882_v1 = vrot.slane %v3880_v25, 4 }
 0x226   : > { %v2282_v58 = vadd.f32 %v2244_v52, %v1993_v18  ;;  %v4399_v18 = vsel %vm6101_vm0, %v5394_v3, %v4398_v8  ;;  %v3873_v21 = vor.u32 %v3872_v45, %v3869_v23  ;;  %v2948_v52 = vld [vmem:[#allocation2 + $0x78] sm:$0xe] }
 0x227   : > { %v6770_v44 = vpop.f32.mrf.mxu1  ;;  %5409 = vmatmul.msk.bf16.gmra.mxu0 %vm1251_vm12, %v4498_v29  ;;  %v4474_v13 = vunpack.c.l.b16 %v4399_v18  ;;  %v5558_v29 = vld [vmem:[#allocation2 + $0x7c] sm:$0xf]  ;;  %v3883_v3 = vor.u32 %v3882_v1, %v3878_v55  ;;  %v5268_v38 = vrot.slane %v2948_v52, 9  ;;  %v3894_v52 = vshll.u32 %v3653_v11, 16 }
 0x228   : > { %v1960_v0 = vpop.f32.mrf.mxu2  ;;  %v6773_v17 = vadd.f32 %v2897_v16, %v2282_v58  ;;  %v3068_v43 = vrot.slane %v5558_v29, 5  ;;  %v3886_v16 = vshll.u32 %v6780_v39, 16  ;;  %v3874_v23 = vrot.slane %v3873_v21, 4  ;;  %v4291_v29 = vld [vmem:[#allocation2 + $0x78] sm:$0xe] }
 0x229   : > { %v1995_v27 = vadd.f32 %v1960_v0, %v1609_v62  ;;  %v4499_v9 = vpack.c.b16 %v4475_v24, %v4474_v13  ;;  %v3884_v45 = vrot.slane %v3883_v3, 4 }
 0x22a   : > { %5283 = vmatmul.msk.bf16.gmra.mxu1 %vm1251_vm12, %v3156_v63  ;;  %v3070_v58 = vrot.slane %v3068_v43, 4  ;;  %v5559_v63 = vld [vmem:[#allocation2 + $0x80] sm:$0x1]  ;;  %v3888_v1 = vrot.slane %v3886_v16, 5  ;;  %v3879_v21 = vsel %vm5807_vm13, %v3874_v23, %v3878_v55  ;;  %v5395_v16 = vrot.slane %v4291_v29, 9 }
 0x22b   : > { %v3071_v49 = vrot.slane %v5559_v63, 5  ;;  %v3655_v55 = vld [vmem:[#allocation2 + $0x8c] sm:$0x1]  ;;  %v5560_v29 = vld [vmem:[#allocation2 + $0x88] sm:$0xf] }
 0x22c   : > { %v2899_v32 = vpop.f32.mrf.mxu0  ;;  %v3889_v3 = vsel %vm5807_vm13, %v3884_v45, %v3888_v1  ;;  %v3910_v23 = vshll.u32 %v3655_v55, 16 }
 0x22d   : > { %v2246_v37 = vpop.f32.mrf.mxu3  ;;  %v3072_v0 = vsel %vm6101_vm0, %v3070_v58, %v3071_v49 }
 0x22e   : > { %v2283_v8 = vadd.f32 %v2246_v37, %v1994_v20  ;;  %v3069_v20 = vsel %vm6101_vm0, %v5268_v38, %v3068_v43  ;;  %v3135_v19 = vunpack.c.l.b16 %v3072_v0  ;;  %v3891_v37 = vshrl.u32 %v3653_v11, 16 }
 0x22f   : > { %v6785_v12 = vpop.f32.mrf.mxu1  ;;  %v3134_v18 = vunpack.c.l.b16 %v3069_v20  ;;  %v3904_v43 = vshrl.u32 %v6791_v33, 16  ;;  %v4075_v20 = vunpack.c.l.b16 %v3879_v21  ;;  %v4076_v0 = vunpack.c.l.b16 %v3889_v3 }
 0x230   : > { %v1962_v25 = vpop.f32.mrf.mxu2  ;;  %v3893_v49 = vrot.slane %v3891_v37, 4 }
 0x231   : > { %v1996_v62 = vadd.f32 %v1962_v25, %v1611_v35  ;;  %v6796_v35 = vadd.f32 %v2899_v32, %v2283_v8  ;;  %v3157_v24 = vpack.c.b16 %v3135_v19, %v3134_v18  ;;  %v3896_v8 = vrot.slane %v3894_v52, 5 }
 0x232   : > { %5378 = vmatmul.msk.bf16.gmra.mxu3 %vm1251_vm12, %v4098_v5  ;;  %v4405_v5 = vrot.slane %v6756_v57, 5  ;;  %v6807_v25 = vrot.slane %v3900_v53, 5  ;;  %v3906_v11 = vrot.slane %v3904_v43, 4  ;;  %v3075_v52 = vrot.slane %v5560_v29, 5  ;;  %v6823_v29 = vld [vmem:[#allocation2 + $0x94] sm:$0xf] }
 0x233   : > { %v3897_v19 = vor.u32 %v3896_v8, %v3893_v49  ;;  %v3308_v53 = vadd.f32 %v6770_v44, %v6334_v34  ;;  %v4099_v43 = vpack.c.b16 %v4076_v0, %v4075_v20  ;;  %v3656_v8 = vld [vmem:[#allocation2 + $0x90] sm:$0xf]  ;;  %v5466_v44 = vld [vmem:[#allocation2 + $0x84] sm:$0xff] }
 0x234   : > { %v2902_v38 = vpop.f32.mrf.mxu0  ;;  %v4406_v18 = vsel %vm6101_vm0, %v5395_v16, %v4405_v5  ;;  %v3077_v3 = vrot.slane %v3075_v52, 4  ;;  %v5561_v16 = vld [vmem:[#allocation2 + $0x8c] sm:$0x1] }
 0x235   : > { %v2249_v58 = vpop.f32.mrf.mxu3  ;;  %5363 = vmatmul.msk.bf16.gmra.mxu2 %vm1251_vm12, %v5465_v51  ;;  %v4408_v51 = vrot.slane %v6780_v39, 5  ;;  %v3078_v49 = vrot.slane %v5561_v16, 5  ;;  %v3918_v16 = vshll.u32 %v3656_v8, 16 }
 0x236   : > { %v2284_v13 = vadd.f32 %v2249_v58, %v1995_v27  ;;  %v4407_v27 = vrot.slane %v4405_v5, 4  ;;  %v4292_v58 = vld [vmem:[#allocation2 + $0x84] sm:$0xe]  ;;  %v4412_v5 = vrot.slane %v6791_v33, 5 }
 0x237   : > { %v6804_v63 = vpop.f32.mrf.mxu1  ;;  %5410 = vmatmul.msk.bf16.gmra.mxu0 %vm1251_vm12, %v4499_v9  ;;  %v3907_v9 = vor.u32 %v3906_v11, %v6807_v25  ;;  %v5396_v20 = vrot.slane %v4292_v58, 9  ;;  %v3079_v0 = vsel %vm6101_vm0, %v3077_v3, %v3078_v49 }
 0x238   : > { %v3514_v32 = vpop.f32.mrf.mxu2  ;;  %v6809_v57 = vadd.f32 %v2902_v38, %v2284_v13  ;;  %v4409_v37 = vsel %vm6101_vm0, %v4407_v27, %v4408_v51  ;;  %v4476_v38 = vunpack.c.l.b16 %v4406_v18  ;;  %v2949_v13 = vld [vmem:[#allocation2 + $0x84] sm:$0xe]  ;;  %v3898_v51 = vrot.slane %v3897_v19, 4 }
 0x239   : > { %v5269_v21 = vrot.slane %v2949_v13, 9  ;;  %v4477_v11 = vunpack.c.l.b16 %v4409_v37  ;;  %v3594_v34 = vadd.f32 %v3514_v32, %v3308_v53  ;;  %v3137_v13 = vunpack.c.l.b16 %v3079_v0 }
 0x23a   : > { %7272 = vst [vmem:[#allocation6_spill] sm:$0xff] %v6809_v57  ;;  %5284 = vmatmul.msk.bf16.gmra.mxu1 %vm1251_vm12, %v3157_v24  ;;  %v3915_v37 = vshrl.u32 %v3656_v8, 16  ;;  %v4414_v19 = vrot.slane %v4412_v5, 4  ;;  %v3928_v32 = vshrl.u32 %v6823_v29, 16 }
 0x23b   : > { %v3076_v33 = vsel %vm6101_vm0, %v5269_v21, %v3075_v52  ;;  %v4500_v53 = vpack.c.b16 %v4477_v11, %v4476_v38 }
 0x23c   : > { %v2904_v45 = vpop.f32.mrf.mxu0  ;;  %v3136_v18 = vunpack.c.l.b16 %v3076_v33  ;;  %v3917_v38 = vrot.slane %v3915_v37, 4 }
 0x23d   : > { %v2251_v1 = vpop.f32.mrf.mxu3 }
 0x23e   : > { %v2285_v39 = vadd.f32 %v2251_v1, %v1996_v62  ;;  %v3908_v62 = vrot.slane %v3907_v9, 4  ;;  %v3912_v1 = vrot.slane %v3910_v23, 5  ;;  %v4415_v9 = vrot.slane %v3655_v55, 5 }
 0x23f   : > { %v6821_v24 = vpop.f32.mrf.mxu1  ;;  %v3924_v23 = vshll.u32 %v6823_v29, 16  ;;  %v4413_v55 = vsel %vm6101_vm0, %v5396_v20, %v4412_v5  ;;  %v3158_v49 = vpack.c.b16 %v3137_v13, %v3136_v18  ;;  %v6858_v20 = vld [vmem:[#allocation2 + $0x98] sm:$0x1] }
 0x240   : > { %v3516_v27 = vpop.f32.mrf.mxu2  ;;  %v6832_v58 = vadd.f32 %v2904_v45, %v2285_v39  ;;  %v3913_v21 = vsel %vm5807_vm13, %v3908_v62, %v3912_v1  ;;  %v3920_v45 = vrot.slane %v3918_v16, 5  ;;  %v4416_v39 = vsel %vm6101_vm0, %v4414_v19, %v4415_v9  ;;  %v5562_v19 = vld [vmem:[#allocation2 + $0x94] sm:$0xf] }
 0x241   : > { %v6846_v11 = vrot.slane %v3924_v23, 5  ;;  %v4078_v1 = vunpack.c.l.b16 %v3913_v21  ;;  %v4479_v18 = vunpack.c.l.b16 %v4416_v39  ;;  %v3082_v9 = vrot.slane %v5562_v19, 5 }
 0x242   : > { %5379 = vmatmul.msk.bf16.gmra.mxu3 %vm1251_vm12, %v4099_v43  ;;  %v3903_v43 = vsel %vm5807_vm13, %v3898_v51, %v6807_v25  ;;  %v3309_v51 = vadd.f32 %v6785_v12, %v6347_v31  ;;  %v3934_v12 = vshll.u32 %v6858_v20, 16 }
 0x243   : > { %v4077_v5 = vunpack.c.l.b16 %v3903_v43 }
 0x244   : > { %v4568_v57 = vpop.f32.mrf.mxu0  ;;  %v3595_v0 = vadd.f32 %v3516_v27, %v3309_v51  ;;  %v3936_v51 = vrot.slane %v3934_v12, 5 }
 0x245   : > { %v4171_v52 = vpop.f32.mrf.mxu3  ;;  %5364 = vmatmul.msk.bf16.gmra.mxu2 %vm1251_vm12, %v5466_v44  ;;  %v3930_v44 = vrot.slane %v3928_v32, 4  ;;  %v4100_v16 = vpack.c.b16 %v4078_v1, %v4077_v5  ;;  %v3310_v32 = vadd.f32 %v6804_v63, %v6353_v54  ;;  %v4419_v5 = vrot.slane %v6823_v29, 5  ;;  %v3659_v1 = vld [vmem:[#allocation2 + $0x9c] sm:$0xf]  ;;  %v5467_v63 = vld [vmem:[#allocation2 + $0x90] sm:$0xff] }
 0x246   : > { %v4251_v3 = vadd.f32 %v4171_v52, %v3594_v34  ;;  %v4478_v34 = vunpack.c.l.b16 %v4413_v55  ;;  %v2950_v52 = vld [vmem:[#allocation2 + $0x90] sm:$0xe]  ;;  %v3942_v19 = vshll.u32 %v3659_v1, 16 }
 0x247   : > { %v6844_v8 = vpop.f32.mrf.mxu1  ;;  %5411 = vmatmul.msk.bf16.gmra.mxu0 %vm1251_vm12, %v4500_v53  ;;  %v3931_v31 = vor.u32 %v3930_v44, %v6846_v11  ;;  %v5270_v55 = vrot.slane %v2950_v52, 9 }
 0x248   : > { %v4648_v25 = vadd.f32 %v4568_v57, %v4251_v3  ;;  %v3519_v62 = vpop.f32.mrf.mxu2  ;;  %v3921_v57 = vor.u32 %v3920_v45, %v3917_v38  ;;  %v4501_v27 = vpack.c.b16 %v4479_v18, %v4478_v34  ;;  %v3084_v3 = vrot.slane %v3082_v9, 4  ;;  %v6875_v18 = vld [vmem:[#allocation2 + $0xa0] sm:$0xf] }
 0x249   : > { %v3932_v43 = vrot.slane %v3931_v31, 4  ;;  %v3596_v54 = vadd.f32 %v3519_v62, %v3310_v32  ;;  %v3083_v34 = vsel %vm6101_vm0, %v5270_v55, %v3082_v9  ;;  %v3948_v32 = vshll.u32 %v6875_v18, 16 }
 0x24a   : > { %v4854_v33 = vpack.c.bf16 %v4648_v25, %v4648_v25  ;;  %5285 = vmatmul.msk.bf16.gmra.mxu1 %vm1251_vm12, %v3158_v49  ;;  %v3922_v53 = vrot.slane %v3921_v57, 4  ;;  %v5563_v49 = vld [vmem:[#allocation2 + $0x98] sm:$0x1]  ;;  %v4749_v45 = vmul.f32 %v4648_v25, %v4648_v25  ;;  %v3138_v29 = vunpack.c.l.b16 %v3083_v34 }
 0x24b   : > { %v3085_v38 = vrot.slane %v5563_v49, 5  ;;  %v3952_v52 = vshrl.u32 %v6875_v18, 16 }
 0x24c   : > { %4886 = vst.msk [vmem:[%s6856_s6] sm:$0xf] %vm215_vm5, %v4854_v33  ;;  %v4570_v13 = vpop.f32.mrf.mxu0  ;;  %v4680_v33 = vsel %vm1251_vm12, %v4648_v25, 0.0  ;;  %v4293_v25 = vld [vmem:[#allocation2 + $0x90] sm:$0xe] }
 0x24d   : > { %v4173_v37 = vpop.f32.mrf.mxu3  ;;  %v5397_v34 = vrot.slane %v4293_v25, 9 }
 0x24e   : > { %v4252_v23 = vadd.f32 %v4173_v37, %v3595_v0  ;;  %v3086_v0 = vsel %vm6101_vm0, %v3084_v3, %v3085_v38  ;;  %v3939_v37 = vshrl.u32 %v3659_v1, 16  ;;  %v3937_v1 = vsel %vm5807_vm13, %v3932_v43, %v3936_v51 }
 0x24f   : > { %v6867_v21 = vpop.f32.mrf.mxu1  ;;  %v3139_v62 = vunpack.c.l.b16 %v3086_v0  ;;  %v4421_v0 = vrot.slane %v4419_v5, 4 }
 0x250   : > { %v4649_v39 = vadd.f32 %v4570_v13, %v4252_v23  ;;  %v3521_v44 = vpop.f32.mrf.mxu2  ;;  %v4781_v23 = vsel %vm1251_vm12, %v4749_v45, 0.0  ;;  %v3927_v45 = vsel %vm5807_vm13, %v3922_v53, %v6846_v11  ;;  %v3954_v11 = vrot.slane %v3952_v52, 4 }
 0x251   : > { %v4079_v53 = vunpack.c.l.b16 %v3927_v45 }
 0x252   : > { %v4681_v57 = vsel %vm1251_vm12, %v4649_v39, 0.0  ;;  %v4750_v31 = vmul.f32 %v4649_v39, %v4649_v39  ;;  %v4855_v12 = vpack.c.bf16 %v4649_v39, %v4649_v39  ;;  %5380 = vmatmul.msk.bf16.gmra.mxu3 %vm1251_vm12, %v4100_v16  ;;  %v7273_v16 = vld [vmem:[#allocation8_spill] sm:$0xff] }
 0x253   : > { %v4682_v13 = vadd.f32 %v4681_v57, %v4680_v33  ;;  %v3311_v38 = vadd.f32 %v6821_v24, %v7273_v16  ;;  %v3159_v33 = vpack.c.b16 %v3139_v62, %v3138_v29  ;;  %v4422_v57 = vrot.slane %v6858_v20, 5  ;;  %v6901_v20 = vld [vmem:[#allocation2 + $0xa4] sm:$0x1] }
 0x254   : > { %v4782_v9 = vsel %vm1251_vm12, %v4750_v31, 0.0  ;;  %4887 = vst.msk [vmem:[%s6856_s6 + $0x4] sm:$0xf] %vm215_vm5, %v4855_v12  ;;  %v4573_v3 = vpop.f32.mrf.mxu0  ;;  %v3941_v12 = vrot.slane %v3939_v37, 4  ;;  %v3958_v16 = vshll.u32 %v6901_v20, 16 }
 0x255   : > { %v4783_v55 = vadd.f32 %v4782_v9, %v4781_v23  ;;  %v4176_v49 = vpop.f32.mrf.mxu3  ;;  %5365 = vmatmul.msk.bf16.gmra.mxu2 %vm1251_vm12, %v5467_v63  ;;  %v6897_v23 = vrot.slane %v3948_v32, 5  ;;  %v4080_v9 = vunpack.c.l.b16 %v3937_v1  ;;  %v3597_v25 = vadd.f32 %v3521_v44, %v3311_v38  ;;  %v5564_v38 = vld [vmem:[#allocation2 + $0xa0] sm:$0xf] }
 0x256   : > { %v4253_v39 = vadd.f32 %v4176_v49, %v3596_v54  ;;  %v3944_v54 = vrot.slane %v3942_v19, 5  ;;  %v4423_v37 = vsel %vm6101_vm0, %v4421_v0, %v4422_v57 }
 0x257   : > { %v6894_v31 = vpop.f32.mrf.mxu1  ;;  %5412 = vmatmul.msk.bf16.gmra.mxu0 %vm1251_vm12, %v4501_v27  ;;  %v4420_v27 = vsel %vm6101_vm0, %v5397_v34, %v4419_v5  ;;  %v3955_v52 = vor.u32 %v3954_v11, %v6897_v23  ;;  %v4101_v45 = vpack.c.b16 %v4080_v9, %v4079_v53  ;;  %v4481_v1 = vunpack.c.l.b16 %v4423_v37  ;;  %v7274_v34 = vld [vmem:[#allocation9_spill] sm:$0xff] }
 0x258   : > { %v4650_v24 = vadd.f32 %v4573_v3, %v4253_v39  ;;  %v3524_v63 = vpop.f32.mrf.mxu2  ;;  %v3945_v32 = vor.u32 %v3944_v54, %v3941_v12  ;;  %v4480_v5 = vunpack.c.l.b16 %v4420_v27  ;;  %v3312_v0 = vadd.f32 %v6844_v8, %v7274_v34  ;;  %v5565_v54 = vld [vmem:[#allocation2 + $0xa4] sm:$0x1] }
 0x259   : > { %v3960_v53 = vrot.slane %v3958_v16, 5 }
 0x25a   : > { %v4683_v43 = vsel %vm1251_vm12, %v4650_v24, 0.0  ;;  %v4751_v51 = vmul.f32 %v4650_v24, %v4650_v24  ;;  %v4856_v29 = vpack.c.bf16 %v4650_v24, %v4650_v24  ;;  %5286 = vmatmul.msk.bf16.gmra.mxu1 %vm1251_vm12, %v3159_v33  ;;  %v2951_v33 = vld [vmem:[#allocation2 + $0x9c] sm:$0xe] }
 0x25b   : > { %v4684_v62 = vadd.f32 %v4683_v43, %v4682_v13  ;;  %v3089_v13 = vrot.slane %v5564_v38, 5  ;;  %v5271_v12 = vrot.slane %v2951_v33, 9  ;;  %v5468_v38 = vld [vmem:[#allocation2 + $0x9c] sm:$0xff] }
 0x25c   : > { %v4784_v19 = vsel %vm1251_vm12, %v4751_v51, 0.0  ;;  %4888 = vst.msk [vmem:[%s6856_s6 + $0x8] sm:$0xf] %vm215_vm5, %v4856_v29  ;;  %v4575_v44 = vpop.f32.mrf.mxu0  ;;  %v3946_v51 = vrot.slane %v3945_v32, 4  ;;  %v3956_v29 = vrot.slane %v3955_v52, 4  ;;  %v4502_v52 = vpack.c.b16 %v4481_v1, %v4480_v5 }
 0x25d   : > { %v4785_v3 = vadd.f32 %v4784_v19, %v4783_v55  ;;  %v4178_v49 = vpop.f32.mrf.mxu3  ;;  %v3091_v24 = vrot.slane %v3089_v13, 4  ;;  %v3092_v55 = vrot.slane %v5565_v54, 5  ;;  %v3598_v19 = vadd.f32 %v3524_v63, %v3312_v0  ;;  %v6922_v32 = vld [vmem:[#allocation2 + $0xac] sm:$0xf] }
 0x25e   : > { %v4254_v39 = vadd.f32 %v4178_v49, %v3597_v25  ;;  %v3090_v9 = vsel %vm6101_vm0, %v5271_v12, %v3089_v13  ;;  %v3662_v25 = vld [vmem:[#allocation2 + $0xa8] sm:$0xf]  ;;  %v4426_v13 = vrot.slane %v6875_v18, 5  ;;  %v3951_v1 = vsel %vm5807_vm13, %v3946_v51, %v6897_v23 }
 0x25f   : > { %v6914_v57 = vpop.f32.mrf.mxu1  ;;  %v3093_v8 = vsel %vm6101_vm0, %v3091_v24, %v3092_v55  ;;  %v3963_v34 = vshrl.u32 %v3662_v25, 16  ;;  %v3966_v0 = vshll.u32 %v3662_v25, 16  ;;  %v3961_v55 = vsel %vm5807_vm13, %v3956_v29, %v3960_v53  ;;  %v6942_v29 = vld [vmem:[#allocation2 + $0xb0] sm:$0x1] }
 0x260   : > { %v4651_v11 = vadd.f32 %v4575_v44, %v4254_v39  ;;  %v3526_v43 = vpop.f32.mrf.mxu2  ;;  %v3140_v44 = vunpack.c.l.b16 %v3090_v9  ;;  %v4294_v39 = vld [vmem:[#allocation2 + $0x9c] sm:$0xe]  ;;  %v3141_v16 = vunpack.c.l.b16 %v3093_v8  ;;  %v4429_v8 = vrot.slane %v6901_v20, 5 }
 0x261   : > { %v5398_v9 = vrot.slane %v4294_v39, 9  ;;  %v3968_v23 = vrot.slane %v3966_v0, 5  ;;  %v4081_v51 = vunpack.c.l.b16 %v3951_v1  ;;  %v5566_v1 = vld [vmem:[#allocation2 + $0xac] sm:$0xf] }
 0x262   : > { %v4685_v27 = vsel %vm1251_vm12, %v4651_v11, 0.0  ;;  %v4752_v37 = vmul.f32 %v4651_v11, %v4651_v11  ;;  %v4857_v49 = vpack.c.bf16 %v4651_v11, %v4651_v11  ;;  %5381 = vmatmul.msk.bf16.gmra.mxu3 %vm1251_vm12, %v4101_v45  ;;  %v3972_v45 = vshll.u32 %v6922_v32, 16  ;;  %v7275_v11 = vld [vmem:[#allocation10_spill] sm:$0xff] }
 0x263   : > { %v4686_v63 = vadd.f32 %v4685_v27, %v4684_v62  ;;  %v3976_v62 = vshrl.u32 %v6922_v32, 16  ;;  %v3160_v18 = vpack.c.b16 %v3141_v16, %v3140_v44 }
 0x264   : > { %v4786_v33 = vsel %vm1251_vm12, %v4752_v37, 0.0  ;;  %4889 = vst.msk [vmem:[%s6856_s6 + $0xc] sm:$0xf] %vm215_vm5, %v4857_v49  ;;  %v4578_v24 = vpop.f32.mrf.mxu0  ;;  %v3965_v37 = vrot.slane %v3963_v34, 4  ;;  %v4082_v49 = vunpack.c.l.b16 %v3961_v55  ;;  %v6944_v53 = vrot.slane %v3972_v45, 5 }
 0x265   : > { %v4787_v12 = vadd.f32 %v4786_v33, %v4785_v3  ;;  %v4181_v54 = vpop.f32.mrf.mxu3  ;;  %5366 = vmatmul.msk.bf16.gmra.mxu2 %vm1251_vm12, %v5468_v38  ;;  %v3313_v3 = vadd.f32 %v6867_v21, %v7275_v11  ;;  %v3978_v21 = vrot.slane %v3976_v62, 4  ;;  %v4427_v33 = vsel %vm6101_vm0, %v5398_v9, %v4426_v13  ;;  %v2952_v9 = vld [vmem:[#allocation2 + $0xa8] sm:$0xe] }
 0x266   : > { %v4255_v5 = vadd.f32 %v4181_v54, %v3598_v19  ;;  %v4428_v19 = vrot.slane %v4426_v13, 4  ;;  %v3982_v54 = vshll.u32 %v6942_v29, 16  ;;  %v4102_v11 = vpack.c.b16 %v4082_v49, %v4081_v51  ;;  %v3665_v49 = vld [vmem:[#allocation2 + $0xb4] sm:$0xf] }
 0x267   : > { %v6939_v38 = vpop.f32.mrf.mxu1  ;;  %5413 = vmatmul.msk.bf16.gmra.mxu0 %vm1251_vm12, %v4502_v52  ;;  %v3599_v16 = vadd.f32 %v3526_v43, %v3313_v3  ;;  %v3979_v43 = vor.u32 %v3978_v21, %v6944_v53  ;;  %v4482_v3 = vunpack.c.l.b16 %v4427_v33 }
 0x268   : > { %v4652_v25 = vadd.f32 %v4578_v24, %v4255_v5  ;;  %v3529_v27 = vpop.f32.mrf.mxu2  ;;  %v4430_v0 = vsel %vm6101_vm0, %v4428_v19, %v4429_v8  ;;  %v3969_v24 = vor.u32 %v3968_v23, %v3965_v37  ;;  %v5272_v8 = vrot.slane %v2952_v9, 9  ;;  %v5567_v37 = vld [vmem:[#allocation2 + $0xb0] sm:$0x1] }
 0x269   : > { %v3984_v21 = vrot.slane %v3982_v54, 5  ;;  %v3990_v9 = vshll.u32 %v3665_v49, 16 }
 0x26a   : > { %v4687_v44 = vsel %vm1251_vm12, %v4652_v25, 0.0  ;;  %v4753_v20 = vmul.f32 %v4652_v25, %v4652_v25  ;;  %v4858_v39 = vpack.c.bf16 %v4652_v25, %v4652_v25  ;;  %5287 = vmatmul.msk.bf16.gmra.mxu1 %vm1251_vm12, %v3160_v18  ;;  %v7276_v18 = vld [vmem:[#allocation11_spill] sm:$0xff]  ;;  %v4483_v25 = vunpack.c.l.b16 %v4430_v0 }
 0x26b   : > { %v4688_v52 = vadd.f32 %v4687_v44, %v4686_v63  ;;  %v3096_v63 = vrot.slane %v5566_v1, 5  ;;  %v3314_v13 = vadd.f32 %v6894_v31, %v7276_v18  ;;  %v5469_v1 = vld [vmem:[#allocation2 + $0xa8] sm:$0xff] }
 0x26c   : > { %v4788_v34 = vsel %vm1251_vm12, %v4753_v20, 0.0  ;;  %4890 = vst.msk [vmem:[%s6856_s6 + $0x10] sm:$0xf] %vm215_vm5, %v4858_v39  ;;  %v4580_v62 = vpop.f32.mrf.mxu0  ;;  %v3970_v39 = vrot.slane %v3969_v24, 4  ;;  %v6967_v24 = vld [vmem:[#allocation2 + $0xb8] sm:$0xf]  ;;  %v4503_v54 = vpack.c.b16 %v4483_v25, %v4482_v3 }
 0x26d   : > { %v4789_v45 = vadd.f32 %v4788_v34, %v4787_v12  ;;  %v4183_v5 = vpop.f32.mrf.mxu3  ;;  %v3098_v19 = vrot.slane %v3096_v63, 4  ;;  %v3099_v12 = vrot.slane %v5567_v37, 5  ;;  %v3600_v34 = vadd.f32 %v3529_v27, %v3314_v13 }
 0x26e   : > { %v4256_v55 = vadd.f32 %v4183_v5, %v3599_v16  ;;  %v3980_v16 = vrot.slane %v3979_v43, 4  ;;  %v3097_v31 = vsel %vm6101_vm0, %v5272_v8, %v3096_v63  ;;  %v4433_v63 = vrot.slane %v6922_v32, 5 }
 0x26f   : > { %v6959_v44 = vpop.f32.mrf.mxu1  ;;  %v3100_v51 = vsel %vm6101_vm0, %v3098_v19, %v3099_v12  ;;  %v3987_v13 = vshrl.u32 %v3665_v49, 16  ;;  %v3975_v25 = vsel %vm5807_vm13, %v3970_v39, %v6944_v53  ;;  %v3992_v53 = vrot.slane %v3990_v9, 5 }
 0x270   : > { %v4653_v23 = vadd.f32 %v4580_v62, %v4256_v55  ;;  %v3531_v20 = vpop.f32.mrf.mxu2  ;;  %v3142_v62 = vunpack.c.l.b16 %v3097_v31  ;;  %v4295_v55 = vld [vmem:[#allocation2 + $0xa8] sm:$0xe]  ;;  %v3143_v43 = vunpack.c.l.b16 %v3100_v51  ;;  %v3985_v12 = vsel %vm5807_vm13, %v3980_v16, %v3984_v21  ;;  %v6987_v21 = vld [vmem:[#allocation2 + $0xbc] sm:$0x1] }
 0x271   : > { %v4436_v31 = vrot.slane %v6942_v29, 5  ;;  %v4083_v39 = vunpack.c.l.b16 %v3975_v25  ;;  %v4006_v9 = vshll.u32 %v6987_v21, 16 }
 0x272   : > { %v4689_v33 = vsel %vm1251_vm12, %v4653_v23, 0.0  ;;  %v4754_v0 = vmul.f32 %v4653_v23, %v4653_v23  ;;  %v4859_v5 = vpack.c.bf16 %v4653_v23, %v4653_v23  ;;  %5382 = vmatmul.msk.bf16.gmra.mxu3 %vm1251_vm12, %v4102_v11  ;;  %v3996_v11 = vshll.u32 %v6967_v24, 16 }
 0x273   : > { %v4690_v27 = vadd.f32 %v4689_v33, %v4688_v52  ;;  %v4000_v52 = vshrl.u32 %v6967_v24, 16  ;;  %v3161_v32 = vpack.c.b16 %v3143_v43, %v3142_v62  ;;  %v5399_v23 = vrot.slane %v4295_v55, 9 }
 0x274   : > { %v4790_v18 = vsel %vm1251_vm12, %v4754_v0, 0.0  ;;  %4891 = vst.msk [vmem:[%s6856_s6 + $0x14] sm:$0xf] %vm215_vm5, %v4859_v5  ;;  %v4583_v19 = vpop.f32.mrf.mxu0  ;;  %v3989_v33 = vrot.slane %v3987_v13, 4  ;;  %v4084_v0 = vunpack.c.l.b16 %v3985_v12  ;;  %v6989_v16 = vrot.slane %v3996_v11, 5 }
 0x275   : > { %v4791_v8 = vadd.f32 %v4790_v18, %v4789_v45  ;;  %v4186_v37 = vpop.f32.mrf.mxu3  ;;  %5367 = vmatmul.msk.bf16.gmra.mxu2 %vm1251_vm12, %v5469_v1  ;;  %v3315_v45 = vadd.f32 %v6914_v57, %v6418_v10  ;;  %v4002_v10 = vrot.slane %v4000_v52, 4  ;;  %v4434_v55 = vsel %vm6101_vm0, %v5399_v23, %v4433_v63  ;;  %v5568_v52 = vld [vmem:[#allocation2 + $0xb8] sm:$0xf] }
 0x276   : > { %v4257_v3 = vadd.f32 %v4186_v37, %v3600_v34  ;;  %v4435_v34 = vrot.slane %v4433_v63, 4  ;;  %v3993_v13 = vor.u32 %v3992_v53, %v3989_v33  ;;  %v3316_v63 = vadd.f32 %v6939_v38, %v6423_v42 }
 0x277   : > { %v6984_v1 = vpop.f32.mrf.mxu1  ;;  %5414 = vmatmul.msk.bf16.gmra.mxu0 %vm1251_vm12, %v4503_v54  ;;  %v3601_v62 = vadd.f32 %v3531_v20, %v3315_v45  ;;  %v4003_v20 = vor.u32 %v4002_v10, %v6989_v16  ;;  %v4103_v25 = vpack.c.b16 %v4084_v0, %v4083_v39  ;;  %v4484_v12 = vunpack.c.l.b16 %v4434_v55  ;;  %v7011_v0 = vld [vmem:[#allocation2 + $0xc4] sm:$0xf] }
 0x278   : > { %v4654_v51 = vadd.f32 %v4583_v19, %v4257_v3  ;;  %v3534_v49 = vpop.f32.mrf.mxu2  ;;  %v4437_v18 = vsel %vm6101_vm0, %v4435_v34, %v4436_v31  ;;  %v5569_v34 = vld [vmem:[#allocation2 + $0xbc] sm:$0x1]  ;;  %v4008_v10 = vrot.slane %v4006_v9, 5 }
 0x279   : > { %v4485_v45 = vunpack.c.l.b16 %v4437_v18  ;;  %v4004_v42 = vrot.slane %v4003_v20, 4 }
 0x27a   : > { %v4691_v57 = vsel %vm1251_vm12, %v4654_v51, 0.0  ;;  %v4755_v29 = vmul.f32 %v4654_v51, %v4654_v51  ;;  %v4860_v5 = vpack.c.bf16 %v4654_v51, %v4654_v51  ;;  %5288 = vmatmul.msk.bf16.gmra.mxu1 %vm1251_vm12, %v3161_v32  ;;  %v2953_v32 = vld [vmem:[#allocation2 + $0xb4] sm:$0xe] }
 0x27b   : > { %v4692_v54 = vadd.f32 %v4691_v57, %v4690_v27  ;;  %v3103_v27 = vrot.slane %v5568_v52, 5  ;;  %v5273_v31 = vrot.slane %v2953_v32, 9  ;;  %v3994_v57 = vrot.slane %v3993_v13, 4 }
 0x27c   : > { %v4792_v43 = vsel %vm1251_vm12, %v4755_v29, 0.0  ;;  %4892 = vst.msk [vmem:[%s6856_s6 + $0x18] sm:$0xf] %vm215_vm5, %v4860_v5  ;;  %v4585_v37 = vpop.f32.mrf.mxu0  ;;  %v4440_v29 = vrot.slane %v6967_v24, 5  ;;  %v3668_v5 = vld [vmem:[#allocation2 + $0xc0] sm:$0xf] }
 0x27d   : > { %v4793_v19 = vadd.f32 %v4792_v43, %v4791_v8  ;;  %v4188_v11 = vpop.f32.mrf.mxu3  ;;  %v3105_v51 = vrot.slane %v3103_v27, 4  ;;  %v3106_v8 = vrot.slane %v5569_v34, 5  ;;  %v5470_v43 = vld [vmem:[#allocation2 + $0xb4] sm:$0xff]  ;;  %v3104_v38 = vsel %vm6101_vm0, %v5273_v31, %v3103_v27 }
 0x27e   : > { %v4258_v3 = vadd.f32 %v4188_v11, %v3601_v62  ;;  %v3602_v62 = vadd.f32 %v3534_v49, %v3316_v63  ;;  %v4296_v24 = vld [vmem:[#allocation2 + $0xb4] sm:$0xe]  ;;  %v3144_v9 = vunpack.c.l.b16 %v3104_v38  ;;  %v4011_v11 = vshrl.u32 %v3668_v5, 16 }
 0x27f   : > { %v7004_v23 = vpop.f32.mrf.mxu1  ;;  %v3107_v39 = vsel %vm6101_vm0, %v3105_v51, %v3106_v8  ;;  %v4014_v20 = vshll.u32 %v3668_v5, 16  ;;  %v4504_v27 = vpack.c.b16 %v4485_v45, %v4484_v12  ;;  %v4024_v63 = vshrl.u32 %v7011_v0, 16 }
 0x280   : > { %v4655_v33 = vadd.f32 %v4585_v37, %v4258_v3  ;;  %v3536_v53 = vpop.f32.mrf.mxu2  ;;  %v3145_v37 = vunpack.c.l.b16 %v3107_v39  ;;  %v4020_v3 = vshll.u32 %v7011_v0, 16  ;;  %v4009_v8 = vsel %vm5807_vm13, %v4004_v42, %v4008_v10 }
 0x281   : > { %v4442_v12 = vrot.slane %v4440_v29, 4  ;;  %v4443_v45 = vrot.slane %v6987_v21, 5  ;;  %v4016_v38 = vrot.slane %v4014_v20, 5  ;;  %v4086_v42 = vunpack.c.l.b16 %v4009_v8 }
 0x282   : > { %v4693_v55 = vsel %vm1251_vm12, %v4655_v33, 0.0  ;;  %v4756_v18 = vmul.f32 %v4655_v33, %v4655_v33  ;;  %v4861_v13 = vpack.c.bf16 %v4655_v33, %v4655_v33  ;;  %5383 = vmatmul.msk.bf16.gmra.mxu3 %vm1251_vm12, %v4103_v25  ;;  %v5400_v25 = vrot.slane %v4296_v24, 9 }
 0x283   : > { %v4694_v49 = vadd.f32 %v4693_v55, %v4692_v54  ;;  %v3999_v54 = vsel %vm5807_vm13, %v3994_v57, %v6989_v16  ;;  %v3162_v33 = vpack.c.b16 %v3145_v37, %v3144_v9  ;;  %v7032_v16 = vrot.slane %v4020_v3, 5  ;;  %v7036_v55 = vld [vmem:[#allocation2 + $0xc8] sm:$0x1] }
 0x284   : > { %v4794_v52 = vsel %vm1251_vm12, %v4756_v18, 0.0  ;;  %4893 = vst.msk [vmem:[%s6856_s6 + $0x1c] sm:$0xf] %vm215_vm5, %v4861_v13  ;;  %v4588_v31 = vpop.f32.mrf.mxu0  ;;  %v4026_v57 = vrot.slane %v4024_v63, 4  ;;  %v4085_v10 = vunpack.c.l.b16 %v3999_v54  ;;  %v4441_v21 = vsel %vm6101_vm0, %v5400_v25, %v4440_v29  ;;  %v2954_v54 = vld [vmem:[#allocation2 + $0xc0] sm:$0xe] }
 0x285   : > { %v4795_v32 = vadd.f32 %v4794_v52, %v4793_v19  ;;  %v4191_v51 = vpop.f32.mrf.mxu3  ;;  %5368 = vmatmul.msk.bf16.gmra.mxu2 %vm1251_vm12, %v5470_v43  ;;  %v4013_v19 = vrot.slane %v4011_v11, 4  ;;  %v4030_v20 = vshll.u32 %v7036_v55, 16  ;;  %v4486_v63 = vunpack.c.l.b16 %v4441_v21 }
 0x286   : > { %v4259_v34 = vadd.f32 %v4191_v51, %v3602_v62  ;;  %v3317_v62 = vadd.f32 %v6959_v44, %v6443_v30  ;;  %v4444_v44 = vsel %vm6101_vm0, %v4442_v12, %v4443_v45  ;;  %v4027_v29 = vor.u32 %v4026_v57, %v7032_v16 }
 0x287   : > { %v7027_v5 = vpop.f32.mrf.mxu1  ;;  %5415 = vmatmul.msk.bf16.gmra.mxu0 %vm1251_vm12, %v4504_v27  ;;  %v4017_v37 = vor.u32 %v4016_v38, %v4013_v19  ;;  %v4104_v25 = vpack.c.b16 %v4086_v42, %v4085_v10  ;;  %v5274_v12 = vrot.slane %v2954_v54, 9  ;;  %v5571_v19 = vld [vmem:[#allocation2 + $0xc8] sm:$0x1]  ;;  %v4032_v57 = vrot.slane %v4030_v20, 5  ;;  %v3671_v10 = vld [vmem:[#allocation2 + $0xcc] sm:$0xf] }
 0x288   : > { %v4656_v43 = vadd.f32 %v4588_v31, %v4259_v34  ;;  %v3539_v39 = vpop.f32.mrf.mxu2  ;;  %v3603_v9 = vadd.f32 %v3536_v53, %v3317_v62  ;;  %v5570_v53 = vld [vmem:[#allocation2 + $0xc4] sm:$0xf]  ;;  %v4487_v34 = vunpack.c.l.b16 %v4444_v44  ;;  %v3113_v38 = vrot.slane %v5571_v19, 5  ;;  %v7057_v44 = vld [vmem:[#allocation2 + $0xd0] sm:$0xf] }
 0x289   : > { %v3110_v31 = vrot.slane %v5570_v53, 5  ;;  %v4018_v8 = vrot.slane %v4017_v37, 4  ;;  %v4028_v62 = vrot.slane %v4027_v29, 4  ;;  %v4297_v29 = vld [vmem:[#allocation2 + $0xc0] sm:$0xe]  ;;  %v4447_v53 = vrot.slane %v7011_v0, 5 }
 0x28a   : > { %v4695_v18 = vsel %vm1251_vm12, %v4656_v43, 0.0  ;;  %v4757_v13 = vmul.f32 %v4656_v43, %v4656_v43  ;;  %v4862_v24 = vpack.c.bf16 %v4656_v43, %v4656_v43  ;;  %5289 = vmatmul.msk.bf16.gmra.mxu1 %vm1251_vm12, %v3162_v33 }
 0x28b   : > { %v4696_v30 = vadd.f32 %v4695_v18, %v4694_v49  ;;  %v3318_v49 = vadd.f32 %v6984_v1, %v6449_v15  ;;  %v3112_v45 = vrot.slane %v3110_v31, 4  ;;  %v5471_v18 = vld [vmem:[#allocation2 + $0xc0] sm:$0xff]  ;;  %v3111_v15 = vsel %vm6101_vm0, %v5274_v12, %v3110_v31 }
 0x28c   : > { %v4796_v11 = vsel %vm1251_vm12, %v4757_v13, 0.0  ;;  %4894 = vst.msk [vmem:[%s6856_s6 + $0x20] sm:$0xf] %vm215_vm5, %v4862_v24  ;;  %v4590_v27 = vpop.f32.mrf.mxu0  ;;  %v4035_v31 = vshrl.u32 %v3671_v10, 16 }
 0x28d   : > { %v4797_v52 = vadd.f32 %v4796_v11, %v4795_v32  ;;  %v4193_v3 = vpop.f32.mrf.mxu3  ;;  %v3604_v21 = vadd.f32 %v3539_v39, %v3318_v49  ;;  %v3114_v1 = vsel %vm6101_vm0, %v3112_v45, %v3113_v38  ;;  %v4505_v39 = vpack.c.b16 %v4487_v34, %v4486_v63 }
 0x28e   : > { %v4260_v51 = vadd.f32 %v4193_v3, %v3603_v9  ;;  %v3146_v9 = vunpack.c.l.b16 %v3111_v15  ;;  %v4023_v11 = vsel %vm5807_vm13, %v4018_v8, %v7032_v16  ;;  %v3147_v20 = vunpack.c.l.b16 %v3114_v1 }
 0x28f   : > { %v7049_v33 = vpop.f32.mrf.mxu1  ;;  %v4033_v3 = vsel %vm5807_vm13, %v4028_v62, %v4032_v57  ;;  %v4038_v63 = vshll.u32 %v3671_v10, 16  ;;  %v4044_v16 = vshll.u32 %v7057_v44, 16  ;;  %v3319_v8 = vadd.f32 %v7004_v23, %v6461_v46 }
 0x290   : > { %v4657_v32 = vadd.f32 %v4590_v27, %v4260_v51  ;;  %v3541_v43 = vpop.f32.mrf.mxu2  ;;  %v3163_v54 = vpack.c.b16 %v3147_v20, %v3146_v9  ;;  %v4087_v12 = vunpack.c.l.b16 %v4023_v11  ;;  %v5401_v45 = vrot.slane %v4297_v29, 9 }
 0x291   : > { %v4449_v38 = vrot.slane %v4447_v53, 4  ;;  %v4037_v57 = vrot.slane %v4035_v31, 4  ;;  %v3605_v10 = vadd.f32 %v3541_v43, %v3319_v8 }
 0x292   : > { %v4697_v42 = vsel %vm1251_vm12, %v4657_v32, 0.0  ;;  %v4758_v13 = vmul.f32 %v4657_v32, %v4657_v32  ;;  %v4863_v24 = vpack.c.bf16 %v4657_v32, %v4657_v32  ;;  %5384 = vmatmul.msk.bf16.gmra.mxu3 %vm1251_vm12, %v4104_v25  ;;  %v4048_v25 = vshrl.u32 %v7057_v44, 16 }
 0x293   : > { %v4698_v37 = vadd.f32 %v4697_v42, %v4696_v30  ;;  %v4450_v32 = vrot.slane %v7036_v55, 5  ;;  %v7079_v42 = vld [vmem:[#allocation2 + $0xd4] sm:$0x1]  ;;  %v4448_v55 = vsel %vm6101_vm0, %v5401_v45, %v4447_v53 }
 0x294   : > { %v4798_v27 = vsel %vm1251_vm12, %v4758_v13, 0.0  ;;  %4895 = vst.msk [vmem:[%s6856_s6 + $0x24] sm:$0xf] %vm215_vm5, %v4863_v24  ;;  %v4593_v49 = vpop.f32.mrf.mxu0  ;;  %v4050_v15 = vrot.slane %v4048_v25, 4  ;;  %v4488_v53 = vunpack.c.l.b16 %v4448_v55  ;;  %v5472_v25 = vld [vmem:[#allocation2 + $0xcc] sm:$0xff] }
 0x295   : > { %v4799_v51 = vadd.f32 %v4798_v27, %v4797_v52  ;;  %v4196_v30 = vpop.f32.mrf.mxu3  ;;  %5369 = vmatmul.msk.bf16.gmra.mxu2 %vm1251_vm12, %v5471_v18  ;;  %v4088_v52 = vunpack.c.l.b16 %v4033_v3  ;;  %v4040_v18 = vrot.slane %v4038_v63, 5  ;;  %v4451_v9 = vsel %vm6101_vm0, %v4449_v38, %v4450_v32 }
 0x296   : > { %v4261_v34 = vadd.f32 %v4196_v30, %v3604_v21  ;;  %v4046_v21 = vrot.slane %v4044_v16, 5  ;;  %v4054_v27 = vshll.u32 %v7079_v42, 16  ;;  %v3320_v30 = vadd.f32 %v7027_v5, %v6475_v4 }
 0x297   : > { %v7073_v19 = vpop.f32.mrf.mxu1  ;;  %5416 = vmatmul.msk.bf16.gmra.mxu0 %vm1251_vm12, %v4505_v39  ;;  %v4041_v20 = vor.u32 %v4040_v18, %v4037_v57  ;;  %v4105_v31 = vpack.c.b16 %v4088_v52, %v4087_v12  ;;  %v4489_v63 = vunpack.c.l.b16 %v4451_v9 }
 0x298   : > { %v4658_v0 = vadd.f32 %v4593_v49, %v4261_v34  ;;  %v3544_v62 = vpop.f32.mrf.mxu2  ;;  %v4051_v43 = vor.u32 %v4050_v15, %v4046_v21  ;;  %v4454_v15 = vrot.slane %v7057_v44, 5  ;;  %v4457_v44 = vrot.slane %v7079_v42, 5 }
 0x299   : > { %v3606_v12 = vadd.f32 %v3544_v62, %v3320_v30  ;;  %v4506_v4 = vpack.c.b16 %v4489_v63, %v4488_v53 }
 0x29a   : > { %v4699_v1 = vsel %vm1251_vm12, %v4658_v0, 0.0  ;;  %v4759_v46 = vmul.f32 %v4658_v0, %v4658_v0  ;;  %v4864_v23 = vpack.c.bf16 %v4658_v0, %v4658_v0  ;;  %5290 = vmatmul.msk.bf16.gmra.mxu1 %vm1251_vm12, %v3163_v54  ;;  %v4052_v34 = vrot.slane %v4051_v43, 4 }
 0x29b   : > { %v4700_v13 = vadd.f32 %v4699_v1, %v4698_v37  ;;  %v4056_v54 = vrot.slane %v4054_v27, 5 }
 0x29c   : > { %v4800_v24 = vsel %vm1251_vm12, %v4759_v46, 0.0  ;;  %4896 = vst.msk [vmem:[%s6856_s6 + $0x28] sm:$0xf] %vm215_vm5, %v4864_v23  ;;  %v4595_v11 = vpop.f32.mrf.mxu0  ;;  %v4298_v46 = vld [vmem:[#allocation2 + $0xcc] sm:$0xe] }
 0x29d   : > { %v4801_v39 = vadd.f32 %v4800_v24, %v4799_v51  ;;  %v4198_v29 = vpop.f32.mrf.mxu3  ;;  %v4042_v51 = vrot.slane %v4041_v20, 4  ;;  %v4057_v62 = vsel %vm5807_vm13, %v4052_v34, %v4056_v54 }
 0x29e   : > { %v4262_v3 = vadd.f32 %v4198_v29, %v3605_v10  ;;  %v4090_v9 = vunpack.c.l.b16 %v4057_v62 }
 0x29f   : > { %v7089_v37 = vpop.f32.mrf.mxu1  ;;  %v4047_v18 = vsel %vm5807_vm13, %v4042_v51, %v4046_v21  ;;  %v4456_v21 = vrot.slane %v4454_v15, 4 }
 0x2a0   : > { %v4659_v49 = vadd.f32 %v4595_v11, %v4262_v3  ;;  %v3546_v16 = vpop.f32.mrf.mxu2  ;;  %v4089_v24 = vunpack.c.l.b16 %v4047_v18 }
 0x2a2   : > { %v4701_v8 = vsel %vm1251_vm12, %v4659_v49, 0.0  ;;  %v4760_v45 = vmul.f32 %v4659_v49, %v4659_v49  ;;  %v4865_v0 = vpack.c.bf16 %v4659_v49, %v4659_v49  ;;  %5385 = vmatmul.msk.bf16.gmra.mxu3 %vm1251_vm12, %v4105_v31  ;;  %v4458_v49 = vsel %vm6101_vm0, %v4456_v21, %v4457_v44 }
 0x2a3   : > { %v4702_v52 = vadd.f32 %v4701_v8, %v4700_v13  ;;  %v3321_v13 = vadd.f32 %v7049_v33, %v6488_v22  ;;  %v4106_v30 = vpack.c.b16 %v4090_v9, %v4089_v24  ;;  %v4491_v51 = vunpack.c.l.b16 %v4458_v49 }
 0x2a4   : > { %v4802_v38 = vsel %vm1251_vm12, %v4760_v45, 0.0  ;;  %4897 = vst.msk [vmem:[%s6856_s6 + $0x2c] sm:$0xf] %vm215_vm5, %v4865_v0  ;;  %v4598_v32 = vpop.f32.mrf.mxu0 }
 0x2a5   : > { %v4803_v5 = vadd.f32 %v4802_v38, %v4801_v39  ;;  %v4201_v57 = vpop.f32.mrf.mxu3  ;;  %5370 = vmatmul.msk.bf16.gmra.mxu2 %vm1251_vm12, %v5472_v25  ;;  %v5402_v39 = vrot.slane %v4298_v46, 9  ;;  %v3607_v20 = vadd.f32 %v3546_v16, %v3321_v13  ;;  %v3322_v16 = vadd.f32 %v7073_v19, %v6509_v7 }
 0x2a6   : > { %v4263_v1 = vadd.f32 %v4201_v57, %v3606_v12  ;;  %v3323_v57 = vadd.f32 %v7089_v37, %v6524_v36 }
 0x2a7   : > { %v3268_v23 = vpop.f32.mrf.mxu1  ;;  %5417 = vmatmul.msk.bf16.gmra.mxu0 %vm1251_vm12, %v4506_v4  ;;  %v4455_v33 = vsel %vm6101_vm0, %v5402_v39, %v4454_v15 }
 0x2a8   : > { %v4660_v10 = vadd.f32 %v4598_v32, %v4263_v1  ;;  %v3549_v55 = vpop.f32.mrf.mxu2  ;;  %v4490_v25 = vunpack.c.l.b16 %v4455_v33  ;;  %v3324_v36 = vadd.f32 %v3268_v23, %v6546_v2 }
 0x2a9   : > { %v3608_v0 = vadd.f32 %v3549_v55, %v3322_v16 }
 0x2aa   : > { %v4703_v11 = vsel %vm1251_vm12, %v4660_v10, 0.0  ;;  %v4761_v41 = vmul.f32 %v4660_v10, %v4660_v10  ;;  %v4866_v29 = vpack.c.bf16 %v4660_v10, %v4660_v10 }
 0x2ab   : > { %v4704_v43 = vadd.f32 %v4703_v11, %v4702_v52  ;;  %v4507_v52 = vpack.c.b16 %v4491_v51, %v4490_v25 }
 0x2ac   : > { %v4804_v27 = vsel %vm1251_vm12, %v4761_v41, 0.0  ;;  %4898 = vst.msk [vmem:[%s6856_s6 + $0x30] sm:$0xf] %vm215_vm5, %v4866_v29  ;;  %v4600_v31 = vpop.f32.mrf.mxu0 }
 0x2ad   : > { %v4805_v3 = vadd.f32 %v4804_v27, %v4803_v5  ;;  %v4203_v22 = vpop.f32.mrf.mxu3 }
 0x2ae   : > { %v4264_v42 = vadd.f32 %v4203_v22, %v3607_v20 }
 0x2af   : > { %v3270_v53 = vpop.f32.mrf.mxu1 }
 0x2b0   : > { %v4661_v63 = vadd.f32 %v4600_v31, %v4264_v42  ;;  %v3551_v34 = vpop.f32.mrf.mxu2  ;;  %v3325_v2 = vadd.f32 %v3270_v53, %v6561_v6 }
 0x2b1   : > { %v3609_v46 = vadd.f32 %v3551_v34, %v3323_v57 }
 0x2b2   : > { %v4705_v54 = vsel %vm1251_vm12, %v4661_v63, 0.0  ;;  %v4762_v8 = vmul.f32 %v4661_v63, %v4661_v63  ;;  %v4867_v45 = vpack.c.bf16 %v4661_v63, %v4661_v63  ;;  %5386 = vmatmul.msk.bf16.gmra.mxu3 %vm1251_vm12, %v4106_v30 }
 0x2b3   : > { %v4706_v14 = vadd.f32 %v4705_v54, %v4704_v43 }
 0x2b4   : > { %v4806_v12 = vsel %vm1251_vm12, %v4762_v8, 0.0  ;;  %4899 = vst.msk [vmem:[%s6856_s6 + $0x34] sm:$0xf] %vm215_vm5, %v4867_v45  ;;  %v4603_v4 = vpop.f32.mrf.mxu0 }
 0x2b5   : > { %v4807_v38 = vadd.f32 %v4806_v12, %v4805_v3  ;;  %v4206_v7 = vpop.f32.mrf.mxu3 }
 0x2b6   : > { %v4265_v19 = vadd.f32 %v4206_v7, %v3608_v0 }
 0x2b7   : > { %v3273_v5 = vpop.f32.mrf.mxu1  ;;  %5418 = vmatmul.msk.bf16.gmra.mxu0 %vm1251_vm12, %v4507_v52 }
 0x2b8   : > { %v4662_v32 = vadd.f32 %v4603_v4, %v4265_v19  ;;  %v3554_v18 = vpop.f32.mrf.mxu2  ;;  %v3326_v12 = vadd.f32 %v3273_v5, %v6583_v50 }
 0x2b9   : > { %v3610_v20 = vadd.f32 %v3554_v18, %v3324_v36 }
 0x2ba   : > { %v4707_v15 = vsel %vm1251_vm12, %v4662_v32, 0.0  ;;  %v4763_v1 = vmul.f32 %v4662_v32, %v4662_v32  ;;  %v4868_v62 = vpack.c.bf16 %v4662_v32, %v4662_v32 }
 0x2bb   : > { %v4708_v10 = vadd.f32 %v4707_v15, %v4706_v14 }
 0x2bc   : > { %v4808_v13 = vsel %vm1251_vm12, %v4763_v1, 0.0  ;;  %4900 = vst.msk [vmem:[%s6856_s6 + $0x38] sm:$0xf] %vm215_vm5, %v4868_v62  ;;  %v4605_v55 = vpop.f32.mrf.mxu0 }
 0x2bd   : > { %v4809_v24 = vadd.f32 %v4808_v13, %v4807_v38  ;;  %v4208_v9 = vpop.f32.mrf.mxu3 }
 0x2be   : > { %v4266_v39 = vadd.f32 %v4208_v9, %v3609_v46 }
 0x2bf   : > { %v3275_v21 = vpop.f32.mrf.mxu1 }
 0x2c0   : > { %v4663_v44 = vadd.f32 %v4605_v55, %v4266_v39  ;;  %v3556_v37 = vpop.f32.mrf.mxu2  ;;  %v3327_v50 = vadd.f32 %v3275_v21, %v6598_v61 }
 0x2c1   : > { %v3611_v25 = vadd.f32 %v3556_v37, %v3325_v2 }
 0x2c2   : > { %v4709_v11 = vsel %vm1251_vm12, %v4663_v44, 0.0  ;;  %v4764_v41 = vmul.f32 %v4663_v44, %v4663_v44  ;;  %v4869_v29 = vpack.c.bf16 %v4663_v44, %v4663_v44 }
 0x2c3   : > { %v4710_v43 = vadd.f32 %v4709_v11, %v4708_v10 }
 0x2c4   : > { %v4810_v27 = vsel %vm1251_vm12, %v4764_v41, 0.0  ;;  %4901 = vst.msk [vmem:[%s6856_s6 + $0x3c] sm:$0xf] %vm215_vm5, %v4869_v29  ;;  %v4608_v31 = vpop.f32.mrf.mxu0 }
 0x2c5   : > { %v4811_v3 = vadd.f32 %v4810_v27, %v4809_v24  ;;  %v4211_v22 = vpop.f32.mrf.mxu3 }
 0x2c6   : > { %v4267_v33 = vadd.f32 %v4211_v22, %v3610_v20 }
 0x2c7   : > { %v3278_v49 = vpop.f32.mrf.mxu1 }
 0x2c8   : > { %v4664_v42 = vadd.f32 %v4608_v31, %v4267_v33  ;;  %v3559_v23 = vpop.f32.mrf.mxu2  ;;  %v3328_v61 = vadd.f32 %v3278_v49, %v6620_v28 }
 0x2c9   : > { %v3612_v7 = vadd.f32 %v3559_v23, %v3326_v12 }
 0x2ca   : > { %v4711_v30 = vsel %vm1251_vm12, %v4664_v42, 0.0  ;;  %v4765_v63 = vmul.f32 %v4664_v42, %v4664_v42  ;;  %v4870_v16 = vpack.c.bf16 %v4664_v42, %v4664_v42 }
 0x2cb   : > { %v4712_v51 = vadd.f32 %v4711_v30, %v4710_v43 }
 0x2cc   : > { %v4812_v34 = vsel %vm1251_vm12, %v4765_v63, 0.0  ;;  %4902 = vst.msk [vmem:[%s6856_s6 + $0x40] sm:$0xf] %vm215_vm5, %v4870_v16  ;;  %v4610_v8 = vpop.f32.mrf.mxu0 }
 0x2cd   : > { %v4813_v54 = vadd.f32 %v4812_v34, %v4811_v3  ;;  %v4213_v45 = vpop.f32.mrf.mxu3 }
 0x2ce   : > { %v4268_v0 = vadd.f32 %v4213_v45, %v3611_v25 }
 0x2cf   : > { %v3280_v53 = vpop.f32.mrf.mxu1 }
 0x2d0   : > { %v4665_v14 = vadd.f32 %v4610_v8, %v4268_v0  ;;  %v3561_v6 = vpop.f32.mrf.mxu2  ;;  %v3329_v28 = vadd.f32 %v3280_v53, %v6635_v26 }
 0x2d1   : > { %v3613_v24 = vadd.f32 %v3561_v6, %v3327_v50 }
 0x2d2   : > { %v4713_v52 = vsel %vm1251_vm12, %v4665_v14, 0.0  ;;  %v4766_v38 = vmul.f32 %v4665_v14, %v4665_v14  ;;  %v4871_v4 = vpack.c.bf16 %v4665_v14, %v4665_v14 }
 0x2d3   : > { %v4714_v19 = vadd.f32 %v4713_v52, %v4712_v51 }
 0x2d4   : > { %v4814_v32 = vsel %vm1251_vm12, %v4766_v38, 0.0  ;;  %4903 = vst.msk [vmem:[%s6856_s6 + $0x44] sm:$0xf] %vm215_vm5, %v4871_v4  ;;  %v4613_v18 = vpop.f32.mrf.mxu0 }
 0x2d5   : > { %v4815_v57 = vadd.f32 %v4814_v32, %v4813_v54  ;;  %v4216_v15 = vpop.f32.mrf.mxu3 }
 0x2d6   : > { %v4269_v1 = vadd.f32 %v4216_v15, %v3612_v7 }
 0x2d7   : > { %v3283_v55 = vpop.f32.mrf.mxu1 }
 0x2d8   : > { %v4666_v62 = vadd.f32 %v4613_v18, %v4269_v1  ;;  %v3564_v5 = vpop.f32.mrf.mxu2  ;;  %v3330_v26 = vadd.f32 %v3283_v55, %v6657_v48 }
 0x2d9   : > { %v3614_v27 = vadd.f32 %v3564_v5, %v3328_v61 }
 0x2da   : > { %v4715_v46 = vsel %vm1251_vm12, %v4666_v62, 0.0  ;;  %v4767_v10 = vmul.f32 %v4666_v62, %v4666_v62  ;;  %v4872_v13 = vpack.c.bf16 %v4666_v62, %v4666_v62 }
 0x2db   : > { %v4716_v9 = vadd.f32 %v4715_v46, %v4714_v19 }
 0x2dc   : > { %v4816_v39 = vsel %vm1251_vm12, %v4767_v10, 0.0  ;;  %4904 = vst.msk [vmem:[%s6856_s6 + $0x48] sm:$0xf] %vm215_vm5, %v4872_v13  ;;  %v4615_v36 = vpop.f32.mrf.mxu0 }
 0x2dd   : > { %v4817_v44 = vadd.f32 %v4816_v39, %v4815_v57  ;;  %v4218_v37 = vpop.f32.mrf.mxu3 }
 0x2de   : > { %v4270_v11 = vadd.f32 %v4218_v37, %v3613_v24 }
 0x2df   : > { %v3285_v22 = vpop.f32.mrf.mxu1 }
 0x2e0   : > { %v4667_v41 = vadd.f32 %v4615_v36, %v4270_v11  ;;  %v3566_v21 = vpop.f32.mrf.mxu2  ;;  %v3331_v50 = vadd.f32 %v3285_v22, %v6672_v40 }
 0x2e1   : > { %v3615_v51 = vadd.f32 %v3566_v21, %v3329_v28 }
 0x2e2   : > { %v4717_v29 = vsel %vm1251_vm12, %v4667_v41, 0.0  ;;  %v4768_v20 = vmul.f32 %v4667_v41, %v4667_v41  ;;  %v4873_v43 = vpack.c.bf16 %v4667_v41, %v4667_v41 }
 0x2e3   : > { %v4718_v3 = vadd.f32 %v4717_v29, %v4716_v9 }
 0x2e4   : > { %v4818_v31 = vsel %vm1251_vm12, %v4768_v20, 0.0  ;;  %4905 = vst.msk [vmem:[%s6856_s6 + $0x4c] sm:$0xf] %vm215_vm5, %v4873_v43  ;;  %v4618_v42 = vpop.f32.mrf.mxu0 }
 0x2e5   : > { %v4819_v33 = vadd.f32 %v4818_v31, %v4817_v44  ;;  %v4221_v2 = vpop.f32.mrf.mxu3 }
 0x2e6   : > { %v4271_v23 = vadd.f32 %v4221_v2, %v3614_v27 }
 0x2e7   : > { %v3288_v12 = vpop.f32.mrf.mxu1 }
 0x2e8   : > { %v4668_v30 = vadd.f32 %v4618_v42, %v4271_v23  ;;  %v3569_v49 = vpop.f32.mrf.mxu2  ;;  %v3332_v40 = vadd.f32 %v3288_v12, %v6694_v56 }
 0x2e9   : > { %v3616_v7 = vadd.f32 %v3569_v49, %v3330_v26 }
 0x2ea   : > { %v4719_v63 = vsel %vm1251_vm12, %v4668_v30, 0.0  ;;  %v4769_v16 = vmul.f32 %v4668_v30, %v4668_v30  ;;  %v4874_v25 = vpack.c.bf16 %v4668_v30, %v4668_v30 }
 0x2eb   : > { %v4720_v34 = vadd.f32 %v4719_v63, %v4718_v3 }
 0x2ec   : > { %v4820_v54 = vsel %vm1251_vm12, %v4769_v16, 0.0  ;;  %4906 = vst.msk [vmem:[%s6856_s6 + $0x50] sm:$0xf] %vm215_vm5, %v4874_v25  ;;  %v4620_v45 = vpop.f32.mrf.mxu0 }
 0x2ed   : > { %v4821_v8 = vadd.f32 %v4820_v54, %v4819_v33  ;;  %v4223_v0 = vpop.f32.mrf.mxu3 }
 0x2ee   : > { %v4272_v14 = vadd.f32 %v4223_v0, %v3615_v51 }
 0x2ef   : > { %v3290_v5 = vpop.f32.mrf.mxu1 }
 0x2f0   : > { %v4669_v6 = vadd.f32 %v4620_v45, %v4272_v14  ;;  %v3571_v53 = vpop.f32.mrf.mxu2  ;;  %v3333_v56 = vadd.f32 %v3290_v5, %v6712_v60 }
 0x2f1   : > { %v3617_v24 = vadd.f32 %v3571_v53, %v3331_v50 }
 0x2f2   : > { %v4721_v52 = vsel %vm1251_vm12, %v4669_v6, 0.0  ;;  %v4770_v38 = vmul.f32 %v4669_v6, %v4669_v6  ;;  %v4875_v4 = vpack.c.bf16 %v4669_v6, %v4669_v6 }
 0x2f3   : > { %v4722_v19 = vadd.f32 %v4721_v52, %v4720_v34 }
 0x2f4   : > { %v4822_v32 = vsel %vm1251_vm12, %v4770_v38, 0.0  ;;  %4907 = vst.msk [vmem:[%s6856_s6 + $0x54] sm:$0xf] %vm215_vm5, %v4875_v4  ;;  %v4623_v18 = vpop.f32.mrf.mxu0 }
 0x2f5   : > { %v4823_v57 = vadd.f32 %v4822_v32, %v4821_v8  ;;  %v4226_v15 = vpop.f32.mrf.mxu3 }
 0x2f6   : > { %v4273_v1 = vadd.f32 %v4226_v15, %v3616_v7 }
 0x2f7   : > { %v3293_v43 = vpop.f32.mrf.mxu1 }
 0x2f8   : > { %v4670_v62 = vadd.f32 %v4623_v18, %v4273_v1  ;;  %v3574_v48 = vpop.f32.mrf.mxu2  ;;  %v3334_v60 = vadd.f32 %v3293_v43, %v6736_v59 }
 0x2f9   : > { %v3618_v20 = vadd.f32 %v3574_v48, %v3332_v40 }
 0x2fa   : > { %v4723_v46 = vsel %vm1251_vm12, %v4670_v62, 0.0  ;;  %v4771_v10 = vmul.f32 %v4670_v62, %v4670_v62  ;;  %v4876_v13 = vpack.c.bf16 %v4670_v62, %v4670_v62 }
 0x2fb   : > { %v4724_v55 = vadd.f32 %v4723_v46, %v4722_v19 }
 0x2fc   : > { %v4824_v9 = vsel %vm1251_vm12, %v4771_v10, 0.0  ;;  %4908 = vst.msk [vmem:[%s6856_s6 + $0x58] sm:$0xf] %vm215_vm5, %v4876_v13  ;;  %v4625_v44 = vpop.f32.mrf.mxu0 }
 0x2fd   : > { %v4825_v39 = vadd.f32 %v4824_v9, %v4823_v57  ;;  %v4228_v36 = vpop.f32.mrf.mxu3 }
 0x2fe   : > { %v4274_v37 = vadd.f32 %v4228_v36, %v3617_v24 }
 0x2ff   : > { %v3295_v51 = vpop.f32.mrf.mxu1 }
 0x300   : > { %v4671_v11 = vadd.f32 %v4625_v44, %v4274_v37  ;;  %v3576_v41 = vpop.f32.mrf.mxu2  ;;  %v3335_v59 = vadd.f32 %v3295_v51, %v6762_v47 }
 0x301   : > { %v3619_v63 = vadd.f32 %v3576_v41, %v3333_v56 }
 0x302   : > { %v4725_v61 = vsel %vm1251_vm12, %v4671_v11, 0.0  ;;  %v4772_v21 = vmul.f32 %v4671_v11, %v4671_v11  ;;  %v4877_v29 = vpack.c.bf16 %v4671_v11, %v4671_v11 }
 0x303   : > { %v4726_v27 = vadd.f32 %v4725_v61, %v4724_v55 }
 0x304   : > { %v4826_v3 = vsel %vm1251_vm12, %v4772_v21, 0.0  ;;  %4909 = vst.msk [vmem:[%s6856_s6 + $0x5c] sm:$0xf] %vm215_vm5, %v4877_v29  ;;  %v4628_v22 = vpop.f32.mrf.mxu0 }
 0x305   : > { %v4827_v31 = vadd.f32 %v4826_v3, %v4825_v39  ;;  %v4231_v33 = vpop.f32.mrf.mxu3 }
 0x306   : > { %v4275_v42 = vadd.f32 %v4231_v33, %v3618_v20 }
 0x307   : > { %v3298_v57 = vpop.f32.mrf.mxu1 }
 0x308   : > { %v4672_v2 = vadd.f32 %v4628_v22, %v4275_v42  ;;  %v3579_v23 = vpop.f32.mrf.mxu2  ;;  %v3336_v39 = vadd.f32 %v3298_v57, %v6773_v17 }
 0x309   : > { %v3620_v53 = vadd.f32 %v3579_v23, %v3334_v60 }
 0x30a   : > { %v4727_v30 = vsel %vm1251_vm12, %v4672_v2, 0.0  ;;  %v4773_v28 = vmul.f32 %v4672_v2, %v4672_v2  ;;  %v4878_v49 = vpack.c.bf16 %v4672_v2, %v4672_v2 }
 0x30b   : > { %v4728_v16 = vadd.f32 %v4727_v30, %v4726_v27 }
 0x30c   : > { %v4828_v25 = vsel %vm1251_vm12, %v4773_v28, 0.0  ;;  %4910 = vst.msk [vmem:[%s6856_s6 + $0x60] sm:$0xf] %vm215_vm5, %v4878_v49  ;;  %v4630_v54 = vpop.f32.mrf.mxu0 }
 0x30d   : > { %v4829_v34 = vadd.f32 %v4828_v25, %v4827_v31  ;;  %v4233_v8 = vpop.f32.mrf.mxu3  ;;  %v7277_v25 = vld [vmem:[#allocation6_spill] sm:$0xff] }
 0x30e   : > { %v4276_v45 = vadd.f32 %v4233_v8, %v3619_v63 }
 0x30f   : > { %v3300_v47 = vpop.f32.mrf.mxu1 }
 0x310   : > { %v4673_v0 = vadd.f32 %v4630_v54, %v4276_v45  ;;  %v3581_v14 = vpop.f32.mrf.mxu2  ;;  %v3337_v17 = vadd.f32 %v3300_v47, %v6796_v35 }
 0x311   : > { %v3621_v48 = vadd.f32 %v3581_v14, %v3335_v59 }
 0x312   : > { %v4729_v12 = vsel %vm1251_vm12, %v4673_v0, 0.0  ;;  %v4774_v6 = vmul.f32 %v4673_v0, %v4673_v0  ;;  %v4879_v26 = vpack.c.bf16 %v4673_v0, %v4673_v0 }
 0x313   : > { %v4730_v52 = vadd.f32 %v4729_v12, %v4728_v16 }
 0x314   : > { %v4830_v38 = vsel %vm1251_vm12, %v4774_v6, 0.0  ;;  %4911 = vst.msk [vmem:[%s6856_s6 + $0x64] sm:$0xf] %vm215_vm5, %v4879_v26  ;;  %v4633_v7 = vpop.f32.mrf.mxu0 }
 0x315   : > { %v4831_v4 = vadd.f32 %v4830_v38, %v4829_v34  ;;  %v4236_v19 = vpop.f32.mrf.mxu3 }
 0x316   : > { %v4277_v32 = vadd.f32 %v4236_v19, %v3620_v53 }
 0x317   : > { %v3303_v42 = vpop.f32.mrf.mxu1 }
 0x318   : > { %v4674_v18 = vadd.f32 %v4633_v7, %v4277_v32  ;;  %v3584_v15 = vpop.f32.mrf.mxu2  ;;  %v3338_v35 = vadd.f32 %v3303_v42, %v7277_v25 }
 0x319   : > { %v3622_v11 = vadd.f32 %v3584_v15, %v3336_v39 }
 0x31a   : > { %v4731_v1 = vsel %vm1251_vm12, %v4674_v18, 0.0  ;;  %v4775_v62 = vmul.f32 %v4674_v18, %v4674_v18  ;;  %v4880_v50 = vpack.c.bf16 %v4674_v18, %v4674_v18 }
 0x31b   : > { %v4732_v5 = vadd.f32 %v4731_v1, %v4730_v52 }
 0x31c   : > { %v4832_v46 = vsel %vm1251_vm12, %v4775_v62, 0.0  ;;  %4912 = vst.msk [vmem:[%s6856_s6 + $0x68] sm:$0xf] %vm215_vm5, %v4880_v50  ;;  %v4635_v13 = vpop.f32.mrf.mxu0 }
 0x31d   : > { %v4833_v10 = vadd.f32 %v4832_v46, %v4831_v4  ;;  %v4238_v24 = vpop.f32.mrf.mxu3 }
 0x31e   : > { %v4278_v55 = vadd.f32 %v4238_v24, %v3621_v48 }
 0x31f   : > { %v3305_v60 = vpop.f32.mrf.mxu1 }
 0x320   : > { %v4675_v9 = vadd.f32 %v4635_v13, %v4278_v55  ;;  %v3586_v40 = vpop.f32.mrf.mxu2  ;;  %v3339_v38 = vadd.f32 %v3305_v60, %v6832_v58 }
 0x321   : > { %v3623_v33 = vadd.f32 %v3586_v40, %v3337_v17 }
 0x322   : > { %v4733_v44 = vsel %vm1251_vm12, %v4675_v9, 0.0  ;;  %v4776_v36 = vmul.f32 %v4675_v9, %v4675_v9  ;;  %v4881_v37 = vpack.c.bf16 %v4675_v9, %v4675_v9 }
 0x323   : > { %v4734_v41 = vadd.f32 %v4733_v44, %v4732_v5 }
 0x324   : > { %v4834_v61 = vsel %vm1251_vm12, %v4776_v36, 0.0  ;;  %4913 = vst.msk [vmem:[%s6856_s6 + $0x6c] sm:$0xf] %vm215_vm5, %v4881_v37  ;;  %v4638_v29 = vpop.f32.mrf.mxu0 }
 0x325   : > { %v4835_v21 = vadd.f32 %v4834_v61, %v4833_v10  ;;  %v4241_v20 = vpop.f32.mrf.mxu3 }
 0x326   : > { %v4279_v43 = vadd.f32 %v4241_v20, %v3622_v11 }
 0x328   : > { %v4676_v27 = vadd.f32 %v4638_v29, %v4279_v43  ;;  %v3589_v23 = vpop.f32.mrf.mxu2 }
 0x329   : > { %v3624_v8 = vadd.f32 %v3589_v23, %v3338_v35 }
 0x32a   : > { %v4735_v3 = vsel %vm1251_vm12, %v4676_v27, 0.0  ;;  %v4777_v31 = vmul.f32 %v4676_v27, %v4676_v27  ;;  %v4882_v22 = vpack.c.bf16 %v4676_v27, %v4676_v27 }
 0x32b   : > { %v4736_v2 = vadd.f32 %v4735_v3, %v4734_v41 }
 0x32c   : > { %v4836_v56 = vsel %vm1251_vm12, %v4777_v31, 0.0  ;;  %4914 = vst.msk [vmem:[%s6856_s6 + $0x70] sm:$0xf] %vm215_vm5, %v4882_v22  ;;  %v4640_v28 = vpop.f32.mrf.mxu0 }
 0x32d   : > { %v4837_v30 = vadd.f32 %v4836_v56, %v4835_v21  ;;  %v4243_v49 = vpop.f32.mrf.mxu3 }
 0x32e   : > { %v4280_v63 = vadd.f32 %v4243_v49, %v3623_v33 }
 0x330   : > { %v4677_v16 = vadd.f32 %v4640_v28, %v4280_v63  ;;  %v3591_v53 = vpop.f32.mrf.mxu2 }
 0x331   : > { %v3625_v32 = vadd.f32 %v3591_v53, %v3339_v38 }
 0x332   : > { %v4737_v51 = vsel %vm1251_vm12, %v4677_v16, 0.0  ;;  %v4778_v34 = vmul.f32 %v4677_v16, %v4677_v16  ;;  %v4883_v54 = vpack.c.bf16 %v4677_v16, %v4677_v16 }
 0x333   : > { %v4738_v45 = vadd.f32 %v4737_v51, %v4736_v2 }
 0x334   : > { %v4838_v0 = vsel %vm1251_vm12, %v4778_v34, 0.0  ;;  %4915 = vst.msk [vmem:[%s6856_s6 + $0x74] sm:$0xf] %vm215_vm5, %v4883_v54  ;;  %v4643_v12 = vpop.f32.mrf.mxu0 }
 0x335   : > { %v4839_v14 = vadd.f32 %v4838_v0, %v4837_v30  ;;  %v4246_v6 = vpop.f32.mrf.mxu3 }
 0x336   : > { %v4281_v26 = vadd.f32 %v4246_v6, %v3624_v8 }
 0x338   : > { %v4678_v52 = vadd.f32 %v4643_v12, %v4281_v26 }
 0x33a   : > { %v4739_v4 = vsel %vm1251_vm12, %v4678_v52, 0.0  ;;  %v4779_v7 = vmul.f32 %v4678_v52, %v4678_v52  ;;  %v4884_v19 = vpack.c.bf16 %v4678_v52, %v4678_v52 }
 0x33b   : > { %v4740_v57 = vadd.f32 %v4739_v4, %v4738_v45 }
 0x33c   : > { %v4840_v18 = vsel %vm1251_vm12, %v4779_v7, 0.0  ;;  %4916 = vst.msk [vmem:[%s6856_s6 + $0x78] sm:$0xf] %vm215_vm5, %v4884_v19  ;;  %v4645_v62 = vpop.f32.mrf.mxu0 }
 0x33d   : > { %v4841_v59 = vadd.f32 %v4840_v18, %v4839_v14  ;;  %v4248_v15 = vpop.f32.mrf.mxu3 }
 0x33e   : > { %v4282_v1 = vadd.f32 %v4248_v15, %v3625_v32 }
 0x340   : > { %v4679_v50 = vadd.f32 %v4645_v62, %v4282_v1 }
 0x342   : > { %v4741_v58 = vsel %vm1251_vm12, %v4679_v50, 0.0  ;;  %v4780_v48 = vmul.f32 %v4679_v50, %v4679_v50  ;;  %v4885_v5 = vpack.c.bf16 %v4679_v50, %v4679_v50 }
 0x343   : > { %v4742_v46 = vadd.f32 %v4741_v58, %v4740_v57 }
 0x344   : > { %v4842_v10 = vsel %vm1251_vm12, %v4780_v48, 0.0  ;;  %4917 = vst.msk [vmem:[%s6856_s6 + $0x7c] sm:$0xf] %vm215_vm5, %v4885_v5 }
 0x345   : > { %v4743_v13 = vrot.slane %v4742_v46, 4  ;;  %v4843_v24 = vadd.f32 %v4842_v10, %v4841_v59 }
 0x347   : > { %v4744_v55 = vadd.f32 %v4743_v13, %v4742_v46  ;;  %v4844_v9 = vrot.slane %v4843_v24, 4 }
 0x349   : > { %v4745_v39 = vrot.slane %v4744_v55, 2  ;;  %v4845_v47 = vadd.f32 %v4844_v9, %v4843_v24 }
 0x34b   : > { %v4746_v44 = vadd.f32 %v4745_v39, %v4744_v55  ;;  %v4846_v36 = vrot.slane %v4845_v47, 2 }
 0x34d   : > { %v4747_v37 = vrot.slane %v4746_v44, 1  ;;  %v4847_v11 = vadd.f32 %v4846_v36, %v4845_v47 }
 0x34f   : > { %v4848_v40 = vrot.slane %v4847_v11, 1  ;;  %v4748_v41 = vadd.f32 %v4747_v37, %v4746_v44 }
 0x351   : > { %v4849_v61 = vadd.f32 %v4848_v40, %v4847_v11 }
 0x353   : > { %v4851_v21 = vsel %vm4850_vm1, %v4748_v41, %v4849_v61 }
 0x354   : > { %4853 = vst.msk [vmem:[%s171_s11] sm:$0x3] %vm4852_vm2, %v4851_v21 }
 0x355   : > { %5599 = shalt.err (!%p5596_p3)
}
 0x356   : > { %5476 = dma.vmem_to_hbm [thread:$0]  (%p5695_p5), %s4940_s17, 32, %s4942_s19, %s4924_s16  }
 0x357 PF: > { %p5482_p4 = scmp.ge.s32.totalorder %s5634_s15, 2  ;;  %s4961_s5 = sand.u32 1, %s5622_s12  }
 0x358   : > { %s4962_s6 = scalar_lea.sflag [#allocation4], %s4961_s5 }
 0x359   : > { %p5479_p7 = pnand %p5482_p4, %p5699_p6 }
 0x35b   : > { %p5480_p8 = pneg %p5479_p7 }
 0x35d   : > { %5617 = dma.done.wait (%p5480_p8), %s4962_s6, 32  }
 0x35e   : > { %5619 = vsyncadd (%p5480_p8), %s4962_s6, 4294967264  ;;  %p14_p9 = scmp.ge.s32.totalorder %s5682_s18, 4   ;;  %s7278_s12 = smov %s5626_s13 }
 0x35f   : > { %s7279_s13 = smov %s5630_s14  ;;  %s7280_s14 = smov %s5693_s21 }
 0x360   : > { %s7281_s15 = smov %s5682_s18  ;;  %16 = sbr.rel (!%p14_p9) target bundleno = 3 (0x3), region = 78 }
 0x365   :  { %4968 = vsyncpa [#allocation4], 1 }
 0x366   :  { %4970 = vsyncpa [#allocation4 + $0x1], 1 }

</bundles_post_ra>
